<compile_context>
chip_gen: v5e
topology: v5e:2x2
jax: 0.10.0
libtpu: 0.0.40
codegen_flags: <defaults>
</compile_context>

<pallas_src>
import jax
import jax.numpy as jnp
from jax.experimental import pallas as pl
from jax.experimental.pallas import tpu as pltpu

EPS = 1e-5


def _make_kernel(N, H, W, C):
    """Build the fused BasicBlock kernel for fixed (N, H, W, C)."""
    M_t = H * W                 # pixels per batch tile (one image)
    inv_m = 1.0 / (N * M_t)     # BatchNorm statistics are over the whole batch

    def conv3x3(pad_ref, w_ref):
        # 3x3 conv as 9 shifted-window matmuls accumulated in f32.
        # NOTE: each window slice materializes a small VMEM copy (not a view);
        # acceptable at tile size.  TODO(synk): pltpu.roll-based kw shifts.
        acc = jnp.zeros((M_t, C), jnp.float32)
        for t in range(9):
            kh, kw = t // 3, t % 3
            win = pad_ref[:, kh:kh + H, kw:kw + W, :].reshape(M_t, C)
            acc = acc + jnp.dot(win, w_ref[t], preferred_element_type=jnp.float32)
        return acc

    def bn_apply(v, s_row, sq_row, g_ref, b_ref):
        mean = s_row * inv_m
        var = jnp.maximum(sq_row * inv_m - mean * mean, 0.0)   # clamp: avoid NaN
        return (v - mean) * jax.lax.rsqrt(var + EPS) * g_ref[...] + b_ref[...]

    def kernel(x_ref, w1_ref, g1_ref, b1_ref, w2_ref, g2_ref, b2_ref,
               out_ref, pad_ref, h_ref, stat_ref):
        phase = pl.program_id(0)
        tile = pl.program_id(1)

        @pl.when(jnp.logical_and(phase == 0, tile == 0))
        def _init():
            stat_ref[...] = jnp.zeros_like(stat_ref)
            # Zero the halo scratch once per call; only the interior is ever
            # rewritten afterwards, so the zero ring persists for all tiles.
            pad_ref[...] = jnp.zeros_like(pad_ref)

        # ---- phase 0: conv1 per tile, accumulate bn1 batch statistics -------
        @pl.when(phase == 0)
        def _conv1():
            pad_ref[:, 1:H + 1, 1:W + 1, :] = x_ref[...].astype(jnp.float32)
            acc = conv3x3(pad_ref, w1_ref)                       # (M_t, C)
            h_ref[tile] = acc
            stat_ref[0:1, :] = stat_ref[0:1, :] + jnp.sum(acc, axis=0, keepdims=True)
            stat_ref[1:2, :] = stat_ref[1:2, :] + jnp.sum(acc * acc, axis=0,
                                                          keepdims=True)

        # ---- phase 1: bn1 + relu + conv2 per tile, accumulate bn2 stats -----
        @pl.when(phase == 1)
        def _conv2():
            raw = h_ref[tile]                                    # (M_t, C)
            h = jnp.maximum(
                bn_apply(raw, stat_ref[0:1, :], stat_ref[1:2, :], g1_ref, b1_ref),
                0.0)
            pad_ref[:, 1:H + 1, 1:W + 1, :] = h.reshape(1, H, W, C)
            acc = conv3x3(pad_ref, w2_ref)                       # (M_t, C)
            h_ref[tile] = acc
            stat_ref[2:3, :] = stat_ref[2:3, :] + jnp.sum(acc, axis=0, keepdims=True)
            stat_ref[3:4, :] = stat_ref[3:4, :] + jnp.sum(acc * acc, axis=0,
                                                          keepdims=True)

        # ---- phase 2: bn2 + residual + relu -> output tile ------------------
        @pl.when(phase == 2)
        def _finish():
            raw = h_ref[tile]                                    # (M_t, C)
            y = bn_apply(raw, stat_ref[2:3, :], stat_ref[3:4, :], g2_ref, b2_ref)
            y = y + x_ref[...].astype(jnp.float32).reshape(M_t, C)
            out_ref[...] = jnp.maximum(y, 0.0).reshape(1, H, W, C).astype(out_ref.dtype)

    return kernel


def basic_block_forward(x_nchw, params):
    """BasicBlock forward.  Input/output are NCHW to match the PyTorch module."""
    N, C, H, W = x_nchw.shape
    assert params["w1"].shape[2] == C and params["w1"].shape[3] == C, \
        "stride=1 / downsample=None needs in_planes == out_planes"

    x = jnp.transpose(x_nchw, (0, 2, 3, 1))          # NHWC, real channel count
    w1 = params["w1"].reshape(9, C, C)               # (3,3,Cin,Cout) -> 9 taps
    w2 = params["w2"].reshape(9, C, C)
    g1 = params["g1"].reshape(1, C)
    b1 = params["b1"].reshape(1, C)
    g2 = params["g2"].reshape(1, C)
    b2 = params["b2"].reshape(1, C)

    const3 = lambda p, t: (0, 0, 0)
    const2 = lambda p, t: (0, 0)

    out = pl.pallas_call(
        _make_kernel(N, H, W, C),
        out_shape=jax.ShapeDtypeStruct((N, H, W, C), x_nchw.dtype),
        grid_spec=pltpu.PrefetchScalarGridSpec(
            num_scalar_prefetch=0,
            grid=(3, N),                             # (phase, batch tile)
            in_specs=[
                # x is needed in phase 0 (conv1 input) and phase 2 (residual);
                # park it on block 0 during phase 1 to avoid refetches.
                pl.BlockSpec((1, H, W, C),
                             lambda p, t: (jnp.where(p == 1, 0, t), 0, 0, 0)),
                pl.BlockSpec((9, C, C), const3),     # w1 (stays VMEM-resident)
                pl.BlockSpec((1, C), const2),        # gamma1
                pl.BlockSpec((1, C), const2),        # beta1
                pl.BlockSpec((9, C, C), const3),     # w2
                pl.BlockSpec((1, C), const2),        # gamma2
                pl.BlockSpec((1, C), const2),        # beta2
            ],
            # Output block index only advances during phase 2 -> each tile is
            # written back to HBM exactly once, no garbage writebacks.
            out_specs=pl.BlockSpec((1, H, W, C),
                                   lambda p, t: (jnp.where(p == 2, t, 0), 0, 0, 0)),
            scratch_shapes=[
                pltpu.VMEM((1, H + 2, W + 2, C), jnp.float32),  # halo-padded tile
                pltpu.VMEM((N, H * W, C), jnp.float32),         # conv1/conv2 raw out
                pltpu.VMEM((4, C), jnp.float32),                # BN sum/sumsq rows
            ]),
        compiler_params=pltpu.CompilerParams(
            dimension_semantics=("arbitrary", "arbitrary")),
    )(x, w1, g1, b1, w2, g2, b2)

    return jnp.transpose(out, (0, 3, 1, 2))          # NHWC -> NCHW


def init_basic_block_params(key, in_planes, out_planes):
    k1, k2, k3, k4, k5, k6 = jax.random.split(key, 6)
    return {
        "w1": 0.1 * jax.random.normal(k1, (3, 3, in_planes, out_planes), jnp.float32),
        "g1": 1.0 + 0.1 * jax.random.normal(k2, (out_planes,), jnp.float32),
        "b1": 0.1 * jax.random.normal(k3, (out_planes,), jnp.float32),
        "w2": 0.1 * jax.random.normal(k4, (3, 3, out_planes, out_planes), jnp.float32),
        "g2": 1.0 + 0.1 * jax.random.normal(k5, (out_planes,), jnp.float32),
        "b2": 0.1 * jax.random.normal(k6, (out_planes,), jnp.float32),
    }


def _reference_forward(x_nchw, p):
    """Pure-JAX reference (same math, XLA convs) for the correctness check."""
    x = jnp.transpose(x_nchw, (0, 2, 3, 1)).astype(jnp.float32)

    def conv(v, w):
        return jax.lax.conv_general_dilated(
            v, w, window_strides=(1, 1), padding=((1, 1), (1, 1)),
            dimension_numbers=("NHWC", "HWIO", "NHWC"))

    def bn(v, g, b):
        mean = v.mean(axis=(0, 1, 2), keepdims=True)
        var = ((v - mean) ** 2).mean(axis=(0, 1, 2), keepdims=True)
        return (v - mean) * jax.lax.rsqrt(var + EPS) * g + b

    h = jax.nn.relu(bn(conv(x, p["w1"]), p["g1"], p["b1"]))
    o = jax.nn.relu(bn(conv(h, p["w2"]), p["g2"], p["b2"]) + x)
    return jnp.transpose(o, (0, 3, 1, 2))


if __name__ == "__main__":
    key = jax.random.PRNGKey(0)
    kx, kp = jax.random.split(key)

    N, C, H, W = 2, 8, 16, 16      # in_planes == out_planes (stride=1, no downsample)
    x = jax.random.normal(kx, (N, C, H, W), jnp.float32)   # NCHW, like PyTorch
    params = init_basic_block_params(kp, in_planes=C, out_planes=C)

    fwd = jax.jit(basic_block_forward)
    out = jax.block_until_ready(fwd(x, params))

    ref = jax.block_until_ready(_reference_forward(x, params))
    assert out.shape == (N, C, H, W) and out.dtype == jnp.float32
    assert jnp.allclose(out, ref, atol=5e-4, rtol=5e-4), "mismatch vs JAX reference"

    print("KERNEL_OK")
</pallas_src>

<mosaic_0001>
module attributes {stable_mosaic.version = 11 : i64} {
  func.func @kernel(%arg0: i32, %arg1: i32, %arg2: memref<1x16x16x8xf32, #tpu.memory_space<vmem>>, %arg3: memref<9x8x8xf32, #tpu.memory_space<vmem>>, %arg4: memref<1x8xf32, #tpu.memory_space<vmem>>, %arg5: memref<1x8xf32, #tpu.memory_space<vmem>>, %arg6: memref<9x8x8xf32, #tpu.memory_space<vmem>>, %arg7: memref<1x8xf32, #tpu.memory_space<vmem>>, %arg8: memref<1x8xf32, #tpu.memory_space<vmem>>, %arg9: memref<1x16x16x8xf32, #tpu.memory_space<vmem>>, %arg10: memref<1x18x18x8xf32, #tpu.memory_space<vmem>>, %arg11: memref<2x256x8xf32, #tpu.memory_space<vmem>>, %arg12: memref<4x8xf32, #tpu.memory_space<vmem>>) attributes {dimension_semantics = [#tpu.dimension_semantics<arbitrary>, #tpu.dimension_semantics<arbitrary>], iteration_bounds = array<i64: 3, 2>, scalar_prefetch = 0 : i64, scratch_operands = 3 : i64, tpu.core_type = #tpu.core_type<tc>, window_params = [{transform_indices = @transform_0, window_bounds = array<i64: 1, 16, 16, 8>}, {pipeline_mode = #tpu.pipeline_mode<synchronous>, transform_indices = @transform_1, window_bounds = array<i64: 9, 8, 8>}, {pipeline_mode = #tpu.pipeline_mode<synchronous>, transform_indices = @transform_2, window_bounds = array<i64: 1, 8>}, {pipeline_mode = #tpu.pipeline_mode<synchronous>, transform_indices = @transform_3, window_bounds = array<i64: 1, 8>}, {pipeline_mode = #tpu.pipeline_mode<synchronous>, transform_indices = @transform_4, window_bounds = array<i64: 9, 8, 8>}, {pipeline_mode = #tpu.pipeline_mode<synchronous>, transform_indices = @transform_5, window_bounds = array<i64: 1, 8>}, {pipeline_mode = #tpu.pipeline_mode<synchronous>, transform_indices = @transform_6, window_bounds = array<i64: 1, 8>}, {transform_indices = @transform_7, window_bounds = array<i64: 1, 16, 16, 8>}]} {
    %c0_i32 = arith.constant 0 : i32
    %0 = arith.cmpi eq, %arg0, %c0_i32 : i32
    %c0_i32_0 = arith.constant 0 : i32
    %1 = arith.cmpi eq, %arg1, %c0_i32_0 : i32
    %2 = arith.andi %0, %1 : i1
    %3 = arith.extui %2 : i1 to i32
    %c0_i32_1 = arith.constant 0 : i32
    %4 = arith.cmpi ne, %3, %c0_i32_1 : i32
    scf.if %4 {
      %cst = arith.constant 0.000000e+00 : f32
      %14 = vector.broadcast %cst : f32 to vector<4x8xf32>
      %c0 = arith.constant 0 : index
      %c0_6 = arith.constant 0 : index
      %15 = vector.load %arg12[%c0, %c0_6] : memref<4x8xf32, #tpu.memory_space<vmem>>, vector<4x8xf32>
      tpu.vector_store %arg12[%c0, %c0_6], %14 {strides = array<i32>} : memref<4x8xf32, #tpu.memory_space<vmem>>, vector<4x8xf32>,
      %cst_7 = arith.constant 0.000000e+00 : f32
      %16 = vector.broadcast %cst_7 : f32 to vector<1x18x18x8xf32>
      %c0_8 = arith.constant 0 : index
      %c0_9 = arith.constant 0 : index
      %c0_10 = arith.constant 0 : index
      %c0_11 = arith.constant 0 : index
      %17 = vector.load %arg10[%c0_8, %c0_9, %c0_10, %c0_11] : memref<1x18x18x8xf32, #tpu.memory_space<vmem>>, vector<1x18x18x8xf32>
      tpu.vector_store %arg10[%c0_8, %c0_9, %c0_10, %c0_11], %16 {strides = array<i32>} : memref<1x18x18x8xf32, #tpu.memory_space<vmem>>, vector<1x18x18x8xf32>,
    } else {
    }
    %c0_i32_2 = arith.constant 0 : i32
    %5 = arith.cmpi eq, %arg0, %c0_i32_2 : i32
    %6 = arith.extui %5 : i1 to i32
    %c0_i32_3 = arith.constant 0 : i32
    %7 = arith.cmpi ne, %6, %c0_i32_3 : i32
    scf.if %7 {
      %c0 = arith.constant 0 : index
      %c0_6 = arith.constant 0 : index
      %c0_7 = arith.constant 0 : index
      %c0_8 = arith.constant 0 : index
      %14 = vector.load %arg2[%c0, %c0_6, %c0_7, %c0_8] : memref<1x16x16x8xf32, #tpu.memory_space<vmem>>, vector<1x16x16x8xf32>
      %c0_9 = arith.constant 0 : index
      %c1 = arith.constant 1 : index
      %c1_10 = arith.constant 1 : index
      %c0_11 = arith.constant 0 : index
      %15 = vector.load %arg10[%c0_9, %c1, %c1_10, %c0_11] : memref<1x18x18x8xf32, #tpu.memory_space<vmem>>, vector<1x16x16x8xf32>
      tpu.vector_store %arg10[%c0_9, %c1, %c1_10, %c0_11], %14 {strides = array<i32>} : memref<1x18x18x8xf32, #tpu.memory_space<vmem>>, vector<1x16x16x8xf32>,
      %cst = arith.constant 0.000000e+00 : f32
      %16 = vector.broadcast %cst : f32 to vector<256x8xf32>
      %c0_12 = arith.constant 0 : index
      %c0_13 = arith.constant 0 : index
      %c0_14 = arith.constant 0 : index
      %c0_15 = arith.constant 0 : index
      %17 = vector.load %arg10[%c0_12, %c0_13, %c0_14, %c0_15] : memref<1x18x18x8xf32, #tpu.memory_space<vmem>>, vector<1x16x16x8xf32>
      %18 = vector.shape_cast %17 : vector<1x16x16x8xf32> to vector<256x8xf32>
      %c0_16 = arith.constant 0 : index
      %c0_17 = arith.constant 0 : index
      %c0_18 = arith.constant 0 : index
      %19 = vector.load %arg3[%c0_16, %c0_17, %c0_18] : memref<9x8x8xf32, #tpu.memory_space<vmem>>, vector<1x8x8xf32>
      %20 = vector.shape_cast %19 : vector<1x8x8xf32> to vector<8x8xf32>
      %cst_19 = arith.constant dense<0.000000e+00> : vector<256x8xf32>
      %21 = tpu.matmul %18, %20, %cst_19 {dimension_numbers = #tpu.dot_dimension_numbers<[1], [0], [0], [1], [0, 0, 1, 1], [], []>} : vector<256x8xf32>, vector<8x8xf32>, vector<256x8xf32> -> vector<256x8xf32>
      %22 = arith.addf %16, %21 : vector<256x8xf32>
      %c0_20 = arith.constant 0 : index
      %c0_21 = arith.constant 0 : index
      %c1_22 = arith.constant 1 : index
      %c0_23 = arith.constant 0 : index
      %23 = vector.load %arg10[%c0_20, %c0_21, %c1_22, %c0_23] : memref<1x18x18x8xf32, #tpu.memory_space<vmem>>, vector<1x16x16x8xf32>
      %24 = vector.shape_cast %23 : vector<1x16x16x8xf32> to vector<256x8xf32>
      %c1_24 = arith.constant 1 : index
      %c0_25 = arith.constant 0 : index
      %c0_26 = arith.constant 0 : index
      %25 = vector.load %arg3[%c1_24, %c0_25, %c0_26] : memref<9x8x8xf32, #tpu.memory_space<vmem>>, vector<1x8x8xf32>
      %26 = vector.shape_cast %25 : vector<1x8x8xf32> to vector<8x8xf32>
      %cst_27 = arith.constant dense<0.000000e+00> : vector<256x8xf32>
      %27 = tpu.matmul %24, %26, %cst_27 {dimension_numbers = #tpu.dot_dimension_numbers<[1], [0], [0], [1], [0, 0, 1, 1], [], []>} : vector<256x8xf32>, vector<8x8xf32>, vector<256x8xf32> -> vector<256x8xf32>
      %28 = arith.addf %22, %27 : vector<256x8xf32>
      %c0_28 = arith.constant 0 : index
      %c0_29 = arith.constant 0 : index
      %c2 = arith.constant 2 : index
      %c0_30 = arith.constant 0 : index
      %29 = vector.load %arg10[%c0_28, %c0_29, %c2, %c0_30] : memref<1x18x18x8xf32, #tpu.memory_space<vmem>>, vector<1x16x16x8xf32>
      %30 = vector.shape_cast %29 : vector<1x16x16x8xf32> to vector<256x8xf32>
      %c2_31 = arith.constant 2 : index
      %c0_32 = arith.constant 0 : index
      %c0_33 = arith.constant 0 : index
      %31 = vector.load %arg3[%c2_31, %c0_32, %c0_33] : memref<9x8x8xf32, #tpu.memory_space<vmem>>, vector<1x8x8xf32>
      %32 = vector.shape_cast %31 : vector<1x8x8xf32> to vector<8x8xf32>
      %cst_34 = arith.constant dense<0.000000e+00> : vector<256x8xf32>
      %33 = tpu.matmul %30, %32, %cst_34 {dimension_numbers = #tpu.dot_dimension_numbers<[1], [0], [0], [1], [0, 0, 1, 1], [], []>} : vector<256x8xf32>, vector<8x8xf32>, vector<256x8xf32> -> vector<256x8xf32>
      %34 = arith.addf %28, %33 : vector<256x8xf32>
      %c0_35 = arith.constant 0 : index
      %c1_36 = arith.constant 1 : index
      %c0_37 = arith.constant 0 : index
      %c0_38 = arith.constant 0 : index
      %35 = vector.load %arg10[%c0_35, %c1_36, %c0_37, %c0_38] : memref<1x18x18x8xf32, #tpu.memory_space<vmem>>, vector<1x16x16x8xf32>
      %36 = vector.shape_cast %35 : vector<1x16x16x8xf32> to vector<256x8xf32>
      %c3 = arith.constant 3 : index
      %c0_39 = arith.constant 0 : index
      %c0_40 = arith.constant 0 : index
      %37 = vector.load %arg3[%c3, %c0_39, %c0_40] : memref<9x8x8xf32, #tpu.memory_space<vmem>>, vector<1x8x8xf32>
      %38 = vector.shape_cast %37 : vector<1x8x8xf32> to vector<8x8xf32>
      %cst_41 = arith.constant dense<0.000000e+00> : vector<256x8xf32>
      %39 = tpu.matmul %36, %38, %cst_41 {dimension_numbers = #tpu.dot_dimension_numbers<[1], [0], [0], [1], [0, 0, 1, 1], [], []>} : vector<256x8xf32>, vector<8x8xf32>, vector<256x8xf32> -> vector<256x8xf32>
      %40 = arith.addf %34, %39 : vector<256x8xf32>
      %c0_42 = arith.constant 0 : index
      %c1_43 = arith.constant 1 : index
      %c1_44 = arith.constant 1 : index
      %c0_45 = arith.constant 0 : index
      %41 = vector.load %arg10[%c0_42, %c1_43, %c1_44, %c0_45] : memref<1x18x18x8xf32, #tpu.memory_space<vmem>>, vector<1x16x16x8xf32>
      %42 = vector.shape_cast %41 : vector<1x16x16x8xf32> to vector<256x8xf32>
      %c4 = arith.constant 4 : index
      %c0_46 = arith.constant 0 : index
      %c0_47 = arith.constant 0 : index
      %43 = vector.load %arg3[%c4, %c0_46, %c0_47] : memref<9x8x8xf32, #tpu.memory_space<vmem>>, vector<1x8x8xf32>
      %44 = vector.shape_cast %43 : vector<1x8x8xf32> to vector<8x8xf32>
      %cst_48 = arith.constant dense<0.000000e+00> : vector<256x8xf32>
      %45 = tpu.matmul %42, %44, %cst_48 {dimension_numbers = #tpu.dot_dimension_numbers<[1], [0], [0], [1], [0, 0, 1, 1], [], []>} : vector<256x8xf32>, vector<8x8xf32>, vector<256x8xf32> -> vector<256x8xf32>
      %46 = arith.addf %40, %45 : vector<256x8xf32>
      %c0_49 = arith.constant 0 : index
      %c1_50 = arith.constant 1 : index
      %c2_51 = arith.constant 2 : index
      %c0_52 = arith.constant 0 : index
      %47 = vector.load %arg10[%c0_49, %c1_50, %c2_51, %c0_52] : memref<1x18x18x8xf32, #tpu.memory_space<vmem>>, vector<1x16x16x8xf32>
      %48 = vector.shape_cast %47 : vector<1x16x16x8xf32> to vector<256x8xf32>
      %c5 = arith.constant 5 : index
      %c0_53 = arith.constant 0 : index
      %c0_54 = arith.constant 0 : index
      %49 = vector.load %arg3[%c5, %c0_53, %c0_54] : memref<9x8x8xf32, #tpu.memory_space<vmem>>, vector<1x8x8xf32>
      %50 = vector.shape_cast %49 : vector<1x8x8xf32> to vector<8x8xf32>
      %cst_55 = arith.constant dense<0.000000e+00> : vector<256x8xf32>
      %51 = tpu.matmul %48, %50, %cst_55 {dimension_numbers = #tpu.dot_dimension_numbers<[1], [0], [0], [1], [0, 0, 1, 1], [], []>} : vector<256x8xf32>, vector<8x8xf32>, vector<256x8xf32> -> vector<256x8xf32>
      %52 = arith.addf %46, %51 : vector<256x8xf32>
      %c0_56 = arith.constant 0 : index
      %c2_57 = arith.constant 2 : index
      %c0_58 = arith.constant 0 : index
      %c0_59 = arith.constant 0 : index
      %53 = vector.load %arg10[%c0_56, %c2_57, %c0_58, %c0_59] : memref<1x18x18x8xf32, #tpu.memory_space<vmem>>, vector<1x16x16x8xf32>
      %54 = vector.shape_cast %53 : vector<1x16x16x8xf32> to vector<256x8xf32>
      %c6 = arith.constant 6 : index
      %c0_60 = arith.constant 0 : index
      %c0_61 = arith.constant 0 : index
      %55 = vector.load %arg3[%c6, %c0_60, %c0_61] : memref<9x8x8xf32, #tpu.memory_space<vmem>>, vector<1x8x8xf32>
      %56 = vector.shape_cast %55 : vector<1x8x8xf32> to vector<8x8xf32>
      %cst_62 = arith.constant dense<0.000000e+00> : vector<256x8xf32>
      %57 = tpu.matmul %54, %56, %cst_62 {dimension_numbers = #tpu.dot_dimension_numbers<[1], [0], [0], [1], [0, 0, 1, 1], [], []>} : vector<256x8xf32>, vector<8x8xf32>, vector<256x8xf32> -> vector<256x8xf32>
      %58 = arith.addf %52, %57 : vector<256x8xf32>
      %c0_63 = arith.constant 0 : index
      %c2_64 = arith.constant 2 : index
      %c1_65 = arith.constant 1 : index
      %c0_66 = arith.constant 0 : index
      %59 = vector.load %arg10[%c0_63, %c2_64, %c1_65, %c0_66] : memref<1x18x18x8xf32, #tpu.memory_space<vmem>>, vector<1x16x16x8xf32>
      %60 = vector.shape_cast %59 : vector<1x16x16x8xf32> to vector<256x8xf32>
      %c7 = arith.constant 7 : index
      %c0_67 = arith.constant 0 : index
      %c0_68 = arith.constant 0 : index
      %61 = vector.load %arg3[%c7, %c0_67, %c0_68] : memref<9x8x8xf32, #tpu.memory_space<vmem>>, vector<1x8x8xf32>
      %62 = vector.shape_cast %61 : vector<1x8x8xf32> to vector<8x8xf32>
      %cst_69 = arith.constant dense<0.000000e+00> : vector<256x8xf32>
      %63 = tpu.matmul %60, %62, %cst_69 {dimension_numbers = #tpu.dot_dimension_numbers<[1], [0], [0], [1], [0, 0, 1, 1], [], []>} : vector<256x8xf32>, vector<8x8xf32>, vector<256x8xf32> -> vector<256x8xf32>
      %64 = arith.addf %58, %63 : vector<256x8xf32>
      %c0_70 = arith.constant 0 : index
      %c2_71 = arith.constant 2 : index
      %c2_72 = arith.constant 2 : index
      %c0_73 = arith.constant 0 : index
      %65 = vector.load %arg10[%c0_70, %c2_71, %c2_72, %c0_73] : memref<1x18x18x8xf32, #tpu.memory_space<vmem>>, vector<1x16x16x8xf32>
      %66 = vector.shape_cast %65 : vector<1x16x16x8xf32> to vector<256x8xf32>
      %c8 = arith.constant 8 : index
      %c0_74 = arith.constant 0 : index
      %c0_75 = arith.constant 0 : index
      %67 = vector.load %arg3[%c8, %c0_74, %c0_75] : memref<9x8x8xf32, #tpu.memory_space<vmem>>, vector<1x8x8xf32>
      %68 = vector.shape_cast %67 : vector<1x8x8xf32> to vector<8x8xf32>
      %cst_76 = arith.constant dense<0.000000e+00> : vector<256x8xf32>
      %69 = tpu.matmul %66, %68, %cst_76 {dimension_numbers = #tpu.dot_dimension_numbers<[1], [0], [0], [1], [0, 0, 1, 1], [], []>} : vector<256x8xf32>, vector<8x8xf32>, vector<256x8xf32> -> vector<256x8xf32>
      %70 = arith.addf %64, %69 : vector<256x8xf32>
      %71 = arith.index_cast %arg1 : i32 to index
      %c0_77 = arith.constant 0 : index
      %c0_78 = arith.constant 0 : index
      %72 = vector.load %arg11[%71, %c0_77, %c0_78] : memref<2x256x8xf32, #tpu.memory_space<vmem>>, vector<1x256x8xf32>
      %73 = vector.shape_cast %72 : vector<1x256x8xf32> to vector<256x8xf32>
      %74 = vector.shape_cast %70 : vector<256x8xf32> to vector<1x256x8xf32>
      tpu.vector_store %arg11[%71, %c0_77, %c0_78], %74 {strides = array<i32>} : memref<2x256x8xf32, #tpu.memory_space<vmem>>, vector<1x256x8xf32>,
      %c0_79 = arith.constant 0 : index
      %c0_80 = arith.constant 0 : index
      %75 = vector.load %arg12[%c0_79, %c0_80] : memref<4x8xf32, #tpu.memory_space<vmem>>, vector<1x8xf32>
      %cst_81 = arith.constant dense<0.000000e+00> : vector<8xf32>
      %76 = vector.multi_reduction <add>, %70, %cst_81 [0] : vector<256x8xf32> to vector<8xf32>
      %77 = vector.shape_cast %76 : vector<8xf32> to vector<1x8xf32>
      %78 = arith.addf %75, %77 : vector<1x8xf32>
      %c0_82 = arith.constant 0 : index
      %c0_83 = arith.constant 0 : index
      %79 = vector.load %arg12[%c0_82, %c0_83] : memref<4x8xf32, #tpu.memory_space<vmem>>, vector<1x8xf32>
      tpu.vector_store %arg12[%c0_82, %c0_83], %78 {strides = array<i32>} : memref<4x8xf32, #tpu.memory_space<vmem>>, vector<1x8xf32>,
      %c1_84 = arith.constant 1 : index
      %c0_85 = arith.constant 0 : index
      %80 = vector.load %arg12[%c1_84, %c0_85] : memref<4x8xf32, #tpu.memory_space<vmem>>, vector<1x8xf32>
      %81 = arith.mulf %70, %70 : vector<256x8xf32>
      %cst_86 = arith.constant dense<0.000000e+00> : vector<8xf32>
      %82 = vector.multi_reduction <add>, %81, %cst_86 [0] : vector<256x8xf32> to vector<8xf32>
      %83 = vector.shape_cast %82 : vector<8xf32> to vector<1x8xf32>
      %84 = arith.addf %80, %83 : vector<1x8xf32>
      %c1_87 = arith.constant 1 : index
      %c0_88 = arith.constant 0 : index
      %85 = vector.load %arg12[%c1_87, %c0_88] : memref<4x8xf32, #tpu.memory_space<vmem>>, vector<1x8xf32>
      tpu.vector_store %arg12[%c1_87, %c0_88], %84 {strides = array<i32>} : memref<4x8xf32, #tpu.memory_space<vmem>>, vector<1x8xf32>,
    } else {
    }
    %c1_i32 = arith.constant 1 : i32
    %8 = arith.cmpi eq, %arg0, %c1_i32 : i32
    %9 = arith.extui %8 : i1 to i32
    %c0_i32_4 = arith.constant 0 : i32
    %10 = arith.cmpi ne, %9, %c0_i32_4 : i32
    scf.if %10 {
      %14 = arith.index_cast %arg1 : i32 to index
      %c0 = arith.constant 0 : index
      %c0_6 = arith.constant 0 : index
      %15 = vector.load %arg11[%14, %c0, %c0_6] : memref<2x256x8xf32, #tpu.memory_space<vmem>>, vector<1x256x8xf32>
      %16 = vector.shape_cast %15 : vector<1x256x8xf32> to vector<256x8xf32>
      %c0_7 = arith.constant 0 : index
      %c0_8 = arith.constant 0 : index
      %17 = vector.load %arg12[%c0_7, %c0_8] : memref<4x8xf32, #tpu.memory_space<vmem>>, vector<1x8xf32>
      %c1 = arith.constant 1 : index
      %c0_9 = arith.constant 0 : index
      %18 = vector.load %arg12[%c1, %c0_9] : memref<4x8xf32, #tpu.memory_space<vmem>>, vector<1x8xf32>
      %cst = arith.constant 0.001953125 : f32
      %19 = vector.broadcast %cst : f32 to vector<1x8xf32>
      %20 = arith.mulf %17, %19 : vector<1x8xf32>
      %cst_10 = arith.constant 0.001953125 : f32
      %21 = vector.broadcast %cst_10 : f32 to vector<1x8xf32>
      %22 = arith.mulf %18, %21 : vector<1x8xf32>
      %23 = arith.mulf %20, %20 : vector<1x8xf32>
      %24 = arith.subf %22, %23 : vector<1x8xf32>
      %cst_11 = arith.constant 0.000000e+00 : f32
      %25 = vector.broadcast %cst_11 : f32 to vector<1x8xf32>
      %26 = arith.maximumf %24, %25 : vector<1x8xf32>
      %27 = vector.broadcast %20 : vector<1x8xf32> to vector<256x8xf32>
      %28 = arith.subf %16, %27 : vector<256x8xf32>
      %cst_12 = arith.constant 9.99999974E-6 : f32
      %29 = vector.broadcast %cst_12 : f32 to vector<1x8xf32>
      %30 = arith.addf %26, %29 : vector<1x8xf32>
      %31 = math.rsqrt %30 : vector<1x8xf32>
      %32 = vector.broadcast %31 : vector<1x8xf32> to vector<256x8xf32>
      %33 = arith.mulf %28, %32 : vector<256x8xf32>
      %c0_13 = arith.constant 0 : index
      %c0_14 = arith.constant 0 : index
      %34 = vector.load %arg4[%c0_13, %c0_14] : memref<1x8xf32, #tpu.memory_space<vmem>>, vector<1x8xf32>
      %35 = vector.broadcast %34 : vector<1x8xf32> to vector<256x8xf32>
      %36 = arith.mulf %33, %35 : vector<256x8xf32>
      %c0_15 = arith.constant 0 : index
      %c0_16 = arith.constant 0 : index
      %37 = vector.load %arg5[%c0_15, %c0_16] : memref<1x8xf32, #tpu.memory_space<vmem>>, vector<1x8xf32>
      %38 = vector.broadcast %37 : vector<1x8xf32> to vector<256x8xf32>
      %39 = arith.addf %36, %38 : vector<256x8xf32>
      %cst_17 = arith.constant 0.000000e+00 : f32
      %40 = vector.broadcast %cst_17 : f32 to vector<256x8xf32>
      %41 = arith.maximumf %39, %40 : vector<256x8xf32>
      %42 = vector.shape_cast %41 : vector<256x8xf32> to vector<1x16x16x8xf32>
      %c0_18 = arith.constant 0 : index
      %c1_19 = arith.constant 1 : index
      %c1_20 = arith.constant 1 : index
      %c0_21 = arith.constant 0 : index
      %43 = vector.load %arg10[%c0_18, %c1_19, %c1_20, %c0_21] : memref<1x18x18x8xf32, #tpu.memory_space<vmem>>, vector<1x16x16x8xf32>
      tpu.vector_store %arg10[%c0_18, %c1_19, %c1_20, %c0_21], %42 {strides = array<i32>} : memref<1x18x18x8xf32, #tpu.memory_space<vmem>>, vector<1x16x16x8xf32>,
      %cst_22 = arith.constant 0.000000e+00 : f32
      %44 = vector.broadcast %cst_22 : f32 to vector<256x8xf32>
      %c0_23 = arith.constant 0 : index
      %c0_24 = arith.constant 0 : index
      %c0_25 = arith.constant 0 : index
      %c0_26 = arith.constant 0 : index
      %45 = vector.load %arg10[%c0_23, %c0_24, %c0_25, %c0_26] : memref<1x18x18x8xf32, #tpu.memory_space<vmem>>, vector<1x16x16x8xf32>
      %46 = vector.shape_cast %45 : vector<1x16x16x8xf32> to vector<256x8xf32>
      %c0_27 = arith.constant 0 : index
      %c0_28 = arith.constant 0 : index
      %c0_29 = arith.constant 0 : index
      %47 = vector.load %arg6[%c0_27, %c0_28, %c0_29] : memref<9x8x8xf32, #tpu.memory_space<vmem>>, vector<1x8x8xf32>
      %48 = vector.shape_cast %47 : vector<1x8x8xf32> to vector<8x8xf32>
      %cst_30 = arith.constant dense<0.000000e+00> : vector<256x8xf32>
      %49 = tpu.matmul %46, %48, %cst_30 {dimension_numbers = #tpu.dot_dimension_numbers<[1], [0], [0], [1], [0, 0, 1, 1], [], []>} : vector<256x8xf32>, vector<8x8xf32>, vector<256x8xf32> -> vector<256x8xf32>
      %50 = arith.addf %44, %49 : vector<256x8xf32>
      %c0_31 = arith.constant 0 : index
      %c0_32 = arith.constant 0 : index
      %c1_33 = arith.constant 1 : index
      %c0_34 = arith.constant 0 : index
      %51 = vector.load %arg10[%c0_31, %c0_32, %c1_33, %c0_34] : memref<1x18x18x8xf32, #tpu.memory_space<vmem>>, vector<1x16x16x8xf32>
      %52 = vector.shape_cast %51 : vector<1x16x16x8xf32> to vector<256x8xf32>
      %c1_35 = arith.constant 1 : index
      %c0_36 = arith.constant 0 : index
      %c0_37 = arith.constant 0 : index
      %53 = vector.load %arg6[%c1_35, %c0_36, %c0_37] : memref<9x8x8xf32, #tpu.memory_space<vmem>>, vector<1x8x8xf32>
      %54 = vector.shape_cast %53 : vector<1x8x8xf32> to vector<8x8xf32>
      %cst_38 = arith.constant dense<0.000000e+00> : vector<256x8xf32>
      %55 = tpu.matmul %52, %54, %cst_38 {dimension_numbers = #tpu.dot_dimension_numbers<[1], [0], [0], [1], [0, 0, 1, 1], [], []>} : vector<256x8xf32>, vector<8x8xf32>, vector<256x8xf32> -> vector<256x8xf32>
      %56 = arith.addf %50, %55 : vector<256x8xf32>
      %c0_39 = arith.constant 0 : index
      %c0_40 = arith.constant 0 : index
      %c2 = arith.constant 2 : index
      %c0_41 = arith.constant 0 : index
      %57 = vector.load %arg10[%c0_39, %c0_40, %c2, %c0_41] : memref<1x18x18x8xf32, #tpu.memory_space<vmem>>, vector<1x16x16x8xf32>
      %58 = vector.shape_cast %57 : vector<1x16x16x8xf32> to vector<256x8xf32>
      %c2_42 = arith.constant 2 : index
      %c0_43 = arith.constant 0 : index
      %c0_44 = arith.constant 0 : index
      %59 = vector.load %arg6[%c2_42, %c0_43, %c0_44] : memref<9x8x8xf32, #tpu.memory_space<vmem>>, vector<1x8x8xf32>
      %60 = vector.shape_cast %59 : vector<1x8x8xf32> to vector<8x8xf32>
      %cst_45 = arith.constant dense<0.000000e+00> : vector<256x8xf32>
      %61 = tpu.matmul %58, %60, %cst_45 {dimension_numbers = #tpu.dot_dimension_numbers<[1], [0], [0], [1], [0, 0, 1, 1], [], []>} : vector<256x8xf32>, vector<8x8xf32>, vector<256x8xf32> -> vector<256x8xf32>
      %62 = arith.addf %56, %61 : vector<256x8xf32>
      %c0_46 = arith.constant 0 : index
      %c1_47 = arith.constant 1 : index
      %c0_48 = arith.constant 0 : index
      %c0_49 = arith.constant 0 : index
      %63 = vector.load %arg10[%c0_46, %c1_47, %c0_48, %c0_49] : memref<1x18x18x8xf32, #tpu.memory_space<vmem>>, vector<1x16x16x8xf32>
      %64 = vector.shape_cast %63 : vector<1x16x16x8xf32> to vector<256x8xf32>
      %c3 = arith.constant 3 : index
      %c0_50 = arith.constant 0 : index
      %c0_51 = arith.constant 0 : index
      %65 = vector.load %arg6[%c3, %c0_50, %c0_51] : memref<9x8x8xf32, #tpu.memory_space<vmem>>, vector<1x8x8xf32>
      %66 = vector.shape_cast %65 : vector<1x8x8xf32> to vector<8x8xf32>
      %cst_52 = arith.constant dense<0.000000e+00> : vector<256x8xf32>
      %67 = tpu.matmul %64, %66, %cst_52 {dimension_numbers = #tpu.dot_dimension_numbers<[1], [0], [0], [1], [0, 0, 1, 1], [], []>} : vector<256x8xf32>, vector<8x8xf32>, vector<256x8xf32> -> vector<256x8xf32>
      %68 = arith.addf %62, %67 : vector<256x8xf32>
      %c0_53 = arith.constant 0 : index
      %c1_54 = arith.constant 1 : index
      %c1_55 = arith.constant 1 : index
      %c0_56 = arith.constant 0 : index
      %69 = vector.load %arg10[%c0_53, %c1_54, %c1_55, %c0_56] : memref<1x18x18x8xf32, #tpu.memory_space<vmem>>, vector<1x16x16x8xf32>
      %70 = vector.shape_cast %69 : vector<1x16x16x8xf32> to vector<256x8xf32>
      %c4 = arith.constant 4 : index
      %c0_57 = arith.constant 0 : index
      %c0_58 = arith.constant 0 : index
      %71 = vector.load %arg6[%c4, %c0_57, %c0_58] : memref<9x8x8xf32, #tpu.memory_space<vmem>>, vector<1x8x8xf32>
      %72 = vector.shape_cast %71 : vector<1x8x8xf32> to vector<8x8xf32>
      %cst_59 = arith.constant dense<0.000000e+00> : vector<256x8xf32>
      %73 = tpu.matmul %70, %72, %cst_59 {dimension_numbers = #tpu.dot_dimension_numbers<[1], [0], [0], [1], [0, 0, 1, 1], [], []>} : vector<256x8xf32>, vector<8x8xf32>, vector<256x8xf32> -> vector<256x8xf32>
      %74 = arith.addf %68, %73 : vector<256x8xf32>
      %c0_60 = arith.constant 0 : index
      %c1_61 = arith.constant 1 : index
      %c2_62 = arith.constant 2 : index
      %c0_63 = arith.constant 0 : index
      %75 = vector.load %arg10[%c0_60, %c1_61, %c2_62, %c0_63] : memref<1x18x18x8xf32, #tpu.memory_space<vmem>>, vector<1x16x16x8xf32>
      %76 = vector.shape_cast %75 : vector<1x16x16x8xf32> to vector<256x8xf32>
      %c5 = arith.constant 5 : index
      %c0_64 = arith.constant 0 : index
      %c0_65 = arith.constant 0 : index
      %77 = vector.load %arg6[%c5, %c0_64, %c0_65] : memref<9x8x8xf32, #tpu.memory_space<vmem>>, vector<1x8x8xf32>
      %78 = vector.shape_cast %77 : vector<1x8x8xf32> to vector<8x8xf32>
      %cst_66 = arith.constant dense<0.000000e+00> : vector<256x8xf32>
      %79 = tpu.matmul %76, %78, %cst_66 {dimension_numbers = #tpu.dot_dimension_numbers<[1], [0], [0], [1], [0, 0, 1, 1], [], []>} : vector<256x8xf32>, vector<8x8xf32>, vector<256x8xf32> -> vector<256x8xf32>
      %80 = arith.addf %74, %79 : vector<256x8xf32>
      %c0_67 = arith.constant 0 : index
      %c2_68 = arith.constant 2 : index
      %c0_69 = arith.constant 0 : index
      %c0_70 = arith.constant 0 : index
      %81 = vector.load %arg10[%c0_67, %c2_68, %c0_69, %c0_70] : memref<1x18x18x8xf32, #tpu.memory_space<vmem>>, vector<1x16x16x8xf32>
      %82 = vector.shape_cast %81 : vector<1x16x16x8xf32> to vector<256x8xf32>
      %c6 = arith.constant 6 : index
      %c0_71 = arith.constant 0 : index
      %c0_72 = arith.constant 0 : index
      %83 = vector.load %arg6[%c6, %c0_71, %c0_72] : memref<9x8x8xf32, #tpu.memory_space<vmem>>, vector<1x8x8xf32>
      %84 = vector.shape_cast %83 : vector<1x8x8xf32> to vector<8x8xf32>
      %cst_73 = arith.constant dense<0.000000e+00> : vector<256x8xf32>
      %85 = tpu.matmul %82, %84, %cst_73 {dimension_numbers = #tpu.dot_dimension_numbers<[1], [0], [0], [1], [0, 0, 1, 1], [], []>} : vector<256x8xf32>, vector<8x8xf32>, vector<256x8xf32> -> vector<256x8xf32>
      %86 = arith.addf %80, %85 : vector<256x8xf32>
      %c0_74 = arith.constant 0 : index
      %c2_75 = arith.constant 2 : index
      %c1_76 = arith.constant 1 : index
      %c0_77 = arith.constant 0 : index
      %87 = vector.load %arg10[%c0_74, %c2_75, %c1_76, %c0_77] : memref<1x18x18x8xf32, #tpu.memory_space<vmem>>, vector<1x16x16x8xf32>
      %88 = vector.shape_cast %87 : vector<1x16x16x8xf32> to vector<256x8xf32>
      %c7 = arith.constant 7 : index
      %c0_78 = arith.constant 0 : index
      %c0_79 = arith.constant 0 : index
      %89 = vector.load %arg6[%c7, %c0_78, %c0_79] : memref<9x8x8xf32, #tpu.memory_space<vmem>>, vector<1x8x8xf32>
      %90 = vector.shape_cast %89 : vector<1x8x8xf32> to vector<8x8xf32>
      %cst_80 = arith.constant dense<0.000000e+00> : vector<256x8xf32>
      %91 = tpu.matmul %88, %90, %cst_80 {dimension_numbers = #tpu.dot_dimension_numbers<[1], [0], [0], [1], [0, 0, 1, 1], [], []>} : vector<256x8xf32>, vector<8x8xf32>, vector<256x8xf32> -> vector<256x8xf32>
      %92 = arith.addf %86, %91 : vector<256x8xf32>
      %c0_81 = arith.constant 0 : index
      %c2_82 = arith.constant 2 : index
      %c2_83 = arith.constant 2 : index
      %c0_84 = arith.constant 0 : index
      %93 = vector.load %arg10[%c0_81, %c2_82, %c2_83, %c0_84] : memref<1x18x18x8xf32, #tpu.memory_space<vmem>>, vector<1x16x16x8xf32>
      %94 = vector.shape_cast %93 : vector<1x16x16x8xf32> to vector<256x8xf32>
      %c8 = arith.constant 8 : index
      %c0_85 = arith.constant 0 : index
      %c0_86 = arith.constant 0 : index
      %95 = vector.load %arg6[%c8, %c0_85, %c0_86] : memref<9x8x8xf32, #tpu.memory_space<vmem>>, vector<1x8x8xf32>
      %96 = vector.shape_cast %95 : vector<1x8x8xf32> to vector<8x8xf32>
      %cst_87 = arith.constant dense<0.000000e+00> : vector<256x8xf32>
      %97 = tpu.matmul %94, %96, %cst_87 {dimension_numbers = #tpu.dot_dimension_numbers<[1], [0], [0], [1], [0, 0, 1, 1], [], []>} : vector<256x8xf32>, vector<8x8xf32>, vector<256x8xf32> -> vector<256x8xf32>
      %98 = arith.addf %92, %97 : vector<256x8xf32>
      %99 = arith.index_cast %arg1 : i32 to index
      %c0_88 = arith.constant 0 : index
      %c0_89 = arith.constant 0 : index
      %100 = vector.load %arg11[%99, %c0_88, %c0_89] : memref<2x256x8xf32, #tpu.memory_space<vmem>>, vector<1x256x8xf32>
      %101 = vector.shape_cast %100 : vector<1x256x8xf32> to vector<256x8xf32>
      %102 = vector.shape_cast %98 : vector<256x8xf32> to vector<1x256x8xf32>
      tpu.vector_store %arg11[%99, %c0_88, %c0_89], %102 {strides = array<i32>} : memref<2x256x8xf32, #tpu.memory_space<vmem>>, vector<1x256x8xf32>,
      %c2_90 = arith.constant 2 : index
      %c0_91 = arith.constant 0 : index
      %103 = vector.load %arg12[%c2_90, %c0_91] : memref<4x8xf32, #tpu.memory_space<vmem>>, vector<1x8xf32>
      %cst_92 = arith.constant dense<0.000000e+00> : vector<8xf32>
      %104 = vector.multi_reduction <add>, %98, %cst_92 [0] : vector<256x8xf32> to vector<8xf32>
      %105 = vector.shape_cast %104 : vector<8xf32> to vector<1x8xf32>
      %106 = arith.addf %103, %105 : vector<1x8xf32>
      %c2_93 = arith.constant 2 : index
      %c0_94 = arith.constant 0 : index
      %107 = vector.load %arg12[%c2_93, %c0_94] : memref<4x8xf32, #tpu.memory_space<vmem>>, vector<1x8xf32>
      tpu.vector_store %arg12[%c2_93, %c0_94], %106 {strides = array<i32>} : memref<4x8xf32, #tpu.memory_space<vmem>>, vector<1x8xf32>,
      %c3_95 = arith.constant 3 : index
      %c0_96 = arith.constant 0 : index
      %108 = vector.load %arg12[%c3_95, %c0_96] : memref<4x8xf32, #tpu.memory_space<vmem>>, vector<1x8xf32>
      %109 = arith.mulf %98, %98 : vector<256x8xf32>
      %cst_97 = arith.constant dense<0.000000e+00> : vector<8xf32>
      %110 = vector.multi_reduction <add>, %109, %cst_97 [0] : vector<256x8xf32> to vector<8xf32>
      %111 = vector.shape_cast %110 : vector<8xf32> to vector<1x8xf32>
      %112 = arith.addf %108, %111 : vector<1x8xf32>
      %c3_98 = arith.constant 3 : index
      %c0_99 = arith.constant 0 : index
      %113 = vector.load %arg12[%c3_98, %c0_99] : memref<4x8xf32, #tpu.memory_space<vmem>>, vector<1x8xf32>
      tpu.vector_store %arg12[%c3_98, %c0_99], %112 {strides = array<i32>} : memref<4x8xf32, #tpu.memory_space<vmem>>, vector<1x8xf32>,
    } else {
    }
    %c2_i32 = arith.constant 2 : i32
    %11 = arith.cmpi eq, %arg0, %c2_i32 : i32
    %12 = arith.extui %11 : i1 to i32
    %c0_i32_5 = arith.constant 0 : i32
    %13 = arith.cmpi ne, %12, %c0_i32_5 : i32
    scf.if %13 {
      %14 = arith.index_cast %arg1 : i32 to index
      %c0 = arith.constant 0 : index
      %c0_6 = arith.constant 0 : index
      %15 = vector.load %arg11[%14, %c0, %c0_6] : memref<2x256x8xf32, #tpu.memory_space<vmem>>, vector<1x256x8xf32>
      %16 = vector.shape_cast %15 : vector<1x256x8xf32> to vector<256x8xf32>
      %c2 = arith.constant 2 : index
      %c0_7 = arith.constant 0 : index
      %17 = vector.load %arg12[%c2, %c0_7] : memref<4x8xf32, #tpu.memory_space<vmem>>, vector<1x8xf32>
      %c3 = arith.constant 3 : index
      %c0_8 = arith.constant 0 : index
      %18 = vector.load %arg12[%c3, %c0_8] : memref<4x8xf32, #tpu.memory_space<vmem>>, vector<1x8xf32>
      %cst = arith.constant 0.001953125 : f32
      %19 = vector.broadcast %cst : f32 to vector<1x8xf32>
      %20 = arith.mulf %17, %19 : vector<1x8xf32>
      %cst_9 = arith.constant 0.001953125 : f32
      %21 = vector.broadcast %cst_9 : f32 to vector<1x8xf32>
      %22 = arith.mulf %18, %21 : vector<1x8xf32>
      %23 = arith.mulf %20, %20 : vector<1x8xf32>
      %24 = arith.subf %22, %23 : vector<1x8xf32>
      %cst_10 = arith.constant 0.000000e+00 : f32
      %25 = vector.broadcast %cst_10 : f32 to vector<1x8xf32>
      %26 = arith.maximumf %24, %25 : vector<1x8xf32>
      %27 = vector.broadcast %20 : vector<1x8xf32> to vector<256x8xf32>
      %28 = arith.subf %16, %27 : vector<256x8xf32>
      %cst_11 = arith.constant 9.99999974E-6 : f32
      %29 = vector.broadcast %cst_11 : f32 to vector<1x8xf32>
      %30 = arith.addf %26, %29 : vector<1x8xf32>
      %31 = math.rsqrt %30 : vector<1x8xf32>
      %32 = vector.broadcast %31 : vector<1x8xf32> to vector<256x8xf32>
      %33 = arith.mulf %28, %32 : vector<256x8xf32>
      %c0_12 = arith.constant 0 : index
      %c0_13 = arith.constant 0 : index
      %34 = vector.load %arg7[%c0_12, %c0_13] : memref<1x8xf32, #tpu.memory_space<vmem>>, vector<1x8xf32>
      %35 = vector.broadcast %34 : vector<1x8xf32> to vector<256x8xf32>
      %36 = arith.mulf %33, %35 : vector<256x8xf32>
      %c0_14 = arith.constant 0 : index
      %c0_15 = arith.constant 0 : index
      %37 = vector.load %arg8[%c0_14, %c0_15] : memref<1x8xf32, #tpu.memory_space<vmem>>, vector<1x8xf32>
      %38 = vector.broadcast %37 : vector<1x8xf32> to vector<256x8xf32>
      %39 = arith.addf %36, %38 : vector<256x8xf32>
      %c0_16 = arith.constant 0 : index
      %c0_17 = arith.constant 0 : index
      %c0_18 = arith.constant 0 : index
      %c0_19 = arith.constant 0 : index
      %40 = vector.load %arg2[%c0_16, %c0_17, %c0_18, %c0_19] : memref<1x16x16x8xf32, #tpu.memory_space<vmem>>, vector<1x16x16x8xf32>
      %41 = vector.shape_cast %40 : vector<1x16x16x8xf32> to vector<256x8xf32>
      %42 = arith.addf %39, %41 : vector<256x8xf32>
      %cst_20 = arith.constant 0.000000e+00 : f32
      %43 = vector.broadcast %cst_20 : f32 to vector<256x8xf32>
      %44 = arith.maximumf %42, %43 : vector<256x8xf32>
      %45 = vector.shape_cast %44 : vector<256x8xf32> to vector<1x16x16x8xf32>
      %c0_21 = arith.constant 0 : index
      %c0_22 = arith.constant 0 : index
      %c0_23 = arith.constant 0 : index
      %c0_24 = arith.constant 0 : index
      %46 = vector.load %arg9[%c0_21, %c0_22, %c0_23, %c0_24] : memref<1x16x16x8xf32, #tpu.memory_space<vmem>>, vector<1x16x16x8xf32>
      tpu.vector_store %arg9[%c0_21, %c0_22, %c0_23, %c0_24], %45 {strides = array<i32>} : memref<1x16x16x8xf32, #tpu.memory_space<vmem>>, vector<1x16x16x8xf32>,
    } else {
    }
    return
  }
  func.func @transform_0(%arg0: i32, %arg1: i32) -> (i32, i32, i32, i32) {
    %c1_i32 = arith.constant 1 : i32
    %0 = arith.cmpi eq, %arg0, %c1_i32 : i32
    %c0_i32 = arith.constant 0 : i32
    %1 = arith.select %0, %c0_i32, %arg1 : i32
    %c0_i32_0 = arith.constant 0 : i32
    %c0_i32_1 = arith.constant 0 : i32
    %c0_i32_2 = arith.constant 0 : i32
    %c0_i32_3 = arith.constant 0 : i32
    return %1, %c0_i32_0, %c0_i32_1, %c0_i32_2 : i32, i32, i32, i32
  }
  func.func @transform_1(%arg0: i32, %arg1: i32) -> (i32, i32, i32) {
    %c0_i32 = arith.constant 0 : i32
    %c0_i32_0 = arith.constant 0 : i32
    %c0_i32_1 = arith.constant 0 : i32
    %c0_i32_2 = arith.constant 0 : i32
    return %c0_i32, %c0_i32_0, %c0_i32_1 : i32, i32, i32
  }
  func.func @transform_2(%arg0: i32, %arg1: i32) -> (i32, i32) {
    %c0_i32 = arith.constant 0 : i32
    %c0_i32_0 = arith.constant 0 : i32
    %c0_i32_1 = arith.constant 0 : i32
    return %c0_i32, %c0_i32_0 : i32, i32
  }
  func.func @transform_3(%arg0: i32, %arg1: i32) -> (i32, i32) {
    %c0_i32 = arith.constant 0 : i32
    %c0_i32_0 = arith.constant 0 : i32
    %c0_i32_1 = arith.constant 0 : i32
    return %c0_i32, %c0_i32_0 : i32, i32
  }
  func.func @transform_4(%arg0: i32, %arg1: i32) -> (i32, i32, i32) {
    %c0_i32 = arith.constant 0 : i32
    %c0_i32_0 = arith.constant 0 : i32
    %c0_i32_1 = arith.constant 0 : i32
    %c0_i32_2 = arith.constant 0 : i32
    return %c0_i32, %c0_i32_0, %c0_i32_1 : i32, i32, i32
  }
  func.func @transform_5(%arg0: i32, %arg1: i32) -> (i32, i32) {
    %c0_i32 = arith.constant 0 : i32
    %c0_i32_0 = arith.constant 0 : i32
    %c0_i32_1 = arith.constant 0 : i32
    return %c0_i32, %c0_i32_0 : i32, i32
  }
  func.func @transform_6(%arg0: i32, %arg1: i32) -> (i32, i32) {
    %c0_i32 = arith.constant 0 : i32
    %c0_i32_0 = arith.constant 0 : i32
    %c0_i32_1 = arith.constant 0 : i32
    return %c0_i32, %c0_i32_0 : i32, i32
  }
  func.func @transform_7(%arg0: i32, %arg1: i32) -> (i32, i32, i32, i32) {
    %c2_i32 = arith.constant 2 : i32
    %0 = arith.cmpi eq, %arg0, %c2_i32 : i32
    %c0_i32 = arith.constant 0 : i32
    %1 = arith.select %0, %arg1, %c0_i32 : i32
    %c0_i32_0 = arith.constant 0 : i32
    %c0_i32_1 = arith.constant 0 : i32
    %c0_i32_2 = arith.constant 0 : i32
    %c0_i32_3 = arith.constant 0 : i32
    return %1, %c0_i32_0, %c0_i32_1, %c0_i32_2 : i32, i32, i32, i32
  }
}

</mosaic_0001>

<bundles_post_ra>
// kernel: basic_block_forward.1
= control target key start
LH: loop header
LB: loop body
LE: loop exit
PB: predicated region body
PF: predicated region fallthrough
CT: control target
= control target key end

     0   :  { %s7101_s24 = smov 0   ;;  %s7103_s25 = smov 0   ;;  %s9882_s0 = inlined_call_operand.vmem [shape: f32[2,16,16,8], index: 0, kind: input, shape index: {}]   ;;  %s9883_s1 = inlined_call_operand.vmem [shape: f32[9,8,8], index: 1, kind: input, shape index: {}]   ;;  %s9884_s2 = inlined_call_operand.vmem [shape: f32[1,8], index: 2, kind: input, shape index: {}]   ;;  %s9885_s3 = inlined_call_operand.vmem [shape: f32[1,8], index: 3, kind: input, shape index: {}]   ;;  %s9886_s4 = inlined_call_operand.vmem [shape: f32[9,8,8], index: 4, kind: input, shape index: {}]   ;;  %s9887_s5 = inlined_call_operand.vmem [shape: f32[1,8], index: 5, kind: input, shape index: {}]   ;;  %s9888_s6 = inlined_call_operand.vmem [shape: f32[1,8], index: 6, kind: input, shape index: {}]   ;;  %s9889_s7 = inlined_call_operand.vmem [shape: f32[2,16,16,8], index: 7, kind: output, shape index: {}]  }
   0x1   :  { %s7105_s26 = smov 0   ;;  %s7107_s27 = smov 0  }
   0x2   :  { %s7109_s28 = smov 0  }
   0x3 LB: > { %s26_s29 = sadd.s32 1, %s7050_s26  ;;  %s29_s30 = sadd.s32 1, %s7054_s27  ;;  %s7058_s28 = sphi %s7109_s28, %s17_s28   ;;  %s7054_s27 = sphi %s7107_s27, %s10123_s27   ;;  %s7050_s26 = sphi %s7105_s26, %s10122_s26   ;;  %s7046_s25 = sphi %s7103_s25, %s10121_s25   ;;  %s7042_s24 = sphi %s7101_s24, %s10120_s24  }
   0x4   : > { %p27_p0 = scmp.ge.s32.totalorder %s26_s29, 2  ;;  %p6356_p1 = scmp.ge.s32.totalorder %s7058_s28, 1 }
   0x5   : > { %p261_p2 = scmp.lt.s32.totalorder %s7058_s28, 7 }
   0x6   : > { %s10125_s29 = smov (%p27_p0, %s26_s29), 0  ;;  %s10127_s30 = smov (!%p27_p0, %s29_s30), %s7054_s27 }
   0x7   : > { %p262_p3 = pnand %p6356_p1, %p261_p2  ;;  %p31_p4 = scmp.ge.s32.totalorder %s10127_s30, 3 }
   0x8   : > { %p297_p5 = scmp.eq.s32.totalorder (!%p262_p3), %s7046_s25, 1  ;;  %p306_p6 = scmp.eq.s32.totalorder (!%p262_p3), %s7046_s25, 2 }
   0x9   : > { %s10129_s30 = smov (%p31_p4, %s10127_s30), 0  ;;  %265 = sbr.rel (%p262_p3) target bundleno = 1692 (0x69c), region = 48 }
   0xa   : > { %p315_p7 = scmp.eq.s32.totalorder (!%p262_p3), %s7046_s25, 0  ;;  %p316_p8 = scmp.eq.s32.totalorder (!%p262_p3), %s7042_s24, 0 }
   0xc   : > { %p317_p10 = pnand (!%p262_p3), %p316_p8, %p315_p7 }
   0xe   : > { %s298_s8 = scalar_select %p297_p5, 0, %s7042_s24 }
   0xf   : > { %s307_s9 = scalar_select %p306_p6, %s7042_s24, 0 }
  0x10   : > { %p299_p9 = scmp.lt.s32.totalorder %s298_s8, 1 }
  0x11   : > { %p308_p11 = scmp.lt.s32.totalorder %s307_s9, 1  ;;  %320 = sbr.rel (%p317_p10) target bundleno = 78 (0x4e), region = 52 }
  0x12   : > { %s10131_s8 = smov (!%p299_p9, %s298_s8), 1 }
  0x13   : > { %s10133_s9 = smov (!%p308_p11, %s307_s9), 1  ;;  %s6961_s10 = sshll.u32 %s10131_s8, 8 }
  0x14   : > { %s7144_s13 = scalar_lea.vmem %s9882_s0, %s6961_s10  ;;  %s6962_s14 = sshll.u32 %s10133_s9, 8 }
  0x15   : > { %s7149_s17 = scalar_lea.vmem %s9889_s7, %s6962_s14 }
  0x16   : > { %vm321_vm0 = vcmask 60416   ;;  %vm323_vm1 = vcmask 64512   ;;  %v7060_v0 = vmov 0.0   ;;  %vm326_vm2 = vcmask 58368  }
  0x17   : > { %322 = vst.msk [vmem:[#allocation4] sm:$0xf] %vm321_vm0, %v7060_v0 }
  0x18   : > { %324 = vst.msk [vmem:[#allocation2] sm:$0xff] %vm323_vm1, %v7060_v0 }
  0x19   : > { %325 = vst.msk [vmem:[#allocation2 + $0x8] sm:$0xff] %vm323_vm1, %v7060_v0 }
  0x1a   : > { %328 = vst.msk [vmem:[#allocation2 + $0x18] sm:$0xff] %vm323_vm1, %v7060_v0 }
  0x1b   : > { %329 = vst.msk [vmem:[#allocation2 + $0x20] sm:$0xff] %vm323_vm1, %v7060_v0 }
  0x1c   : > { %331 = vst.msk [vmem:[#allocation2 + $0x30] sm:$0xff] %vm323_vm1, %v7060_v0 }
  0x1d   : > { %332 = vst.msk [vmem:[#allocation2 + $0x38] sm:$0xff] %vm323_vm1, %v7060_v0 }
  0x1e   : > { %334 = vst.msk [vmem:[#allocation2 + $0x48] sm:$0xff] %vm323_vm1, %v7060_v0 }
  0x1f   : > { %335 = vst.msk [vmem:[#allocation2 + $0x50] sm:$0xff] %vm323_vm1, %v7060_v0 }
  0x20   : > { %337 = vst.msk [vmem:[#allocation2 + $0x60] sm:$0xff] %vm323_vm1, %v7060_v0 }
  0x21   : > { %338 = vst.msk [vmem:[#allocation2 + $0x68] sm:$0xff] %vm323_vm1, %v7060_v0 }
  0x22   : > { %340 = vst.msk [vmem:[#allocation2 + $0x78] sm:$0xff] %vm323_vm1, %v7060_v0 }
  0x23   : > { %341 = vst.msk [vmem:[#allocation2 + $0x80] sm:$0xff] %vm323_vm1, %v7060_v0 }
  0x24   : > { %343 = vst.msk [vmem:[#allocation2 + $0x90] sm:$0xff] %vm323_vm1, %v7060_v0 }
  0x25   : > { %344 = vst.msk [vmem:[#allocation2 + $0x98] sm:$0xff] %vm323_vm1, %v7060_v0 }
  0x26   : > { %346 = vst.msk [vmem:[#allocation2 + $0xa8] sm:$0xff] %vm323_vm1, %v7060_v0 }
  0x27   : > { %347 = vst.msk [vmem:[#allocation2 + $0xb0] sm:$0xff] %vm323_vm1, %v7060_v0 }
  0x28   : > { %349 = vst.msk [vmem:[#allocation2 + $0xc0] sm:$0xff] %vm323_vm1, %v7060_v0 }
  0x29   : > { %350 = vst.msk [vmem:[#allocation2 + $0xc8] sm:$0xff] %vm323_vm1, %v7060_v0 }
  0x2a   : > { %352 = vst.msk [vmem:[#allocation2 + $0xd8] sm:$0xff] %vm323_vm1, %v7060_v0 }
  0x2b   : > { %353 = vst.msk [vmem:[#allocation2 + $0xe0] sm:$0xff] %vm323_vm1, %v7060_v0 }
  0x2c   : > { %355 = vst.msk [vmem:[#allocation2 + $0xf0] sm:$0xff] %vm323_vm1, %v7060_v0 }
  0x2d   : > { %356 = vst.msk [vmem:[#allocation2 + $0xf8] sm:$0xff] %vm323_vm1, %v7060_v0 }
  0x2e   : > { %358 = vst.msk [vmem:[#allocation2 + $0x108] sm:$0xff] %vm323_vm1, %v7060_v0 }
  0x2f   : > { %359 = vst.msk [vmem:[#allocation2 + $0x110] sm:$0xff] %vm323_vm1, %v7060_v0 }
  0x30   : > { %361 = vst.msk [vmem:[#allocation2 + $0x120] sm:$0xff] %vm323_vm1, %v7060_v0 }
  0x31   : > { %362 = vst.msk [vmem:[#allocation2 + $0x128] sm:$0xff] %vm323_vm1, %v7060_v0 }
  0x32   : > { %364 = vst.msk [vmem:[#allocation2 + $0x138] sm:$0xff] %vm323_vm1, %v7060_v0 }
  0x33   : > { %365 = vst.msk [vmem:[#allocation2 + $0x140] sm:$0xff] %vm323_vm1, %v7060_v0 }
  0x34   : > { %367 = vst.msk [vmem:[#allocation2 + $0x150] sm:$0xff] %vm323_vm1, %v7060_v0 }
  0x35   : > { %368 = vst.msk [vmem:[#allocation2 + $0x158] sm:$0xff] %vm323_vm1, %v7060_v0 }
  0x36   : > { %370 = vst.msk [vmem:[#allocation2 + $0x168] sm:$0xff] %vm323_vm1, %v7060_v0 }
  0x37   : > { %371 = vst.msk [vmem:[#allocation2 + $0x170] sm:$0xff] %vm323_vm1, %v7060_v0 }
  0x38   : > { %373 = vst.msk [vmem:[#allocation2 + $0x180] sm:$0xff] %vm323_vm1, %v7060_v0 }
  0x39   : > { %374 = vst.msk [vmem:[#allocation2 + $0x188] sm:$0xff] %vm323_vm1, %v7060_v0 }
  0x3a   : > { %376 = vst.msk [vmem:[#allocation2 + $0x198] sm:$0xff] %vm323_vm1, %v7060_v0 }
  0x3b   : > { %377 = vst.msk [vmem:[#allocation2 + $0x1a0] sm:$0xff] %vm323_vm1, %v7060_v0 }
  0x3c   : > { %327 = vst.msk [vmem:[#allocation2 + $0x10] sm:$0x3] %vm326_vm2, %v7060_v0 }
  0x3d   : > { %330 = vst.msk [vmem:[#allocation2 + $0x28] sm:$0x3] %vm326_vm2, %v7060_v0 }
  0x3e   : > { %333 = vst.msk [vmem:[#allocation2 + $0x40] sm:$0x3] %vm326_vm2, %v7060_v0 }
  0x3f   : > { %336 = vst.msk [vmem:[#allocation2 + $0x58] sm:$0x3] %vm326_vm2, %v7060_v0 }
  0x40   : > { %339 = vst.msk [vmem:[#allocation2 + $0x70] sm:$0x3] %vm326_vm2, %v7060_v0 }
  0x41   : > { %342 = vst.msk [vmem:[#allocation2 + $0x88] sm:$0x3] %vm326_vm2, %v7060_v0 }
  0x42   : > { %345 = vst.msk [vmem:[#allocation2 + $0xa0] sm:$0x3] %vm326_vm2, %v7060_v0 }
  0x43   : > { %348 = vst.msk [vmem:[#allocation2 + $0xb8] sm:$0x3] %vm326_vm2, %v7060_v0 }
  0x44   : > { %351 = vst.msk [vmem:[#allocation2 + $0xd0] sm:$0x3] %vm326_vm2, %v7060_v0 }
  0x45   : > { %354 = vst.msk [vmem:[#allocation2 + $0xe8] sm:$0x3] %vm326_vm2, %v7060_v0 }
  0x46   : > { %357 = vst.msk [vmem:[#allocation2 + $0x100] sm:$0x3] %vm326_vm2, %v7060_v0 }
  0x47   : > { %360 = vst.msk [vmem:[#allocation2 + $0x118] sm:$0x3] %vm326_vm2, %v7060_v0 }
  0x48   : > { %363 = vst.msk [vmem:[#allocation2 + $0x130] sm:$0x3] %vm326_vm2, %v7060_v0 }
  0x49   : > { %366 = vst.msk [vmem:[#allocation2 + $0x148] sm:$0x3] %vm326_vm2, %v7060_v0 }
  0x4a   : > { %369 = vst.msk [vmem:[#allocation2 + $0x160] sm:$0x3] %vm326_vm2, %v7060_v0 }
  0x4b   : > { %372 = vst.msk [vmem:[#allocation2 + $0x178] sm:$0x3] %vm326_vm2, %v7060_v0 }
  0x4c   : > { %375 = vst.msk [vmem:[#allocation2 + $0x190] sm:$0x3] %vm326_vm2, %v7060_v0 }
  0x4d   : > { %378 = vst.msk [vmem:[#allocation2 + $0x1a8] sm:$0x3] %vm326_vm2, %v7060_v0 }
  0x4e PF: > { %p6361_p12 = scmp.ne.s32.totalorder %s7046_s25, 0 }
  0x50   : > { %381 = sbr.rel (%p6361_p12) target bundleno = 821 (0x335), region = 56 }
  0x55   : > { %v6362_v1 = vld [vmem:[%s9883_s1 + $0x8] sm:$0xff]  ;;  %v388_v2 = vld [vmem:[%s7144_s13 + $0x30] sm:$0xff]  ;;  %vm415_vm3 = vcmask 64512   ;;  %v6460_v6 = vld [vmem:[%s9883_s1 + $0x18] sm:$0xff]  ;;  %s6658_s22 = sshll.u32 %s7042_s24, 8  ;;  %vm2964_vm4 = vcmask 57344  }
  0x56   : > { %v396_v3 = vld [vmem:[%s7144_s13 + $0x70] sm:$0xff]  ;;  %6963 = vmatpush.msra.mxu1 %v6362_v1  ;;  %6964 = vmatpush.msra.mxu2 %v6362_v1  ;;  %422 = vst.msk [vmem:[#allocation2 + $0x61] sm:$0xff] %vm415_vm3, %v388_v2  ;;  %v480_v7 = vld [vmem:[%s9883_s1] sm:$0xff]  ;;  %v389_v8 = vld [vmem:[%s7144_s13 + $0x38] sm:$0xff]  ;;  %s8030_s23 = scalar_lea.vmem [#allocation3], %s6658_s22 }
  0x57   : > { %v6427_v4 = vld [vmem:[%s9883_s1 + $0x10] sm:$0xff]  ;;  %430 = vst.msk [vmem:[#allocation2 + $0xc1] sm:$0xff] %vm415_vm3, %v396_v3  ;;  %6965 = vmatpush.msra.mxu3 %v6362_v1  ;;  %v397_v9 = vld [vmem:[%s7144_s13 + $0x78] sm:$0xff]  ;;  %v481_v10 = vld [vmem:[#allocation2 + $0x1] sm:$0xff]  ;;  %626 = vmatpush.msra.mxu0 %v6362_v1 }
  0x58   : > { %v404_v5 = vld [vmem:[%s7144_s13 + $0xb0] sm:$0xff]  ;;  %1078 = vmatpush.msrb.mxu2 %v6427_v4  ;;  %835 = vmatpush.msrb.mxu1 %v480_v7  ;;  %v405_v11 = vld [vmem:[%s7144_s13 + $0xb8] sm:$0xff]  ;;  %v6493_v12 = vld [vmem:[%s9883_s1 + $0x20] sm:$0xff]  ;;  %423 = vst.msk [vmem:[#allocation2 + $0x69] sm:$0xff] %vm415_vm3, %v389_v8 }
  0x59   : > { %438 = vst.msk [vmem:[#allocation2 + $0x121] sm:$0xff] %vm415_vm3, %v404_v5  ;;  %1353 = vmatpush.msrb.mxu3 %v6460_v6  ;;  %v390_v13 = vld [vmem:[%s7144_s13 + $0x40] sm:$0xff]  ;;  %6363 = vmatmul.msk.f32.vlgmr.msra.gmra.mxu0 %vm415_vm3, %v481_v10  ;;  %v391_v16 = vld [vmem:[%s7144_s13 + $0x48] sm:$0xff]  ;;  %v392_v24 = vld [vmem:[%s7144_s13 + $0x50] sm:$0xff] }
  0x5a   : > { %431 = vst.msk [vmem:[#allocation2 + $0xc9] sm:$0xff] %vm415_vm3, %v397_v9  ;;  %v398_v14 = vld [vmem:[%s7144_s13 + $0x80] sm:$0xff]  ;;  %1628 = vmatpush.msrb.mxu0 %v6493_v12  ;;  %v399_v18 = vld [vmem:[%s7144_s13 + $0x88] sm:$0xff]  ;;  %v400_v25 = vld [vmem:[%s7144_s13 + $0x90] sm:$0xff] }
  0x5b   : > { %439 = vst.msk [vmem:[#allocation2 + $0x129] sm:$0xff] %vm415_vm3, %v405_v11  ;;  %v406_v15 = vld [vmem:[%s7144_s13 + $0xc0] sm:$0xff]  ;;  %v482_v22 = vld [vmem:[#allocation2 + $0x9] sm:$0xff]  ;;  %v393_v30 = vld [vmem:[%s7144_s13 + $0x58] sm:$0xff] }
  0x5c   : > { %424 = vst.msk [vmem:[#allocation2 + $0x79] sm:$0xff] %vm415_vm3, %v390_v13  ;;  %v382_v20 = vld [vmem:[%s7144_s13] sm:$0xff]  ;;  %v407_v23 = vld [vmem:[%s7144_s13 + $0xc8] sm:$0xff]  ;;  %v408_v28 = vld [vmem:[%s7144_s13 + $0xd0] sm:$0xff] }
  0x5d   : > { %v7239_v17 = vld [vmem:[#allocation2 + $0x61] sm:$0xff]  ;;  %432 = vst.msk [vmem:[#allocation2 + $0xd9] sm:$0xff] %vm415_vm3, %v398_v14  ;;  %v401_v32 = vld [vmem:[%s7144_s13 + $0x98] sm:$0xff]  ;;  %v384_v33 = vld [vmem:[%s7144_s13 + $0x10] sm:$0xff] }
  0x5e   : > { %6371 = vmatmul.msk.f32.vlgmr.msra.gmra.mxu1 %vm415_vm3, %v7239_v17  ;;  %v7245_v19 = vld [vmem:[#allocation2 + $0xc1] sm:$0xff]  ;;  %440 = vst.msk [vmem:[#allocation2 + $0x139] sm:$0xff] %vm415_vm3, %v406_v15  ;;  %v409_v34 = vld [vmem:[%s7144_s13 + $0xd8] sm:$0xff]  ;;  %v6559_v57 = vld [vmem:[%s9883_s1 + $0x30] sm:$0xff] }
  0x5f   : > { %6379 = vmatmul.msk.f32.vlgmr.msra.gmra.mxu2 %vm415_vm3, %v7245_v19  ;;  %425 = vst.msk [vmem:[#allocation2 + $0x81] sm:$0xff] %vm415_vm3, %v391_v16  ;;  %v383_v26 = vld [vmem:[%s7144_s13 + $0x8] sm:$0xff]  ;;  %v394_v36 = vld [vmem:[%s7144_s13 + $0x60] sm:$0xff]  ;;  %v385_v38 = vld [vmem:[%s7144_s13 + $0x18] sm:$0xff] }
  0x60   : > { %v7251_v21 = vld [vmem:[#allocation2 + $0x121] sm:$0xff]  ;;  %433 = vst.msk [vmem:[#allocation2 + $0xe1] sm:$0xff] %vm415_vm3, %v399_v18  ;;  %v7264_v27 = vld [vmem:[#allocation2 + $0x69] sm:$0xff]  ;;  %2179 = vmatpush.msra.mxu2 %v6559_v57  ;;  %v6592_v58 = vld [vmem:[%s9883_s1 + $0x38] sm:$0xff] }
  0x61   : > { %6387 = vmatmul.msk.f32.vlgmr.msra.gmra.mxu3 %vm415_vm3, %v7251_v21  ;;  %416 = vst.msk [vmem:[#allocation2 + $0x19] sm:$0xff] %vm415_vm3, %v382_v20  ;;  %6364 = vmatmul.msk.f32.gmra.mxu0 %vm415_vm3, %v482_v22  ;;  %v7268_v29 = vld [vmem:[#allocation2 + $0xc9] sm:$0xff]  ;;  %v402_v37 = vld [vmem:[%s7144_s13 + $0xa0] sm:$0xff] }
  0x62   : > { %441 = vst.msk [vmem:[#allocation2 + $0x141] sm:$0xff] %vm415_vm3, %v407_v23  ;;  %v7272_v31 = vld [vmem:[#allocation2 + $0x129] sm:$0xff]  ;;  %v410_v40 = vld [vmem:[%s7144_s13 + $0xe0] sm:$0xff]  ;;  %2454 = vmatpush.msra.mxu3 %v6592_v58 }
  0x63   : > { %426 = vst.msk [vmem:[#allocation2 + $0x91] sm:$0xff] %vm415_vm3, %v392_v24  ;;  %v7296_v39 = vld [vmem:[#allocation2 + $0x79] sm:$0xff]  ;;  %v395_v43 = vld [vmem:[%s7144_s13 + $0x68] sm:$0xff] }
  0x64   : > { %434 = vst.msk [vmem:[#allocation2 + $0xf1] sm:$0xff] %vm415_vm3, %v400_v25  ;;  %v7300_v41 = vld [vmem:[#allocation2 + $0xd9] sm:$0xff]  ;;  %v403_v44 = vld [vmem:[%s7144_s13 + $0xa8] sm:$0xff] }
  0x65   : > { %417 = vst.msk [vmem:[#allocation2 + $0x21] sm:$0xff] %vm415_vm3, %v383_v26  ;;  %v7303_v42 = vld [vmem:[#allocation2 + $0x139] sm:$0xff]  ;;  %v411_v47 = vld [vmem:[%s7144_s13 + $0xe8] sm:$0xff] }
  0x66   : > { %6372 = vmatmul.msk.f32.gmra.mxu1 %vm415_vm3, %v7264_v27  ;;  %442 = vst.msk [vmem:[#allocation2 + $0x151] sm:$0xff] %vm415_vm3, %v408_v28  ;;  %v386_v46 = vld [vmem:[%s7144_s13 + $0x20] sm:$0xff]  ;;  %v387_v52 = vld [vmem:[%s7144_s13 + $0x28] sm:$0xff] }
  0x67   : > { %6380 = vmatmul.msk.f32.gmra.mxu2 %vm415_vm3, %v7268_v29  ;;  %427 = vst.msk [vmem:[#allocation2 + $0x99] sm:$0xff] %vm415_vm3, %v393_v30  ;;  %v7325_v48 = vld [vmem:[#allocation2 + $0x81] sm:$0xff]  ;;  %v934_v12 = vld [vmem:[#allocation2 + $0xa] sm:$0xff] }
  0x68   : > { %v7286_v35 = vld [vmem:[#allocation2 + $0x19] sm:$0xff]  ;;  %435 = vst.msk [vmem:[#allocation2 + $0xf9] sm:$0xff] %vm415_vm3, %v401_v32  ;;  %v7327_v49 = vld [vmem:[#allocation2 + $0xe1] sm:$0xff] }
  0x69   : > { %6388 = vmatmul.msk.f32.gmra.mxu3 %vm415_vm3, %v7272_v31  ;;  %418 = vst.msk [vmem:[#allocation2 + $0x31] sm:$0xff] %vm415_vm3, %v384_v33  ;;  %6365 = vmatmul.msk.f32.gmra.mxu0 %vm415_vm3, %v7286_v35  ;;  %v7329_v50 = vld [vmem:[#allocation2 + $0x141] sm:$0xff]  ;;  %v1208_v10 = vld [vmem:[#allocation2 + $0x18] sm:$0xff] }
  0x6a   : > { %443 = vst.msk [vmem:[#allocation2 + $0x159] sm:$0xff] %vm415_vm3, %v409_v34  ;;  %v7343_v53 = vld [vmem:[#allocation2 + $0x91] sm:$0xff]  ;;  %v6526_v59 = vld [vmem:[%s9883_s1 + $0x28] sm:$0xff]  ;;  %v6625_v0 = vld [vmem:[%s9883_s1 + $0x40] sm:$0xff] }
  0x6b   : > { %428 = vst.msk [vmem:[#allocation2 + $0xa9] sm:$0xff] %vm415_vm3, %v394_v36  ;;  %v7345_v54 = vld [vmem:[#allocation2 + $0xf1] sm:$0xff]  ;;  %1903 = vmatpush.msra.mxu1 %v6526_v59  ;;  %2729 = vmatpush.msra.mxu0 %v6625_v0  ;;  %v448_v8 = vld [vmem:[#allocation2] sm:$0xff]  ;;  %v449_v11 = vld [vmem:[#allocation2 + $0x8] sm:$0xff] }
  0x6c   : > { %436 = vst.msk [vmem:[#allocation2 + $0x109] sm:$0xff] %vm415_vm3, %v402_v37  ;;  %v7313_v45 = vld [vmem:[#allocation2 + $0x21] sm:$0xff]  ;;  %v7503_v33 = vld [vmem:[#allocation2 + $0x78] sm:$0xff] }
  0x6d   : > { %419 = vst.msk [vmem:[#allocation2 + $0x39] sm:$0xff] %vm415_vm3, %v385_v38  ;;  %v7347_v55 = vld [vmem:[#allocation2 + $0x151] sm:$0xff]  ;;  %v933_v9 = vld [vmem:[#allocation2 + $0x2] sm:$0xff]  ;;  %v7427_v14 = vld [vmem:[#allocation2 + $0x1a] sm:$0xff] }
  0x6e   : > { %6373 = vmatmul.msk.f32.gmra.mxu1 %vm415_vm3, %v7296_v39  ;;  %444 = vst.msk [vmem:[#allocation2 + $0x169] sm:$0xff] %vm415_vm3, %v410_v40  ;;  %v7368_v60 = vld [vmem:[#allocation2 + $0x99] sm:$0xff]  ;;  %v7438_v16 = vld [vmem:[#allocation2 + $0x22] sm:$0xff]  ;;  %v7521_v38 = vld [vmem:[#allocation2 + $0x6a] sm:$0xff] }
  0x6f   : > { %6381 = vmatmul.msk.f32.gmra.mxu2 %vm415_vm3, %v7300_v41  ;;  %429 = vst.msk [vmem:[#allocation2 + $0xb1] sm:$0xff] %vm415_vm3, %v395_v43  ;;  %v7370_v61 = vld [vmem:[#allocation2 + $0xf9] sm:$0xff]  ;;  %v7487_v30 = vld [vmem:[#allocation2 + $0x68] sm:$0xff] }
  0x70   : > { %437 = vst.msk [vmem:[#allocation2 + $0x111] sm:$0xff] %vm415_vm3, %v403_v44  ;;  %v7335_v51 = vld [vmem:[#allocation2 + $0x31] sm:$0xff]  ;;  %v1209_v13 = vld [vmem:[#allocation2 + $0x20] sm:$0xff] }
  0x71   : > { %6389 = vmatmul.msk.f32.gmra.mxu3 %vm415_vm3, %v7303_v42  ;;  %420 = vst.msk [vmem:[#allocation2 + $0x49] sm:$0xff] %vm415_vm3, %v386_v46  ;;  %6366 = vmatmul.msk.f32.gmra.mxu0 %vm415_vm3, %v7313_v45  ;;  %v7372_v62 = vld [vmem:[#allocation2 + $0x159] sm:$0xff]  ;;  %v7429_v15 = vld [vmem:[#allocation2 + $0x30] sm:$0xff]  ;;  %v7561_v58 = vld [vmem:[#allocation2 + $0x82] sm:$0xff] }
  0x72   : > { %445 = vst.msk [vmem:[#allocation2 + $0x171] sm:$0xff] %vm415_vm3, %v411_v47  ;;  %v7387_v1 = vld [vmem:[#allocation2 + $0xa9] sm:$0xff]  ;;  %v7475_v26 = vld [vmem:[#allocation2 + $0x60] sm:$0xff]  ;;  %v7563_v59 = vld [vmem:[#allocation2 + $0x98] sm:$0xff] }
  0x73   : > { %421 = vst.msk [vmem:[#allocation2 + $0x51] sm:$0xff] %vm415_vm3, %v387_v52  ;;  %v7389_v2 = vld [vmem:[#allocation2 + $0x109] sm:$0xff]  ;;  %v7541_v46 = vld [vmem:[#allocation2 + $0x7a] sm:$0xff] }
  0x74   : > { %v7353_v56 = vld [vmem:[#allocation2 + $0x39] sm:$0xff]  ;;  %9944 = vst [vmem:[#allocation5_spill] sm:$0xff] %v7487_v30  ;;  %v7543_v47 = vld [vmem:[#allocation2 + $0x90] sm:$0xff] }
  0x75   : > { %v7391_v3 = vld [vmem:[#allocation2 + $0x169] sm:$0xff]  ;;  %v7440_v18 = vld [vmem:[#allocation2 + $0x38] sm:$0xff]  ;;  %9945 = vst [vmem:[#allocation6_spill] sm:$0xff] %v7503_v33 }
  0x76   : > { %6374 = vmatmul.msk.f32.gmra.mxu1 %vm415_vm3, %v7325_v48  ;;  %v7403_v5 = vld [vmem:[#allocation2 + $0xb1] sm:$0xff]  ;;  %v7461_v23 = vld [vmem:[#allocation2 + $0x3a] sm:$0xff]  ;;  %9947 = vst [vmem:[#allocation8_spill] sm:$0xff] %v7521_v38 }
  0x77   : > { %6382 = vmatmul.msk.f32.gmra.mxu2 %vm415_vm3, %v7327_v49  ;;  %v7405_v6 = vld [vmem:[#allocation2 + $0x111] sm:$0xff]  ;;  %9950 = vst [vmem:[#allocation11_spill] sm:$0xff] %v7541_v46 }
  0x78   : > { %v7378_v63 = vld [vmem:[#allocation2 + $0x49] sm:$0xff]  ;;  %v7449_v20 = vld [vmem:[#allocation2 + $0x32] sm:$0xff]  ;;  %9951 = vst [vmem:[#allocation12_spill] sm:$0xff] %v7543_v47 }
  0x79   : > { %6390 = vmatmul.msk.f32.gmra.mxu3 %vm415_vm3, %v7329_v50  ;;  %6367 = vmatmul.msk.f32.gmra.mxu0 %vm415_vm3, %v7335_v51  ;;  %v7407_v7 = vld [vmem:[#allocation2 + $0x171] sm:$0xff]  ;;  %v7451_v22 = vld [vmem:[#allocation2 + $0x48] sm:$0xff]  ;;  %9953 = vst [vmem:[#allocation14_spill] sm:$0xff] %v7561_v58 }
  0x7a   : > { %v7397_v4 = vld [vmem:[#allocation2 + $0x51] sm:$0xff]  ;;  %9954 = vst [vmem:[#allocation15_spill] sm:$0xff] %v7563_v59 }
  0x7b   : > { %v7463_v24 = vld [vmem:[#allocation2 + $0x50] sm:$0xff] }
  0x7c   : > { %v7473_v25 = vld [vmem:[#allocation2 + $0x4a] sm:$0xff]  ;;  %v7485_v28 = vld [vmem:[#allocation2 + $0x52] sm:$0xff] }
  0x7e   : > { %6375 = vmatmul.msk.f32.gmra.mxu1 %vm415_vm3, %v7343_v53 }
  0x7f   : > { %6383 = vmatmul.msk.f32.gmra.mxu2 %vm415_vm3, %v7345_v54 }
  0x81   : > { %6391 = vmatmul.msk.f32.gmra.mxu3 %vm415_vm3, %v7347_v55  ;;  %6368 = vmatmul.msk.f32.gmra.mxu0 %vm415_vm3, %v7353_v56 }
  0x86   : > { %6376 = vmatmul.msk.f32.gmra.mxu1 %vm415_vm3, %v7368_v60 }
  0x87   : > { %6384 = vmatmul.msk.f32.gmra.mxu2 %vm415_vm3, %v7370_v61 }
  0x89   : > { %6392 = vmatmul.msk.f32.gmra.mxu3 %vm415_vm3, %v7372_v62  ;;  %6369 = vmatmul.msk.f32.gmra.mxu0 %vm415_vm3, %v7378_v63 }
  0x8e   : > { %6377 = vmatmul.msk.f32.gmra.mxu1 %vm415_vm3, %v7387_v1 }
  0x8f   : > { %6385 = vmatmul.msk.f32.gmra.mxu2 %vm415_vm3, %v7389_v2 }
  0x91   : > { %6393 = vmatmul.msk.f32.gmra.mxu3 %vm415_vm3, %v7391_v3  ;;  %6370 = vmatmul.msk.f32.gmra.mxu0 %vm415_vm3, %v7397_v4 }
  0x96   : > { %6378 = vmatmul.msk.f32.gmra.mxu1 %vm415_vm3, %v7403_v5 }
  0x97   : > { %6386 = vmatmul.msk.f32.gmra.mxu2 %vm415_vm3, %v7405_v6 }
  0x99   : > { %6394 = vmatmul.msk.f32.gmra.mxu3 %vm415_vm3, %v7407_v7  ;;  %6494 = vmatmul.msk.f32.vlgmr.msrb.gmra.mxu0 %vm415_vm3, %v7286_v35 }
  0x9e   : > { %6395 = vmatmul.msk.f32.vlgmr.msrb.gmra.mxu1 %vm415_vm3, %v448_v8 }
  0x9f   : > { %6428 = vmatmul.msk.f32.vlgmr.msrb.gmra.mxu2 %vm415_vm3, %v933_v9 }
  0xa1   : > { %6461 = vmatmul.msk.f32.vlgmr.msrb.gmra.mxu3 %vm415_vm3, %v1208_v10  ;;  %6495 = vmatmul.msk.f32.gmra.mxu0 %vm415_vm3, %v7313_v45 }
  0xa6   : > { %6396 = vmatmul.msk.f32.gmra.mxu1 %vm415_vm3, %v449_v11  ;;  %v7583_v11 = vld [vmem:[#allocation2 + $0xa8] sm:$0xff] }
  0xa7   : > { %6429 = vmatmul.msk.f32.gmra.mxu2 %vm415_vm3, %v934_v12  ;;  %9957 = vst [vmem:[#allocation18_spill] sm:$0xff] %v7583_v11 }
  0xa9   : > { %6462 = vmatmul.msk.f32.gmra.mxu3 %vm415_vm3, %v1209_v13  ;;  %6496 = vmatmul.msk.f32.gmra.mxu0 %vm415_vm3, %v7335_v51 }
  0xae   : > { %6397 = vmatmul.msk.f32.gmra.mxu1 %vm415_vm3, %v1208_v10  ;;  %v7581_v10 = vld [vmem:[#allocation2 + $0x92] sm:$0xff] }
  0xaf   : > { %6430 = vmatmul.msk.f32.gmra.mxu2 %vm415_vm3, %v7427_v14  ;;  %9956 = vst [vmem:[#allocation17_spill] sm:$0xff] %v7581_v10 }
  0xb1   : > { %6463 = vmatmul.msk.f32.gmra.mxu3 %vm415_vm3, %v7429_v15  ;;  %6497 = vmatmul.msk.f32.gmra.mxu0 %vm415_vm3, %v7353_v56 }
  0xb6   : > { %6398 = vmatmul.msk.f32.gmra.mxu1 %vm415_vm3, %v1209_v13 }
  0xb7   : > { %6431 = vmatmul.msk.f32.gmra.mxu2 %vm415_vm3, %v7438_v16 }
  0xb9   : > { %6464 = vmatmul.msk.f32.gmra.mxu3 %vm415_vm3, %v7440_v18  ;;  %6498 = vmatmul.msk.f32.gmra.mxu0 %vm415_vm3, %v7378_v63 }
  0xbe   : > { %6399 = vmatmul.msk.f32.gmra.mxu1 %vm415_vm3, %v7429_v15 }
  0xbf   : > { %6432 = vmatmul.msk.f32.gmra.mxu2 %vm415_vm3, %v7449_v20 }
  0xc1   : > { %6465 = vmatmul.msk.f32.gmra.mxu3 %vm415_vm3, %v7451_v22  ;;  %6499 = vmatmul.msk.f32.gmra.mxu0 %vm415_vm3, %v7397_v4 }
  0xc6   : > { %6400 = vmatmul.msk.f32.gmra.mxu1 %vm415_vm3, %v7440_v18 }
  0xc7   : > { %6433 = vmatmul.msk.f32.gmra.mxu2 %vm415_vm3, %v7461_v23 }
  0xc9   : > { %6466 = vmatmul.msk.f32.gmra.mxu3 %vm415_vm3, %v7463_v24  ;;  %6500 = vmatmul.msk.f32.gmra.mxu0 %vm415_vm3, %v7239_v17 }
  0xce   : > { %6401 = vmatmul.msk.f32.gmra.mxu1 %vm415_vm3, %v7451_v22 }
  0xcf   : > { %6434 = vmatmul.msk.f32.gmra.mxu2 %vm415_vm3, %v7473_v25 }
  0xd1   : > { %6467 = vmatmul.msk.f32.gmra.mxu3 %vm415_vm3, %v7475_v26  ;;  %6501 = vmatmul.msk.f32.gmra.mxu0 %vm415_vm3, %v7264_v27  ;;  %v7501_v27 = vld [vmem:[#allocation2 + $0x62] sm:$0xff] }
  0xd6   : > { %6402 = vmatmul.msk.f32.gmra.mxu1 %vm415_vm3, %v7463_v24  ;;  %v7493_v17 = vpop.f32.mrf.mxu0 }
  0xd7   : > { %6435 = vmatmul.msk.f32.gmra.mxu2 %vm415_vm3, %v7485_v28 }
  0xd9   : > { %6468 = vmatmul.msk.f32.gmra.mxu3 %vm415_vm3, %v7487_v30  ;;  %6502 = vmatmul.msk.f32.gmra.mxu0 %vm415_vm3, %v7296_v39  ;;  %v7523_v39 = vld [vmem:[#allocation2 + $0x80] sm:$0xff] }
  0xda   : > { %9948 = vst [vmem:[#allocation9_spill] sm:$0xff] %v7523_v39 }
  0xdb   : > { %v7499_v32 = vpop.f32.mrf.mxu1 }
  0xde   : > { %6403 = vmatmul.msk.f32.gmra.mxu1 %vm415_vm3, %v7475_v26  ;;  %v7509_v34 = vpop.f32.mrf.mxu0 }
  0xdf   : > { %6436 = vmatmul.msk.f32.gmra.mxu2 %vm415_vm3, %v7501_v27 }
  0xe1   : > { %6469 = vmatmul.msk.f32.gmra.mxu3 %vm415_vm3, %v7503_v33  ;;  %6503 = vmatmul.msk.f32.gmra.mxu0 %vm415_vm3, %v7325_v48 }
  0xe2   : > { %v7513_v35 = vpop.f32.mrf.mxu2 }
  0xe3   : > { %v7517_v36 = vpop.f32.mrf.mxu1 }
  0xe4   : > { %v7519_v37 = vpop.f32.mrf.mxu3 }
  0xe5   : > { %9946 = vst [vmem:[#allocation7_spill] sm:$0xff] %v7519_v37 }
  0xe6   : > { %6404 = vmatmul.msk.f32.gmra.mxu1 %vm415_vm3, %v7487_v30  ;;  %v7529_v40 = vpop.f32.mrf.mxu0  ;;  %v7670_v30 = vld [vmem:[#allocation2 + $0xca] sm:$0xff] }
  0xe7   : > { %6437 = vmatmul.msk.f32.gmra.mxu2 %vm415_vm3, %v7521_v38 }
  0xe9   : > { %6470 = vmatmul.msk.f32.gmra.mxu3 %vm415_vm3, %v7523_v39  ;;  %6504 = vmatmul.msk.f32.gmra.mxu0 %vm415_vm3, %v7343_v53 }
  0xea   : > { %v7533_v43 = vpop.f32.mrf.mxu2 }
  0xeb   : > { %v7537_v44 = vpop.f32.mrf.mxu1 }
  0xec   : > { %v7539_v45 = vpop.f32.mrf.mxu3 }
  0xed   : > { %9949 = vst [vmem:[#allocation10_spill] sm:$0xff] %v7539_v45  ;;  %v7603_v45 = vld [vmem:[#allocation2 + $0xb0] sm:$0xff] }
  0xee   : > { %6405 = vmatmul.msk.f32.gmra.mxu1 %vm415_vm3, %v7503_v33  ;;  %v7549_v48 = vpop.f32.mrf.mxu0  ;;  %9960 = vst [vmem:[#allocation21_spill] sm:$0xff] %v7603_v45  ;;  %v7657_v33 = vld [vmem:[#allocation2 + $0xc2] sm:$0xff] }
  0xef   : > { %6438 = vmatmul.msk.f32.gmra.mxu2 %vm415_vm3, %v7541_v46  ;;  %9970 = vst [vmem:[#allocation31_spill] sm:$0xff] %v7657_v33  ;;  %v7659_v46 = vld [vmem:[#allocation2 + $0xd8] sm:$0xff] }
  0xf1   : > { %6471 = vmatmul.msk.f32.gmra.mxu3 %vm415_vm3, %v7543_v47  ;;  %6505 = vmatmul.msk.f32.gmra.mxu0 %vm415_vm3, %v7368_v60 }
  0xf2   : > { %v7553_v52 = vpop.f32.mrf.mxu2 }
  0xf3   : > { %v7557_v53 = vpop.f32.mrf.mxu1 }
  0xf4   : > { %v7559_v57 = vpop.f32.mrf.mxu3 }
  0xf5   : > { %9952 = vst [vmem:[#allocation13_spill] sm:$0xff] %v7559_v57  ;;  %v7601_v57 = vld [vmem:[#allocation2 + $0x9a] sm:$0xff] }
  0xf6   : > { %6406 = vmatmul.msk.f32.gmra.mxu1 %vm415_vm3, %v7523_v39  ;;  %v7569_v0 = vpop.f32.mrf.mxu0  ;;  %9959 = vst [vmem:[#allocation20_spill] sm:$0xff] %v7601_v57 }
  0xf7   : > { %6439 = vmatmul.msk.f32.gmra.mxu2 %vm415_vm3, %v7561_v58  ;;  %v7641_v58 = vld [vmem:[#allocation2 + $0xb2] sm:$0xff] }
  0xf8   : > { %9967 = vst [vmem:[#allocation28_spill] sm:$0xff] %v7641_v58 }
  0xf9   : > { %6472 = vmatmul.msk.f32.gmra.mxu3 %vm415_vm3, %v7563_v59  ;;  %6506 = vmatmul.msk.f32.gmra.mxu0 %vm415_vm3, %v7387_v1 }
  0xfa   : > { %v7573_v60 = vpop.f32.mrf.mxu2 }
  0xfb   : > { %v7577_v8 = vpop.f32.mrf.mxu1 }
  0xfc   : > { %v7579_v9 = vpop.f32.mrf.mxu3 }
  0xfd   : > { %9955 = vst [vmem:[#allocation16_spill] sm:$0xff] %v7579_v9 }
  0xfe   : > { %6407 = vmatmul.msk.f32.gmra.mxu1 %vm415_vm3, %v7543_v47  ;;  %v7589_v12 = vpop.f32.mrf.mxu0 }
  0xff   : > { %6440 = vmatmul.msk.f32.gmra.mxu2 %vm415_vm3, %v7581_v10  ;;  %v7621_v10 = vld [vmem:[#allocation2 + $0xaa] sm:$0xff] }
 0x100   : > { %9963 = vst [vmem:[#allocation24_spill] sm:$0xff] %v7621_v10 }
 0x101   : > { %6473 = vmatmul.msk.f32.gmra.mxu3 %vm415_vm3, %v7583_v11  ;;  %6507 = vmatmul.msk.f32.gmra.mxu0 %vm415_vm3, %v7403_v5 }
 0x102   : > { %v7593_v1 = vpop.f32.mrf.mxu2 }
 0x103   : > { %v7597_v13 = vpop.f32.mrf.mxu1 }
 0x104   : > { %v7599_v9 = vpop.f32.mrf.mxu3 }
 0x105   : > { %9958 = vst [vmem:[#allocation19_spill] sm:$0xff] %v7599_v9 }
 0x106   : > { %6408 = vmatmul.msk.f32.gmra.mxu1 %vm415_vm3, %v7563_v59  ;;  %v7609_v37 = vpop.f32.mrf.mxu0  ;;  %v7623_v59 = vld [vmem:[#allocation2 + $0xc0] sm:$0xff] }
 0x107   : > { %6441 = vmatmul.msk.f32.gmra.mxu2 %vm415_vm3, %v7601_v57  ;;  %9964 = vst [vmem:[#allocation25_spill] sm:$0xff] %v7623_v59 }
 0x109   : > { %6474 = vmatmul.msk.f32.gmra.mxu3 %vm415_vm3, %v7603_v45  ;;  %6508 = vmatmul.msk.f32.gmra.mxu0 %vm415_vm3, %v7245_v19 }
 0x10a   : > { %v7613_v5 = vpop.f32.mrf.mxu2 }
 0x10b   : > { %9961 = vst [vmem:[#allocation22_spill] sm:$0xff] %v7613_v5  ;;  %v7617_v9 = vpop.f32.mrf.mxu1 }
 0x10c   : > { %v7619_v47 = vpop.f32.mrf.mxu3 }
 0x10d   : > { %9962 = vst [vmem:[#allocation23_spill] sm:$0xff] %v7619_v47 }
 0x10e   : > { %6409 = vmatmul.msk.f32.gmra.mxu1 %vm415_vm3, %v7583_v11  ;;  %v7629_v57 = vpop.f32.mrf.mxu0  ;;  %v7643_v11 = vld [vmem:[#allocation2 + $0xc8] sm:$0xff] }
 0x10f   : > { %6442 = vmatmul.msk.f32.gmra.mxu2 %vm415_vm3, %v7621_v10 }
 0x111   : > { %6475 = vmatmul.msk.f32.gmra.mxu3 %vm415_vm3, %v7623_v59  ;;  %6509 = vmatmul.msk.f32.gmra.mxu0 %vm415_vm3, %v7268_v29 }
 0x112   : > { %v7633_v19 = vpop.f32.mrf.mxu2 }
 0x113   : > { %9965 = vst [vmem:[#allocation26_spill] sm:$0xff] %v7633_v19  ;;  %v7637_v47 = vpop.f32.mrf.mxu1 }
 0x114   : > { %v7639_v39 = vpop.f32.mrf.mxu3 }
 0x115   : > { %9966 = vst [vmem:[#allocation27_spill] sm:$0xff] %v7639_v39 }
 0x116   : > { %6410 = vmatmul.msk.f32.gmra.mxu1 %vm415_vm3, %v7603_v45  ;;  %v1630_v10 = vpop.f32.mrf.mxu0 }
 0x117   : > { %6443 = vmatmul.msk.f32.gmra.mxu2 %vm415_vm3, %v7641_v58 }
 0x119   : > { %6476 = vmatmul.msk.f32.gmra.mxu3 %vm415_vm3, %v7643_v11  ;;  %6510 = vmatmul.msk.f32.gmra.mxu0 %vm415_vm3, %v7300_v41 }
 0x11a   : > { %v7651_v19 = vpop.f32.mrf.mxu2 }
 0x11b   : > { %9968 = vst [vmem:[#allocation29_spill] sm:$0xff] %v7651_v19  ;;  %v837_v39 = vpop.f32.mrf.mxu1 }
 0x11c   : > { %v7655_v29 = vpop.f32.mrf.mxu3  ;;  %v838_v58 = vadd.f32 %v837_v39, %v7493_v17 }
 0x11d   : > { %9969 = vst [vmem:[#allocation30_spill] sm:$0xff] %v7655_v29 }
 0x11e   : > { %6411 = vmatmul.msk.f32.gmra.mxu1 %vm415_vm3, %v7623_v59  ;;  %v1633_v45 = vpop.f32.mrf.mxu0  ;;  %v7672_v59 = vld [vmem:[#allocation2 + $0xe0] sm:$0xff] }
 0x11f   : > { %6444 = vmatmul.msk.f32.gmra.mxu2 %vm415_vm3, %v7657_v33 }
 0x121   : > { %6477 = vmatmul.msk.f32.gmra.mxu3 %vm415_vm3, %v7659_v46  ;;  %6511 = vmatmul.msk.f32.gmra.mxu0 %vm415_vm3, %v7327_v49 }
 0x122   : > { %v1080_v41 = vpop.f32.mrf.mxu2 }
 0x123   : > { %v1176_v29 = vadd.f32 %v1080_v41, %v838_v58  ;;  %v840_v19 = vpop.f32.mrf.mxu1  ;;  %v7685_v41 = vld [vmem:[#allocation2 + $0xda] sm:$0xff] }
 0x124   : > { %v1355_v5 = vpop.f32.mrf.mxu3  ;;  %v841_v49 = vadd.f32 %v840_v19, %v7509_v34 }
 0x125   : > { %v1451_v38 = vadd.f32 %v1355_v5, %v1176_v29 }
 0x126   : > { %6412 = vmatmul.msk.f32.gmra.mxu1 %vm415_vm3, %v7643_v11  ;;  %v1636_v17 = vpop.f32.mrf.mxu0 }
 0x127   : > { %v7676_v33 = vadd.f32 %v1630_v10, %v1451_v38  ;;  %6445 = vmatmul.msk.f32.gmra.mxu2 %vm415_vm3, %v7670_v30  ;;  %v7687_v10 = vld [vmem:[#allocation2 + $0xf0] sm:$0xff] }
 0x129   : > { %9971 = vst [vmem:[#allocation32_spill] sm:$0xff] %v7676_v33  ;;  %6478 = vmatmul.msk.f32.gmra.mxu3 %vm415_vm3, %v7672_v59  ;;  %6512 = vmatmul.msk.f32.gmra.mxu0 %vm415_vm3, %v7345_v54 }
 0x12a   : > { %v1083_v39 = vpop.f32.mrf.mxu2 }
 0x12b   : > { %v1177_v58 = vadd.f32 %v1083_v39, %v841_v49  ;;  %v843_v5 = vpop.f32.mrf.mxu1 }
 0x12c   : > { %v1358_v29 = vpop.f32.mrf.mxu3  ;;  %v844_v54 = vadd.f32 %v843_v5, %v7529_v40 }
 0x12d   : > { %v1452_v38 = vadd.f32 %v1358_v29, %v1177_v58  ;;  %v7700_v29 = vld [vmem:[#allocation2 + $0xe2] sm:$0xff] }
 0x12e   : > { %6413 = vmatmul.msk.f32.gmra.mxu1 %vm415_vm3, %v7659_v46  ;;  %v1639_v34 = vpop.f32.mrf.mxu0 }
 0x12f   : > { %v7691_v33 = vadd.f32 %v1633_v45, %v1452_v38  ;;  %6446 = vmatmul.msk.f32.gmra.mxu2 %vm415_vm3, %v7685_v41  ;;  %v7702_v38 = vld [vmem:[#allocation2 + $0xf8] sm:$0xff] }
 0x131   : > { %9972 = vst [vmem:[#allocation33_spill] sm:$0xff] %v7691_v33  ;;  %6479 = vmatmul.msk.f32.gmra.mxu3 %vm415_vm3, %v7687_v10  ;;  %6513 = vmatmul.msk.f32.gmra.mxu0 %vm415_vm3, %v7370_v61 }
 0x132   : > { %v1086_v19 = vpop.f32.mrf.mxu2 }
 0x133   : > { %v1178_v49 = vadd.f32 %v1086_v19, %v844_v54  ;;  %v846_v39 = vpop.f32.mrf.mxu1 }
 0x134   : > { %v1361_v58 = vpop.f32.mrf.mxu3  ;;  %v847_v61 = vadd.f32 %v846_v39, %v7549_v48 }
 0x135   : > { %v1453_v45 = vadd.f32 %v1361_v58, %v1178_v49  ;;  %v7715_v58 = vld [vmem:[#allocation2 + $0xf2] sm:$0xff] }
 0x136   : > { %6414 = vmatmul.msk.f32.gmra.mxu1 %vm415_vm3, %v7672_v59  ;;  %v1642_v40 = vpop.f32.mrf.mxu0 }
 0x137   : > { %v7706_v33 = vadd.f32 %v1636_v17, %v1453_v45  ;;  %6447 = vmatmul.msk.f32.gmra.mxu2 %vm415_vm3, %v7700_v29  ;;  %v7717_v45 = vld [vmem:[#allocation2 + $0x108] sm:$0xff] }
 0x139   : > { %9973 = vst [vmem:[#allocation34_spill] sm:$0xff] %v7706_v33  ;;  %6480 = vmatmul.msk.f32.gmra.mxu3 %vm415_vm3, %v7702_v38  ;;  %6514 = vmatmul.msk.f32.gmra.mxu0 %vm415_vm3, %v7389_v2 }
 0x13a   : > { %v1089_v5 = vpop.f32.mrf.mxu2 }
 0x13b   : > { %v1179_v54 = vadd.f32 %v1089_v5, %v847_v61  ;;  %v849_v19 = vpop.f32.mrf.mxu1 }
 0x13c   : > { %v1364_v49 = vpop.f32.mrf.mxu3  ;;  %v850_v2 = vadd.f32 %v849_v19, %v7569_v0 }
 0x13d   : > { %v1454_v17 = vadd.f32 %v1364_v49, %v1179_v54  ;;  %v7730_v49 = vld [vmem:[#allocation2 + $0xfa] sm:$0xff] }
 0x13e   : > { %6415 = vmatmul.msk.f32.gmra.mxu1 %vm415_vm3, %v7687_v10  ;;  %v1645_v48 = vpop.f32.mrf.mxu0 }
 0x13f   : > { %v7721_v33 = vadd.f32 %v1639_v34, %v1454_v17  ;;  %6448 = vmatmul.msk.f32.gmra.mxu2 %vm415_vm3, %v7715_v58  ;;  %v7732_v17 = vld [vmem:[#allocation2 + $0x110] sm:$0xff] }
 0x141   : > { %9974 = vst [vmem:[#allocation35_spill] sm:$0xff] %v7721_v33  ;;  %6481 = vmatmul.msk.f32.gmra.mxu3 %vm415_vm3, %v7717_v45  ;;  %6515 = vmatmul.msk.f32.gmra.mxu0 %vm415_vm3, %v7405_v6 }
 0x142   : > { %v1092_v39 = vpop.f32.mrf.mxu2 }
 0x143   : > { %v1180_v61 = vadd.f32 %v1092_v39, %v850_v2  ;;  %v852_v5 = vpop.f32.mrf.mxu1 }
 0x144   : > { %v1367_v54 = vpop.f32.mrf.mxu3  ;;  %v853_v6 = vadd.f32 %v852_v5, %v7589_v12 }
 0x145   : > { %v1455_v34 = vadd.f32 %v1367_v54, %v1180_v61  ;;  %v7745_v54 = vld [vmem:[#allocation2 + $0x10a] sm:$0xff] }
 0x146   : > { %6416 = vmatmul.msk.f32.gmra.mxu1 %vm415_vm3, %v7702_v38  ;;  %v1648_v0 = vpop.f32.mrf.mxu0 }
 0x147   : > { %v7736_v33 = vadd.f32 %v1642_v40, %v1455_v34  ;;  %6449 = vmatmul.msk.f32.gmra.mxu2 %vm415_vm3, %v7730_v49  ;;  %v7747_v34 = vld [vmem:[#allocation2 + $0x120] sm:$0xff] }
 0x149   : > { %9975 = vst [vmem:[#allocation36_spill] sm:$0xff] %v7736_v33  ;;  %6482 = vmatmul.msk.f32.gmra.mxu3 %vm415_vm3, %v7732_v17  ;;  %6516 = vmatmul.msk.f32.gmra.mxu0 %vm415_vm3, %v7251_v21 }
 0x14a   : > { %v1095_v19 = vpop.f32.mrf.mxu2 }
 0x14b   : > { %v1181_v2 = vadd.f32 %v1095_v19, %v853_v6  ;;  %v855_v39 = vpop.f32.mrf.mxu1 }
 0x14c   : > { %v1370_v61 = vpop.f32.mrf.mxu3  ;;  %v856_v21 = vadd.f32 %v855_v39, %v7609_v37 }
 0x14d   : > { %v1456_v40 = vadd.f32 %v1370_v61, %v1181_v2  ;;  %v7760_v61 = vld [vmem:[#allocation2 + $0x112] sm:$0xff] }
 0x14e   : > { %6417 = vmatmul.msk.f32.gmra.mxu1 %vm415_vm3, %v7717_v45  ;;  %v1651_v12 = vpop.f32.mrf.mxu0 }
 0x14f   : > { %v7751_v33 = vadd.f32 %v1645_v48, %v1456_v40  ;;  %6450 = vmatmul.msk.f32.gmra.mxu2 %vm415_vm3, %v7745_v54  ;;  %v7762_v40 = vld [vmem:[#allocation2 + $0x128] sm:$0xff] }
 0x150   : > { %9977 = vst [vmem:[#allocation38_spill] sm:$0xff] %v7762_v40 }
 0x151   : > { %9976 = vst [vmem:[#allocation37_spill] sm:$0xff] %v7751_v33  ;;  %6483 = vmatmul.msk.f32.gmra.mxu3 %vm415_vm3, %v7747_v34  ;;  %6517 = vmatmul.msk.f32.gmra.mxu0 %vm415_vm3, %v7272_v31 }
 0x152   : > { %v1098_v5 = vpop.f32.mrf.mxu2 }
 0x153   : > { %v1182_v6 = vadd.f32 %v1098_v5, %v856_v21  ;;  %v858_v19 = vpop.f32.mrf.mxu1 }
 0x154   : > { %v1373_v2 = vpop.f32.mrf.mxu3  ;;  %v859_v31 = vadd.f32 %v858_v19, %v7629_v57 }
 0x155   : > { %v1457_v48 = vadd.f32 %v1373_v2, %v1182_v6  ;;  %v7775_v2 = vld [vmem:[#allocation2 + $0x122] sm:$0xff] }
 0x156   : > { %6418 = vmatmul.msk.f32.gmra.mxu1 %vm415_vm3, %v7732_v17  ;;  %v1654_v37 = vpop.f32.mrf.mxu0 }
 0x157   : > { %v7766_v33 = vadd.f32 %v1648_v0, %v1457_v48  ;;  %6451 = vmatmul.msk.f32.gmra.mxu2 %vm415_vm3, %v7760_v61  ;;  %v1232_v48 = vld [vmem:[#allocation2 + $0x138] sm:$0xff] }
 0x159   : > { %9978 = vst [vmem:[#allocation39_spill] sm:$0xff] %v7766_v33  ;;  %6484 = vmatmul.msk.f32.gmra.mxu3 %vm415_vm3, %v7762_v40  ;;  %6518 = vmatmul.msk.f32.gmra.mxu0 %vm415_vm3, %v7303_v42 }
 0x15a   : > { %v1101_v39 = vpop.f32.mrf.mxu2 }
 0x15b   : > { %v1183_v21 = vadd.f32 %v1101_v39, %v859_v31  ;;  %v861_v5 = vpop.f32.mrf.mxu1 }
 0x15c   : > { %v1376_v6 = vpop.f32.mrf.mxu3  ;;  %v862_v42 = vadd.f32 %v861_v5, %v7499_v32  ;;  %v412_v5 = vld [vmem:[%s7144_s13 + $0xf0] sm:$0xff] }
 0x15d   : > { %v1458_v0 = vadd.f32 %v1376_v6, %v1183_v21  ;;  %v7787_v6 = vld [vmem:[#allocation2 + $0x12a] sm:$0xff]  ;;  %446 = vst.msk [vmem:[#allocation2 + $0x181] sm:$0xff] %vm415_vm3, %v412_v5 }
 0x15e   : > { %6419 = vmatmul.msk.f32.gmra.mxu1 %vm415_vm3, %v7747_v34  ;;  %v1657_v57 = vpop.f32.mrf.mxu0  ;;  %9980 = vst [vmem:[#allocation41_spill] sm:$0xff] %v7787_v6 }
 0x15f   : > { %v7779_v33 = vadd.f32 %v1651_v12, %v1458_v0  ;;  %6452 = vmatmul.msk.f32.gmra.mxu2 %vm415_vm3, %v7775_v2  ;;  %v1233_v0 = vld [vmem:[#allocation2 + $0x140] sm:$0xff] }
 0x161   : > { %9979 = vst [vmem:[#allocation40_spill] sm:$0xff] %v7779_v33  ;;  %6485 = vmatmul.msk.f32.gmra.mxu3 %vm415_vm3, %v1232_v48  ;;  %6519 = vmatmul.msk.f32.gmra.mxu0 %vm415_vm3, %v7329_v50 }
 0x162   : > { %v1104_v19 = vpop.f32.mrf.mxu2 }
 0x163   : > { %v1184_v31 = vadd.f32 %v1104_v19, %v862_v42  ;;  %v864_v39 = vpop.f32.mrf.mxu1 }
 0x164   : > { %v1379_v21 = vpop.f32.mrf.mxu3  ;;  %v865_v50 = vadd.f32 %v864_v39, %v7517_v36  ;;  %v413_v36 = vld [vmem:[%s7144_s13 + $0xf8] sm:$0xff] }
 0x165   : > { %v1459_v12 = vadd.f32 %v1379_v21, %v1184_v31  ;;  %v959_v21 = vld [vmem:[#allocation2 + $0x13a] sm:$0xff]  ;;  %447 = vst.msk [vmem:[#allocation2 + $0x189] sm:$0xff] %vm415_vm3, %v413_v36 }
 0x166   : > { %6420 = vmatmul.msk.f32.gmra.mxu1 %vm415_vm3, %v7762_v40  ;;  %v1660_v32 = vpop.f32.mrf.mxu0 }
 0x167   : > { %v7791_v33 = vadd.f32 %v1654_v37, %v1459_v12  ;;  %6453 = vmatmul.msk.f32.gmra.mxu2 %vm415_vm3, %v7787_v6 }
 0x169   : > { %9981 = vst [vmem:[#allocation42_spill] sm:$0xff] %v7791_v33  ;;  %6486 = vmatmul.msk.f32.gmra.mxu3 %vm415_vm3, %v1233_v0  ;;  %6520 = vmatmul.msk.f32.gmra.mxu0 %vm415_vm3, %v7347_v55  ;;  %v1234_v33 = vld [vmem:[#allocation2 + $0x150] sm:$0xff] }
 0x16a   : > { %v1107_v42 = vpop.f32.mrf.mxu2 }
 0x16b   : > { %v1185_v19 = vadd.f32 %v1107_v42, %v865_v50  ;;  %v867_v31 = vpop.f32.mrf.mxu1 }
 0x16c   : > { %v1382_v37 = vpop.f32.mrf.mxu3  ;;  %v868_v39 = vadd.f32 %v867_v31, %v7537_v44 }
 0x16d   : > { %v1460_v12 = vadd.f32 %v1382_v37, %v1185_v19  ;;  %v1235_v19 = vld [vmem:[#allocation2 + $0x158] sm:$0xff] }
 0x16e   : > { %6421 = vmatmul.msk.f32.gmra.mxu1 %vm415_vm3, %v1232_v48  ;;  %v1663_v6 = vpop.f32.mrf.mxu0  ;;  %v960_v48 = vld [vmem:[#allocation2 + $0x142] sm:$0xff] }
 0x16f   : > { %v7802_v40 = vadd.f32 %v1657_v57, %v1460_v12  ;;  %6454 = vmatmul.msk.f32.gmra.mxu2 %vm415_vm3, %v959_v21 }
 0x171   : > { %6487 = vmatmul.msk.f32.gmra.mxu3 %vm415_vm3, %v1234_v33  ;;  %6521 = vmatmul.msk.f32.gmra.mxu0 %vm415_vm3, %v7372_v62 }
 0x172   : > { %v1110_v55 = vpop.f32.mrf.mxu2 }
 0x173   : > { %v1186_v5 = vadd.f32 %v1110_v55, %v868_v39  ;;  %v870_v50 = vpop.f32.mrf.mxu1  ;;  %v961_v39 = vld [vmem:[#allocation2 + $0x152] sm:$0xff] }
 0x174   : > { %v1385_v42 = vpop.f32.mrf.mxu3  ;;  %v871_v44 = vadd.f32 %v870_v50, %v7557_v53 }
 0x175   : > { %v1461_v57 = vadd.f32 %v1385_v42, %v1186_v5  ;;  %v1236_v5 = vld [vmem:[#allocation2 + $0x168] sm:$0xff] }
 0x176   : > { %6422 = vmatmul.msk.f32.gmra.mxu1 %vm415_vm3, %v1233_v0  ;;  %v1666_v21 = vpop.f32.mrf.mxu0 }
 0x177   : > { %v7812_v37 = vadd.f32 %v1660_v32, %v1461_v57  ;;  %6455 = vmatmul.msk.f32.gmra.mxu2 %vm415_vm3, %v960_v48  ;;  %v962_v57 = vld [vmem:[#allocation2 + $0x15a] sm:$0xff] }
 0x179   : > { %6488 = vmatmul.msk.f32.gmra.mxu3 %vm415_vm3, %v1235_v19  ;;  %6522 = vmatmul.msk.f32.gmra.mxu0 %vm415_vm3, %v7391_v3 }
 0x17a   : > { %v1113_v31 = vpop.f32.mrf.mxu2 }
 0x17b   : > { %v1187_v62 = vadd.f32 %v1113_v31, %v871_v44  ;;  %v873_v12 = vpop.f32.mrf.mxu1  ;;  %v1237_v31 = vld [vmem:[#allocation2 + $0x170] sm:$0xff] }
 0x17c   : > { %v1388_v36 = vpop.f32.mrf.mxu3  ;;  %v874_v53 = vadd.f32 %v873_v12, %v7577_v8 }
 0x17d   : > { %v1462_v55 = vadd.f32 %v1388_v36, %v1187_v62  ;;  %v1513_v62 = vld [vmem:[#allocation2 + $0x181] sm:$0xff] }
 0x17e   : > { %6423 = vmatmul.msk.f32.gmra.mxu1 %vm415_vm3, %v1234_v33  ;;  %v1669_v32 = vpop.f32.mrf.mxu0 }
 0x17f   : > { %v7820_v0 = vadd.f32 %v1663_v6, %v1462_v55  ;;  %6456 = vmatmul.msk.f32.gmra.mxu2 %vm415_vm3, %v961_v39  ;;  %v963_v55 = vld [vmem:[#allocation2 + $0x16a] sm:$0xff] }
 0x181   : > { %6489 = vmatmul.msk.f32.gmra.mxu3 %vm415_vm3, %v1236_v5  ;;  %6523 = vmatmul.msk.f32.gmra.mxu0 %vm415_vm3, %v7407_v7 }
 0x182   : > { %v1116_v50 = vpop.f32.mrf.mxu2 }
 0x183   : > { %v1188_v3 = vadd.f32 %v1116_v50, %v874_v53  ;;  %v876_v42 = vpop.f32.mrf.mxu1  ;;  %v1238_v50 = vld [vmem:[#allocation2 + $0x180] sm:$0xff] }
 0x184   : > { %v1391_v48 = vpop.f32.mrf.mxu3  ;;  %v877_v8 = vadd.f32 %v876_v42, %v7597_v13 }
 0x185   : > { %v1463_v44 = vadd.f32 %v1391_v48, %v1188_v3  ;;  %v1514_v3 = vld [vmem:[#allocation2 + $0x189] sm:$0xff] }
 0x186   : > { %6424 = vmatmul.msk.f32.gmra.mxu1 %vm415_vm3, %v1235_v19  ;;  %v1672_v6 = vpop.f32.mrf.mxu0 }
 0x187   : > { %v7828_v33 = vadd.f32 %v1666_v21, %v1463_v44  ;;  %6457 = vmatmul.msk.f32.gmra.mxu2 %vm415_vm3, %v962_v57 }
 0x189   : > { %6490 = vmatmul.msk.f32.gmra.mxu3 %vm415_vm3, %v1237_v31  ;;  %6524 = vmatmul.msk.f32.gmra.mxu0 %vm415_vm3, %v1513_v62  ;;  %v964_v62 = vld [vmem:[#allocation2 + $0x172] sm:$0xff] }
 0x18a   : > { %v1119_v12 = vpop.f32.mrf.mxu2 }
 0x18b   : > { %v1189_v7 = vadd.f32 %v1119_v12, %v877_v8  ;;  %v879_v36 = vpop.f32.mrf.mxu1  ;;  %v1239_v12 = vld [vmem:[#allocation2 + $0x188] sm:$0xff] }
 0x18c   : > { %v1394_v39 = vpop.f32.mrf.mxu3  ;;  %v880_v13 = vadd.f32 %v879_v36, %v7617_v9 }
 0x18d   : > { %v1464_v53 = vadd.f32 %v1394_v39, %v1189_v7 }
 0x18e   : > { %6425 = vmatmul.msk.f32.gmra.mxu1 %vm415_vm3, %v1236_v5  ;;  %v1675_v21 = vpop.f32.mrf.mxu0 }
 0x18f   : > { %v7835_v19 = vadd.f32 %v1669_v32, %v1464_v53  ;;  %6458 = vmatmul.msk.f32.gmra.mxu2 %vm415_vm3, %v963_v55 }
 0x191   : > { %6491 = vmatmul.msk.f32.gmra.mxu3 %vm415_vm3, %v1238_v50  ;;  %6525 = vmatmul.msk.f32.gmra.mxu0 %vm415_vm3, %v1514_v3 }
 0x192   : > { %v1122_v42 = vpop.f32.mrf.mxu2 }
 0x193   : > { %v1190_v48 = vadd.f32 %v1122_v42, %v880_v13  ;;  %v882_v57 = vpop.f32.mrf.mxu1 }
 0x194   : > { %v1397_v44 = vpop.f32.mrf.mxu3  ;;  %v883_v9 = vadd.f32 %v882_v57, %v7637_v47 }
 0x195   : > { %v1465_v8 = vadd.f32 %v1397_v44, %v1190_v48 }
 0x196   : > { %6426 = vmatmul.msk.f32.gmra.mxu1 %vm415_vm3, %v1237_v31  ;;  %v1678_v32 = vpop.f32.mrf.mxu0 }
 0x197   : > { %v7842_v5 = vadd.f32 %v1672_v6, %v1465_v8  ;;  %6459 = vmatmul.msk.f32.gmra.mxu2 %vm415_vm3, %v964_v62 }
 0x199   : > { %6492 = vmatmul.msk.f32.gmra.mxu3 %vm415_vm3, %v1239_v12  ;;  %6626 = vmatmul.msk.f32.vlgmr.msra.gmra.mxu0 %vm415_vm3, %v7449_v20 }
 0x19a   : > { %v1125_v7 = vpop.f32.mrf.mxu2 }
 0x19b   : > { %v1191_v36 = vadd.f32 %v1125_v7, %v883_v9  ;;  %v885_v39 = vpop.f32.mrf.mxu1 }
 0x19c   : > { %v1400_v55 = vpop.f32.mrf.mxu3  ;;  %v886_v47 = vadd.f32 %v885_v39, %v7513_v35 }
 0x19d   : > { %v1466_v53 = vadd.f32 %v1400_v55, %v1191_v36 }
 0x19e   : > { %6527 = vmatmul.msk.f32.vlgmr.msra.gmra.mxu1 %vm415_vm3, %v7427_v14  ;;  %v1681_v6 = vpop.f32.mrf.mxu0 }
 0x19f   : > { %v7851_v31 = vadd.f32 %v1675_v21, %v1466_v53  ;;  %6560 = vmatmul.msk.f32.vlgmr.msra.gmra.mxu2 %vm415_vm3, %v7429_v15 }
 0x1a1   : > { %6593 = vmatmul.msk.f32.vlgmr.msra.gmra.mxu3 %vm415_vm3, %v7335_v51  ;;  %6627 = vmatmul.msk.f32.gmra.mxu0 %vm415_vm3, %v7461_v23 }
 0x1a2   : > { %v1128_v50 = vpop.f32.mrf.mxu2 }
 0x1a3   : > { %v1192_v3 = vadd.f32 %v1128_v50, %v886_v47  ;;  %v888_v13 = vpop.f32.mrf.mxu1 }
 0x1a4   : > { %v1403_v42 = vpop.f32.mrf.mxu3  ;;  %v889_v51 = vadd.f32 %v888_v13, %v7533_v43 }
 0x1a5   : > { %v1467_v48 = vadd.f32 %v1403_v42, %v1192_v3  ;;  %v2314_v42 = vld [vmem:[#allocation2 + $0x69] sm:$0xff] }
 0x1a6   : > { %6528 = vmatmul.msk.f32.gmra.mxu1 %vm415_vm3, %v7438_v16  ;;  %v1684_v15 = vpop.f32.mrf.mxu0 }
 0x1a7   : > { %v7862_v14 = vadd.f32 %v1678_v32, %v1467_v48  ;;  %6561 = vmatmul.msk.f32.gmra.mxu2 %vm415_vm3, %v7440_v18 }
 0x1a9   : > { %6594 = vmatmul.msk.f32.gmra.mxu3 %vm415_vm3, %v7353_v56  ;;  %6628 = vmatmul.msk.f32.gmra.mxu0 %vm415_vm3, %v7473_v25 }
 0x1aa   : > { %v1131_v35 = vpop.f32.mrf.mxu2 }
 0x1ab   : > { %v1193_v21 = vadd.f32 %v1131_v35, %v889_v51  ;;  %v891_v57 = vpop.f32.mrf.mxu1  ;;  %v9985_v35 = vld [vmem:[#allocation11_spill] sm:$0xff] }
 0x1ac   : > { %v1406_v44 = vpop.f32.mrf.mxu3  ;;  %v892_v56 = vadd.f32 %v891_v57, %v7553_v52 }
 0x1ad   : > { %v1468_v62 = vadd.f32 %v1406_v44, %v1193_v21 }
 0x1ae   : > { %6529 = vmatmul.msk.f32.gmra.mxu1 %vm415_vm3, %v7449_v20  ;;  %v1687_v18 = vpop.f32.mrf.mxu0 }
 0x1af   : > { %v7873_v16 = vadd.f32 %v1681_v6, %v1468_v62  ;;  %6562 = vmatmul.msk.f32.gmra.mxu2 %vm415_vm3, %v7451_v22  ;;  %v9982_v6 = vld [vmem:[#allocation8_spill] sm:$0xff] }
 0x1b1   : > { %6595 = vmatmul.msk.f32.gmra.mxu3 %vm415_vm3, %v7378_v63  ;;  %6629 = vmatmul.msk.f32.gmra.mxu0 %vm415_vm3, %v7485_v28 }
 0x1b2   : > { %v1134_v43 = vpop.f32.mrf.mxu2 }
 0x1b3   : > { %v1194_v8 = vadd.f32 %v1134_v43, %v892_v56  ;;  %v894_v12 = vpop.f32.mrf.mxu1  ;;  %v9986_v56 = vld [vmem:[#allocation6_spill] sm:$0xff] }
 0x1b4   : > { %v1409_v32 = vpop.f32.mrf.mxu3  ;;  %v895_v63 = vadd.f32 %v894_v12, %v7573_v60 }
 0x1b5   : > { %v1469_v9 = vadd.f32 %v1409_v32, %v1194_v8  ;;  %v9987_v8 = vld [vmem:[#allocation26_spill] sm:$0xff] }
 0x1b6   : > { %6530 = vmatmul.msk.f32.gmra.mxu1 %vm415_vm3, %v7461_v23  ;;  %v1690_v22 = vpop.f32.mrf.mxu0  ;;  %v2313_v23 = vld [vmem:[#allocation2 + $0x61] sm:$0xff] }
 0x1b7   : > { %v7884_v20 = vadd.f32 %v1684_v15, %v1469_v9  ;;  %6563 = vmatmul.msk.f32.gmra.mxu2 %vm415_vm3, %v7463_v24  ;;  %v9988_v9 = vld [vmem:[#allocation14_spill] sm:$0xff] }
 0x1b9   : > { %6596 = vmatmul.msk.f32.gmra.mxu3 %vm415_vm3, %v7397_v4  ;;  %6630 = vmatmul.msk.f32.gmra.mxu0 %vm415_vm3, %v7501_v27 }
 0x1ba   : > { %v1137_v52 = vpop.f32.mrf.mxu2 }
 0x1bb   : > { %v1195_v7 = vadd.f32 %v1137_v52, %v895_v63  ;;  %v897_v36 = vpop.f32.mrf.mxu1 }
 0x1bc   : > { %v1412_v39 = vpop.f32.mrf.mxu3  ;;  %v898_v24 = vadd.f32 %v897_v36, %v7593_v1  ;;  %v9984_v1 = vld [vmem:[#allocation22_spill] sm:$0xff] }
 0x1bd   : > { %v1470_v55 = vadd.f32 %v1412_v39, %v1195_v7  ;;  %v2316_v36 = vld [vmem:[#allocation2 + $0x81] sm:$0xff]  ;;  %v9989_v39 = vld [vmem:[#allocation9_spill] sm:$0xff] }
 0x1be   : > { %6531 = vmatmul.msk.f32.gmra.mxu1 %vm415_vm3, %v7473_v25  ;;  %v1693_v4 = vpop.f32.mrf.mxu0 }
 0x1bf   : > { %v7895_v53 = vadd.f32 %v1687_v18, %v1470_v55  ;;  %6564 = vmatmul.msk.f32.gmra.mxu2 %vm415_vm3, %v7475_v26  ;;  %v9983_v26 = vld [vmem:[#allocation5_spill] sm:$0xff] }
 0x1c0   : > { %v2315_v18 = vld [vmem:[#allocation2 + $0x79] sm:$0xff] }
 0x1c1   : > { %6597 = vmatmul.msk.f32.gmra.mxu3 %vm415_vm3, %v2313_v23  ;;  %6631 = vmatmul.msk.f32.gmra.mxu0 %vm415_vm3, %v9982_v6  ;;  %v9990_v23 = vld [vmem:[#allocation29_spill] sm:$0xff] }
 0x1c2   : > { %v1140_v60 = vpop.f32.mrf.mxu2 }
 0x1c3   : > { %v1196_v47 = vadd.f32 %v1140_v60, %v898_v24  ;;  %v900_v50 = vpop.f32.mrf.mxu1  ;;  %v9991_v60 = vld [vmem:[#allocation17_spill] sm:$0xff] }
 0x1c4   : > { %v1415_v3 = vpop.f32.mrf.mxu3  ;;  %v901_v15 = vadd.f32 %v900_v50, %v9984_v1  ;;  %v9993_v1 = vld [vmem:[#allocation7_spill] sm:$0xff] }
 0x1c5   : > { %v1471_v13 = vadd.f32 %v1415_v3, %v1196_v47 }
 0x1c6   : > { %6532 = vmatmul.msk.f32.gmra.mxu1 %vm415_vm3, %v7485_v28  ;;  %v1696_v48 = vpop.f32.mrf.mxu0 }
 0x1c7   : > { %v7905_v25 = vadd.f32 %v1690_v22, %v1471_v13  ;;  %6565 = vmatmul.msk.f32.gmra.mxu2 %vm415_vm3, %v9983_v26  ;;  %v9992_v26 = vld [vmem:[#allocation12_spill] sm:$0xff] }
 0x1c9   : > { %6598 = vmatmul.msk.f32.gmra.mxu3 %vm415_vm3, %v2314_v42  ;;  %6632 = vmatmul.msk.f32.gmra.mxu0 %vm415_vm3, %v9985_v35  ;;  %v2317_v42 = vld [vmem:[#allocation2 + $0x91] sm:$0xff] }
 0x1ca   : > { %v1143_v51 = vpop.f32.mrf.mxu2 }
 0x1cb   : > { %v1197_v21 = vadd.f32 %v1143_v51, %v901_v15  ;;  %v903_v57 = vpop.f32.mrf.mxu1 }
 0x1cc   : > { %v1418_v44 = vpop.f32.mrf.mxu3  ;;  %v904_v12 = vadd.f32 %v903_v57, %v9987_v8 }
 0x1cd   : > { %v1472_v62 = vadd.f32 %v1418_v44, %v1197_v21  ;;  %v9994_v21 = vld [vmem:[#allocation20_spill] sm:$0xff] }
 0x1ce   : > { %6533 = vmatmul.msk.f32.gmra.mxu1 %vm415_vm3, %v7501_v27  ;;  %v1699_v43 = vpop.f32.mrf.mxu0 }
 0x1cf   : > { %v7915_v28 = vadd.f32 %v1693_v4, %v1472_v62  ;;  %6566 = vmatmul.msk.f32.gmra.mxu2 %vm415_vm3, %v9986_v56  ;;  %v2318_v56 = vld [vmem:[#allocation2 + $0x99] sm:$0xff] }
 0x1d1   : > { %6599 = vmatmul.msk.f32.gmra.mxu3 %vm415_vm3, %v2315_v18  ;;  %6633 = vmatmul.msk.f32.gmra.mxu0 %vm415_vm3, %v9988_v9 }
 0x1d2   : > { %v1146_v32 = vpop.f32.mrf.mxu2 }
 0x1d3   : > { %v1198_v22 = vadd.f32 %v1146_v32, %v904_v12  ;;  %v906_v63 = vpop.f32.mrf.mxu1  ;;  %v9996_v12 = vld [vmem:[#allocation10_spill] sm:$0xff] }
 0x1d4   : > { %v1421_v52 = vpop.f32.mrf.mxu3  ;;  %v907_v4 = vadd.f32 %v906_v63, %v9990_v23  ;;  %v9997_v63 = vld [vmem:[#allocation24_spill] sm:$0xff] }
 0x1d5   : > { %v1473_v7 = vadd.f32 %v1421_v52, %v1198_v22  ;;  %v2319_v23 = vld [vmem:[#allocation2 + $0xa9] sm:$0xff] }
 0x1d6   : > { %6534 = vmatmul.msk.f32.gmra.mxu1 %vm415_vm3, %v9982_v6  ;;  %v1702_v55 = vpop.f32.mrf.mxu0 }
 0x1d7   : > { %v7925_v27 = vadd.f32 %v1696_v48, %v1473_v7  ;;  %6567 = vmatmul.msk.f32.gmra.mxu2 %vm415_vm3, %v9989_v39 }
 0x1d9   : > { %6600 = vmatmul.msk.f32.gmra.mxu3 %vm415_vm3, %v2316_v36  ;;  %6634 = vmatmul.msk.f32.gmra.mxu0 %vm415_vm3, %v9991_v60 }
 0x1da   : > { %v1149_v24 = vpop.f32.mrf.mxu2 }
 0x1db   : > { %v1199_v47 = vadd.f32 %v1149_v24, %v907_v4  ;;  %v909_v50 = vpop.f32.mrf.mxu1  ;;  %v9999_v24 = vld [vmem:[#allocation13_spill] sm:$0xff] }
 0x1dc   : > { %v1424_v3 = vpop.f32.mrf.mxu3  ;;  %v910_v15 = vadd.f32 %v909_v50, %v9993_v1 }
 0x1dd   : > { %v1474_v13 = vadd.f32 %v1424_v3, %v1199_v47  ;;  %v10000_v3 = vld [vmem:[#allocation28_spill] sm:$0xff] }
 0x1de   : > { %6535 = vmatmul.msk.f32.gmra.mxu1 %vm415_vm3, %v9985_v35  ;;  %v1705_v48 = vpop.f32.mrf.mxu0 }
 0x1df   : > { %v7935_v6 = vadd.f32 %v1699_v43, %v1474_v13  ;;  %6568 = vmatmul.msk.f32.gmra.mxu2 %vm415_vm3, %v9992_v26  ;;  %v9995_v43 = vld [vmem:[#allocation15_spill] sm:$0xff] }
 0x1e1   : > { %6601 = vmatmul.msk.f32.gmra.mxu3 %vm415_vm3, %v2317_v42  ;;  %6635 = vmatmul.msk.f32.gmra.mxu0 %vm415_vm3, %v9994_v21 }
 0x1e2   : > { %v1152_v51 = vpop.f32.mrf.mxu2 }
 0x1e3   : > { %v1200_v57 = vadd.f32 %v1152_v51, %v910_v15  ;;  %v912_v44 = vpop.f32.mrf.mxu1  ;;  %v2320_v15 = vld [vmem:[#allocation2 + $0xb1] sm:$0xff] }
 0x1e4   : > { %v1427_v62 = vpop.f32.mrf.mxu3  ;;  %v913_v32 = vadd.f32 %v912_v44, %v9996_v12 }
 0x1e5   : > { %v1475_v18 = vadd.f32 %v1427_v62, %v1200_v57  ;;  %v10002_v57 = vld [vmem:[#allocation16_spill] sm:$0xff] }
 0x1e6   : > { %6536 = vmatmul.msk.f32.gmra.mxu1 %vm415_vm3, %v9988_v9  ;;  %v1708_v8 = vpop.f32.mrf.mxu0 }
 0x1e7   : > { %v7945_v35 = vadd.f32 %v1702_v55, %v1475_v18  ;;  %6569 = vmatmul.msk.f32.gmra.mxu2 %vm415_vm3, %v9995_v43  ;;  %v9998_v55 = vld [vmem:[#allocation18_spill] sm:$0xff]  ;;  %v10003_v18 = vld [vmem:[#allocation31_spill] sm:$0xff] }
 0x1e9   : > { %6602 = vmatmul.msk.f32.gmra.mxu3 %vm415_vm3, %v2318_v56  ;;  %6636 = vmatmul.msk.f32.gmra.mxu0 %vm415_vm3, %v9997_v63 }
 0x1ea   : > { %v1155_v22 = vpop.f32.mrf.mxu2 }
 0x1eb   : > { %v1201_v52 = vadd.f32 %v1155_v22, %v913_v32  ;;  %v915_v7 = vpop.f32.mrf.mxu1  ;;  %v2321_v22 = vld [vmem:[#allocation2 + $0xc1] sm:$0xff] }
 0x1ec   : > { %v1430_v36 = vpop.f32.mrf.mxu3  ;;  %v916_v47 = vadd.f32 %v915_v7, %v9999_v24  ;;  %v10005_v7 = vld [vmem:[#allocation19_spill] sm:$0xff] }
 0x1ed   : > { %v1476_v39 = vadd.f32 %v1430_v36, %v1201_v52 }
 0x1ee   : > { %6537 = vmatmul.msk.f32.gmra.mxu1 %vm415_vm3, %v9991_v60  ;;  %v1711_v4 = vpop.f32.mrf.mxu0 }
 0x1ef   : > { %v7955_v9 = vadd.f32 %v1705_v48, %v1476_v39  ;;  %6570 = vmatmul.msk.f32.gmra.mxu2 %vm415_vm3, %v9998_v55  ;;  %v10001_v48 = vld [vmem:[#allocation21_spill] sm:$0xff] }
 0x1f1   : > { %6603 = vmatmul.msk.f32.gmra.mxu3 %vm415_vm3, %v2319_v23  ;;  %6637 = vmatmul.msk.f32.gmra.mxu0 %vm415_vm3, %v10000_v3 }
 0x1f2   : > { %v1158_v50 = vpop.f32.mrf.mxu2 }
 0x1f3   : > { %v1202_v13 = vadd.f32 %v1158_v50, %v916_v47  ;;  %v918_v42 = vpop.f32.mrf.mxu1  ;;  %v2322_v50 = vld [vmem:[#allocation2 + $0xc9] sm:$0xff] }
 0x1f4   : > { %v1433_v26 = vpop.f32.mrf.mxu3  ;;  %v919_v44 = vadd.f32 %v918_v42, %v10002_v57 }
 0x1f5   : > { %v1477_v1 = vadd.f32 %v1433_v26, %v1202_v13  ;;  %v10006_v13 = vld [vmem:[#allocation23_spill] sm:$0xff] }
 0x1f6   : > { %6538 = vmatmul.msk.f32.gmra.mxu1 %vm415_vm3, %v9994_v21  ;;  %v1714_v51 = vpop.f32.mrf.mxu0 }
 0x1f7   : > { %v7965_v60 = vadd.f32 %v1708_v8, %v1477_v1  ;;  %6571 = vmatmul.msk.f32.gmra.mxu2 %vm415_vm3, %v10001_v48  ;;  %v10004_v8 = vld [vmem:[#allocation25_spill] sm:$0xff] }
 0x1f9   : > { %6604 = vmatmul.msk.f32.gmra.mxu3 %vm415_vm3, %v2320_v15  ;;  %6638 = vmatmul.msk.f32.gmra.mxu0 %vm415_vm3, %v10003_v18 }
 0x1fa   : > { %v1161_v62 = vpop.f32.mrf.mxu2 }
 0x1fb   : > { %v1203_v56 = vadd.f32 %v1161_v62, %v919_v44  ;;  %v921_v43 = vpop.f32.mrf.mxu1  ;;  %v2323_v44 = vld [vmem:[#allocation2 + $0xd9] sm:$0xff] }
 0x1fc   : > { %v1436_v12 = vpop.f32.mrf.mxu3  ;;  %v922_v36 = vadd.f32 %v921_v43, %v10005_v7 }
 0x1fd   : > { %v1478_v32 = vadd.f32 %v1436_v12, %v1203_v56 }
 0x1fe   : > { %6539 = vmatmul.msk.f32.gmra.mxu1 %vm415_vm3, %v9997_v63  ;;  %v1717_v52 = vpop.f32.mrf.mxu0 }
 0x1ff   : > { %v7975_v21 = vadd.f32 %v1711_v4, %v1478_v32  ;;  %6572 = vmatmul.msk.f32.gmra.mxu2 %vm415_vm3, %v10004_v8  ;;  %v2324_v8 = vld [vmem:[#allocation2 + $0xe1] sm:$0xff] }
 0x201   : > { %6605 = vmatmul.msk.f32.gmra.mxu3 %vm415_vm3, %v2321_v22  ;;  %6639 = vmatmul.msk.f32.gmra.mxu0 %vm415_vm3, %v7670_v30 }
 0x202   : > { %v1164_v39 = vpop.f32.mrf.mxu2 }
 0x203   : > { %v1204_v23 = vadd.f32 %v1164_v39, %v922_v36  ;;  %v924_v55 = vpop.f32.mrf.mxu1 }
 0x204   : > { %v1439_v24 = vpop.f32.mrf.mxu3  ;;  %v925_v42 = vadd.f32 %v924_v55, %v10006_v13 }
 0x205   : > { %v1479_v47 = vadd.f32 %v1439_v24, %v1204_v23 }
 0x206   : > { %6540 = vmatmul.msk.f32.gmra.mxu1 %vm415_vm3, %v10000_v3  ;;  %v1720_v4 = vpop.f32.mrf.mxu0 }
 0x207   : > { %v7985_v63 = vadd.f32 %v1714_v51, %v1479_v47  ;;  %6573 = vmatmul.msk.f32.gmra.mxu2 %vm415_vm3, %v7643_v11  ;;  %v10007_v51 = vld [vmem:[#allocation27_spill] sm:$0xff] }
 0x209   : > { %6606 = vmatmul.msk.f32.gmra.mxu3 %vm415_vm3, %v2322_v50  ;;  %6640 = vmatmul.msk.f32.gmra.mxu0 %vm415_vm3, %v7685_v41  ;;  %v10009_v50 = vld [vmem:[#allocation32_spill] sm:$0xff] }
 0x20a   : > { %v1167_v26 = vpop.f32.mrf.mxu2 }
 0x20b   : > { %v1205_v1 = vadd.f32 %v1167_v26, %v925_v42  ;;  %v927_v15 = vpop.f32.mrf.mxu1 }
 0x20c   : > { %v1442_v48 = vpop.f32.mrf.mxu3  ;;  %v928_v62 = vadd.f32 %v927_v15, %v10007_v51 }
 0x20d   : > { %v1480_v57 = vadd.f32 %v1442_v48, %v1205_v1 }
 0x20e   : > { %6541 = vmatmul.msk.f32.gmra.mxu1 %vm415_vm3, %v10003_v18  ;;  %v1723_v11 = vpop.f32.mrf.mxu0 }
 0x20f   : > { %v7995_v3 = vadd.f32 %v1717_v52, %v1480_v57  ;;  %6574 = vmatmul.msk.f32.gmra.mxu2 %vm415_vm3, %v7659_v46  ;;  %v10008_v52 = vld [vmem:[#allocation30_spill] sm:$0xff]  ;;  %v10010_v57 = vld [vmem:[#allocation33_spill] sm:$0xff] }
 0x211   : > { %6607 = vmatmul.msk.f32.gmra.mxu3 %vm415_vm3, %v2323_v44  ;;  %6641 = vmatmul.msk.f32.gmra.mxu0 %vm415_vm3, %v7700_v29 }
 0x212   : > { %v1170_v56 = vpop.f32.mrf.mxu2 }
 0x213   : > { %v1206_v43 = vadd.f32 %v1170_v56, %v928_v62  ;;  %v930_v12 = vpop.f32.mrf.mxu1 }
 0x214   : > { %v1445_v32 = vpop.f32.mrf.mxu3  ;;  %v931_v7 = vadd.f32 %v930_v12, %v10008_v52 }
 0x215   : > { %v1481_v22 = vadd.f32 %v1445_v32, %v1206_v43 }
 0x216   : > { %6542 = vmatmul.msk.f32.gmra.mxu1 %vm415_vm3, %v7670_v30  ;;  %v2731_v46 = vpop.f32.mrf.mxu0  ;;  %v2325_v30 = vld [vmem:[#allocation2 + $0xf1] sm:$0xff] }
 0x217   : > { %v8005_v18 = vadd.f32 %v1720_v4, %v1481_v22  ;;  %6575 = vmatmul.msk.f32.gmra.mxu2 %vm415_vm3, %v7672_v59 }
 0x219   : > { %6608 = vmatmul.msk.f32.gmra.mxu3 %vm415_vm3, %v2324_v8  ;;  %6642 = vmatmul.msk.f32.gmra.mxu0 %vm415_vm3, %v7715_v58  ;;  %v10011_v8 = vld [vmem:[#allocation34_spill] sm:$0xff] }
 0x21a   : > { %v1173_v36 = vpop.f32.mrf.mxu2 }
 0x21b   : > { %v1207_v39 = vadd.f32 %v1173_v36, %v931_v7  ;;  %v1905_v55 = vpop.f32.mrf.mxu1 }
 0x21c   : > { %v1448_v23 = vpop.f32.mrf.mxu3  ;;  %v2001_v4 = vadd.f32 %v1905_v55, %v10009_v50  ;;  %v2328_v50 = vld [vmem:[#allocation2 + $0x111] sm:$0xff] }
 0x21d   : > { %v1482_v24 = vadd.f32 %v1448_v23, %v1207_v39 }
 0x21e   : > { %6543 = vmatmul.msk.f32.gmra.mxu1 %vm415_vm3, %v7685_v41  ;;  %v2734_v59 = vpop.f32.mrf.mxu0  ;;  %v2326_v41 = vld [vmem:[#allocation2 + $0xf9] sm:$0xff] }
 0x21f   : > { %v8015_v47 = vadd.f32 %v1723_v11, %v1482_v24  ;;  %6576 = vmatmul.msk.f32.gmra.mxu2 %vm415_vm3, %v7687_v10 }
 0x221   : > { %6609 = vmatmul.msk.f32.gmra.mxu3 %vm415_vm3, %v2325_v30  ;;  %6643 = vmatmul.msk.f32.gmra.mxu0 %vm415_vm3, %v7730_v49 }
 0x222   : > { %v2181_v13 = vpop.f32.mrf.mxu2 }
 0x223   : > { %v2277_v42 = vadd.f32 %v2181_v13, %v2001_v4  ;;  %v1908_v26 = vpop.f32.mrf.mxu1 }
 0x224   : > { %v2456_v1 = vpop.f32.mrf.mxu3  ;;  %v2002_v44 = vadd.f32 %v1908_v26, %v10010_v57 }
 0x225   : > { %v2552_v15 = vadd.f32 %v2456_v1, %v2277_v42  ;;  %v10012_v42 = vld [vmem:[#allocation35_spill] sm:$0xff] }
 0x226   : > { %6544 = vmatmul.msk.f32.gmra.mxu1 %vm415_vm3, %v7700_v29  ;;  %v2737_v10 = vpop.f32.mrf.mxu0 }
 0x227   : > { %v2827_v48 = vadd.f32 %v2731_v46, %v2552_v15  ;;  %6577 = vmatmul.msk.f32.gmra.mxu2 %vm415_vm3, %v7702_v38  ;;  %v2327_v38 = vld [vmem:[#allocation2 + $0x109] sm:$0xff] }
 0x229   : > { %6610 = vmatmul.msk.f32.gmra.mxu3 %vm415_vm3, %v2326_v41  ;;  %2861 = vst.msk [vmem:[%s8030_s23] sm:$0xff] %vm415_vm3, %v2827_v48  ;;  %6644 = vmatmul.msk.f32.gmra.mxu0 %vm415_vm3, %v7745_v54  ;;  %v2967_v43 = vmul.f32 %v2827_v48, %v2827_v48  ;;  %v2894_v22 = vsel %vm415_vm3, %v2827_v48, 0.0 }
 0x22a   : > { %v2184_v11 = vpop.f32.mrf.mxu2 }
 0x22b   : > { %v2278_v29 = vadd.f32 %v2184_v11, %v2002_v44  ;;  %v1911_v51 = vpop.f32.mrf.mxu1 }
 0x22c   : > { %v2459_v62 = vpop.f32.mrf.mxu3  ;;  %v2003_v46 = vadd.f32 %v1911_v51, %v10011_v8  ;;  %v10014_v8 = vld [vmem:[#allocation41_spill] sm:$0xff] }
 0x22d   : > { %v2553_v56 = vadd.f32 %v2459_v62, %v2278_v29  ;;  %v2329_v29 = vld [vmem:[#allocation2 + $0x121] sm:$0xff] }
 0x22e   : > { %6545 = vmatmul.msk.f32.gmra.mxu1 %vm415_vm3, %v7715_v58  ;;  %v2740_v32 = vpop.f32.mrf.mxu0  ;;  %v2999_v58 = vsel %vm415_vm3, %v2967_v43, 0.0 }
 0x22f   : > { %v2828_v12 = vadd.f32 %v2734_v59, %v2553_v56  ;;  %6578 = vmatmul.msk.f32.gmra.mxu2 %vm415_vm3, %v7717_v45  ;;  %v10013_v56 = vld [vmem:[#allocation36_spill] sm:$0xff] }
 0x231   : > { %6611 = vmatmul.msk.f32.gmra.mxu3 %vm415_vm3, %v2327_v38  ;;  %2862 = vst.msk [vmem:[%s8030_s23 + $0x8] sm:$0xff] %vm415_vm3, %v2828_v12  ;;  %v2895_v52 = vsel %vm415_vm3, %v2828_v12, 0.0  ;;  %v2968_v7 = vmul.f32 %v2828_v12, %v2828_v12  ;;  %6645 = vmatmul.msk.f32.gmra.mxu0 %vm415_vm3, %v7760_v61 }
 0x232   : > { %v2896_v36 = vadd.f32 %v2895_v52, %v2894_v22  ;;  %v2187_v39 = vpop.f32.mrf.mxu2 }
 0x233   : > { %v3000_v45 = vsel %vm415_vm3, %v2968_v7, 0.0  ;;  %v2279_v23 = vadd.f32 %v2187_v39, %v2003_v46  ;;  %v1914_v55 = vpop.f32.mrf.mxu1 }
 0x234   : > { %v2462_v24 = vpop.f32.mrf.mxu3  ;;  %v3001_v30 = vadd.f32 %v3000_v45, %v2999_v58  ;;  %v2004_v26 = vadd.f32 %v1914_v55, %v10012_v42  ;;  %v10015_v58 = vld [vmem:[#allocation38_spill] sm:$0xff]  ;;  %v10016_v55 = vld [vmem:[#allocation37_spill] sm:$0xff] }
 0x235   : > { %v2554_v59 = vadd.f32 %v2462_v24, %v2279_v23  ;;  %v2606_v23 = vld [vmem:[#allocation2 + $0x13a] sm:$0xff] }
 0x236   : > { %6546 = vmatmul.msk.f32.gmra.mxu1 %vm415_vm3, %v7730_v49  ;;  %v2743_v13 = vpop.f32.mrf.mxu0 }
 0x237   : > { %v2829_v4 = vadd.f32 %v2737_v10, %v2554_v59  ;;  %6579 = vmatmul.msk.f32.gmra.mxu2 %vm415_vm3, %v7732_v17 }
 0x239   : > { %6612 = vmatmul.msk.f32.gmra.mxu3 %vm415_vm3, %v2328_v50  ;;  %2863 = vst.msk [vmem:[%s8030_s23 + $0x10] sm:$0xff] %vm415_vm3, %v2829_v4  ;;  %v2897_v1 = vsel %vm415_vm3, %v2829_v4, 0.0  ;;  %v2969_v15 = vmul.f32 %v2829_v4, %v2829_v4  ;;  %6646 = vmatmul.msk.f32.gmra.mxu0 %vm415_vm3, %v7775_v2 }
 0x23a   : > { %v2898_v41 = vadd.f32 %v2897_v1, %v2896_v36  ;;  %v2190_v48 = vpop.f32.mrf.mxu2  ;;  %v2330_v36 = vld [vmem:[#allocation2 + $0x129] sm:$0xff] }
 0x23b   : > { %v3002_v49 = vsel %vm415_vm3, %v2969_v15, 0.0  ;;  %v2280_v10 = vadd.f32 %v2190_v48, %v2004_v26  ;;  %v1917_v17 = vpop.f32.mrf.mxu1  ;;  %v1780_v1 = vld [vmem:[#allocation2 + $0x122] sm:$0xff] }
 0x23c   : > { %v2465_v57 = vpop.f32.mrf.mxu3  ;;  %v3003_v44 = vadd.f32 %v3002_v49, %v3001_v30  ;;  %v2005_v2 = vadd.f32 %v1917_v17, %v10013_v56  ;;  %v2331_v49 = vld [vmem:[#allocation2 + $0x139] sm:$0xff] }
 0x23d   : > { %v2555_v11 = vadd.f32 %v2465_v57, %v2280_v10  ;;  %v2607_v57 = vld [vmem:[#allocation2 + $0x142] sm:$0xff] }
 0x23e   : > { %6547 = vmatmul.msk.f32.gmra.mxu1 %vm415_vm3, %v7745_v54  ;;  %v2746_v62 = vpop.f32.mrf.mxu0 }
 0x23f   : > { %v2830_v51 = vadd.f32 %v2740_v32, %v2555_v11  ;;  %6580 = vmatmul.msk.f32.gmra.mxu2 %vm415_vm3, %v7747_v34 }
 0x241   : > { %6613 = vmatmul.msk.f32.gmra.mxu3 %vm415_vm3, %v2329_v29  ;;  %2864 = vst.msk [vmem:[%s8030_s23 + $0x18] sm:$0xff] %vm415_vm3, %v2830_v51  ;;  %v2899_v38 = vsel %vm415_vm3, %v2830_v51, 0.0  ;;  %v2970_v43 = vmul.f32 %v2830_v51, %v2830_v51  ;;  %6647 = vmatmul.msk.f32.gmra.mxu0 %vm415_vm3, %v10014_v8 }
 0x242   : > { %v2900_v12 = vadd.f32 %v2899_v38, %v2898_v41  ;;  %v2193_v22 = vpop.f32.mrf.mxu2  ;;  %v2056_v41 = vld [vmem:[#allocation2 + $0x138] sm:$0xff] }
 0x243   : > { %v3004_v54 = vsel %vm415_vm3, %v2970_v43, 0.0  ;;  %v2281_v32 = vadd.f32 %v2193_v22, %v2005_v2  ;;  %v1920_v34 = vpop.f32.mrf.mxu1  ;;  %v1781_v22 = vld [vmem:[#allocation2 + $0x12a] sm:$0xff] }
 0x244   : > { %v2468_v46 = vpop.f32.mrf.mxu3  ;;  %v3005_v52 = vadd.f32 %v3004_v54, %v3003_v44  ;;  %v2006_v24 = vadd.f32 %v1920_v34, %v10016_v55  ;;  %v10017_v44 = vld [vmem:[#allocation39_spill] sm:$0xff] }
 0x245   : > { %v2556_v7 = vadd.f32 %v2468_v46, %v2281_v32  ;;  %v2057_v54 = vld [vmem:[#allocation2 + $0x140] sm:$0xff] }
 0x246   : > { %6548 = vmatmul.msk.f32.gmra.mxu1 %vm415_vm3, %v7760_v61  ;;  %v2749_v45 = vpop.f32.mrf.mxu0  ;;  %v2332_v34 = vld [vmem:[#allocation2 + $0x141] sm:$0xff] }
 0x247   : > { %v2831_v39 = vadd.f32 %v2743_v13, %v2556_v7  ;;  %6581 = vmatmul.msk.f32.gmra.mxu2 %vm415_vm3, %v10015_v58  ;;  %v2608_v7 = vld [vmem:[#allocation2 + $0x152] sm:$0xff] }
 0x249   : > { %6614 = vmatmul.msk.f32.gmra.mxu3 %vm415_vm3, %v2330_v36  ;;  %2865 = vst.msk [vmem:[%s8030_s23 + $0x20] sm:$0xff] %vm415_vm3, %v2831_v39  ;;  %v2901_v30 = vsel %vm415_vm3, %v2831_v39, 0.0  ;;  %v2971_v59 = vmul.f32 %v2831_v39, %v2831_v39  ;;  %6648 = vmatmul.msk.f32.gmra.mxu0 %vm415_vm3, %v2606_v23  ;;  %v10018_v36 = vld [vmem:[#allocation40_spill] sm:$0xff] }
 0x24a   : > { %v2902_v50 = vadd.f32 %v2901_v30, %v2900_v12  ;;  %v2196_v4 = vpop.f32.mrf.mxu2 }
 0x24b   : > { %v3006_v61 = vsel %vm415_vm3, %v2971_v59, 0.0  ;;  %v2282_v13 = vadd.f32 %v2196_v4, %v2006_v24  ;;  %v1923_v42 = vpop.f32.mrf.mxu1 }
 0x24c   : > { %v2471_v26 = vpop.f32.mrf.mxu3  ;;  %v3007_v15 = vadd.f32 %v3006_v61, %v3005_v52  ;;  %v2007_v11 = vadd.f32 %v1923_v42, %v10017_v44 }
 0x24d   : > { %v2557_v48 = vadd.f32 %v2471_v26, %v2282_v13  ;;  %v2058_v13 = vld [vmem:[#allocation2 + $0x150] sm:$0xff] }
 0x24e   : > { %6549 = vmatmul.msk.f32.gmra.mxu1 %vm415_vm3, %v1780_v1  ;;  %v2752_v17 = vpop.f32.mrf.mxu0  ;;  %v2333_v26 = vld [vmem:[#allocation2 + $0x151] sm:$0xff] }
 0x24f   : > { %v2832_v10 = vadd.f32 %v2746_v62, %v2557_v48  ;;  %6582 = vmatmul.msk.f32.gmra.mxu2 %vm415_vm3, %v2056_v41  ;;  %v2609_v41 = vld [vmem:[#allocation2 + $0x15a] sm:$0xff] }
 0x250   : > { %v10019_v48 = vld [vmem:[#allocation42_spill] sm:$0xff] }
 0x251   : > { %6615 = vmatmul.msk.f32.gmra.mxu3 %vm415_vm3, %v2331_v49  ;;  %2866 = vst.msk [vmem:[%s8030_s23 + $0x28] sm:$0xff] %vm415_vm3, %v2832_v10  ;;  %v2903_v29 = vsel %vm415_vm3, %v2832_v10, 0.0  ;;  %v2972_v51 = vmul.f32 %v2832_v10, %v2832_v10  ;;  %6649 = vmatmul.msk.f32.gmra.mxu0 %vm415_vm3, %v2607_v57 }
 0x252   : > { %v2904_v56 = vadd.f32 %v2903_v29, %v2902_v50  ;;  %v2199_v2 = vpop.f32.mrf.mxu2 }
 0x253   : > { %v3008_v38 = vsel %vm415_vm3, %v2972_v51, 0.0  ;;  %v2283_v62 = vadd.f32 %v2199_v2, %v2007_v11  ;;  %v1926_v43 = vpop.f32.mrf.mxu1 }
 0x254   : > { %v2474_v12 = vpop.f32.mrf.mxu3  ;;  %v3009_v8 = vadd.f32 %v3008_v38, %v3007_v15  ;;  %v2008_v39 = vadd.f32 %v1926_v43, %v10018_v36  ;;  %v2059_v38 = vld [vmem:[#allocation2 + $0x158] sm:$0xff] }
 0x255   : > { %v2558_v32 = vadd.f32 %v2474_v12, %v2283_v62  ;;  %v2334_v43 = vld [vmem:[#allocation2 + $0x159] sm:$0xff] }
 0x256   : > { %6550 = vmatmul.msk.f32.gmra.mxu1 %vm415_vm3, %v1781_v22  ;;  %v2755_v52 = vpop.f32.mrf.mxu0 }
 0x257   : > { %v2833_v46 = vadd.f32 %v2749_v45, %v2558_v32  ;;  %6583 = vmatmul.msk.f32.gmra.mxu2 %vm415_vm3, %v2057_v54 }
 0x259   : > { %6616 = vmatmul.msk.f32.gmra.mxu3 %vm415_vm3, %v2332_v34  ;;  %2867 = vst.msk [vmem:[%s8030_s23 + $0x30] sm:$0xff] %vm415_vm3, %v2833_v46  ;;  %v2905_v58 = vsel %vm415_vm3, %v2833_v46, 0.0  ;;  %v2973_v55 = vmul.f32 %v2833_v46, %v2833_v46  ;;  %6650 = vmatmul.msk.f32.gmra.mxu0 %vm415_vm3, %v2608_v7 }
 0x25a   : > { %v2906_v24 = vadd.f32 %v2905_v58, %v2904_v56  ;;  %v2202_v30 = vpop.f32.mrf.mxu2 }
 0x25b   : > { %v3010_v45 = vsel %vm415_vm3, %v2973_v55, 0.0  ;;  %v2284_v59 = vadd.f32 %v2202_v30, %v2008_v39  ;;  %v1929_v50 = vpop.f32.mrf.mxu1 }
 0x25c   : > { %v2477_v4 = vpop.f32.mrf.mxu3  ;;  %v3011_v61 = vadd.f32 %v3010_v45, %v3009_v8  ;;  %v2009_v49 = vadd.f32 %v1929_v50, %v10019_v48  ;;  %v2610_v8 = vld [vmem:[#allocation2 + $0x16a] sm:$0xff]  ;;  %v2611_v50 = vld [vmem:[#allocation2 + $0x172] sm:$0xff] }
 0x25d   : > { %v2559_v42 = vadd.f32 %v2477_v4, %v2284_v59  ;;  %v2335_v45 = vld [vmem:[#allocation2 + $0x169] sm:$0xff] }
 0x25e   : > { %6551 = vmatmul.msk.f32.gmra.mxu1 %vm415_vm3, %v2606_v23  ;;  %v2758_v15 = vpop.f32.mrf.mxu0 }
 0x25f   : > { %v2834_v1 = vadd.f32 %v2752_v17, %v2559_v42  ;;  %6584 = vmatmul.msk.f32.gmra.mxu2 %vm415_vm3, %v2058_v13 }
 0x261   : > { %6617 = vmatmul.msk.f32.gmra.mxu3 %vm415_vm3, %v2333_v26  ;;  %2868 = vst.msk [vmem:[%s8030_s23 + $0x38] sm:$0xff] %vm415_vm3, %v2834_v1  ;;  %v2907_v10 = vsel %vm415_vm3, %v2834_v1, 0.0  ;;  %v2974_v44 = vmul.f32 %v2834_v1, %v2834_v1  ;;  %6651 = vmatmul.msk.f32.gmra.mxu0 %vm415_vm3, %v2609_v41 }
 0x262   : > { %v2908_v11 = vadd.f32 %v2907_v10, %v2906_v24  ;;  %v2205_v29 = vpop.f32.mrf.mxu2  ;;  %v2060_v24 = vld [vmem:[#allocation2 + $0x168] sm:$0xff]  ;;  %v2061_v10 = vld [vmem:[#allocation2 + $0x170] sm:$0xff] }
 0x263   : > { %v3012_v23 = vsel %vm415_vm3, %v2974_v44, 0.0  ;;  %v2285_v17 = vadd.f32 %v2205_v29, %v2009_v49  ;;  %v1932_v51 = vpop.f32.mrf.mxu1 }
 0x264   : > { %v2480_v56 = vpop.f32.mrf.mxu3  ;;  %v3013_v2 = vadd.f32 %v3012_v23, %v3011_v61  ;;  %v2010_v54 = vadd.f32 %v1932_v51, %v7802_v40  ;;  %v2612_v23 = vld [vmem:[#allocation2 + $0x182] sm:$0xff] }
 0x265   : > { %v2560_v62 = vadd.f32 %v2480_v56, %v2285_v17 }
 0x266   : > { %6552 = vmatmul.msk.f32.gmra.mxu1 %vm415_vm3, %v2607_v57  ;;  %v2761_v22 = vpop.f32.mrf.mxu0 }
 0x267   : > { %v2835_v12 = vadd.f32 %v2755_v52, %v2560_v62  ;;  %6585 = vmatmul.msk.f32.gmra.mxu2 %vm415_vm3, %v2059_v38 }
 0x269   : > { %6618 = vmatmul.msk.f32.gmra.mxu3 %vm415_vm3, %v2334_v43  ;;  %2869 = vst.msk [vmem:[%s8030_s23 + $0x40] sm:$0xff] %vm415_vm3, %v2835_v12  ;;  %v2909_v32 = vsel %vm415_vm3, %v2835_v12, 0.0  ;;  %v2975_v34 = vmul.f32 %v2835_v12, %v2835_v12  ;;  %6652 = vmatmul.msk.f32.gmra.mxu0 %vm415_vm3, %v2610_v8 }
 0x26a   : > { %v2910_v46 = vadd.f32 %v2909_v32, %v2908_v11  ;;  %v2208_v36 = vpop.f32.mrf.mxu2  ;;  %v2336_v11 = vld [vmem:[#allocation2 + $0x171] sm:$0xff] }
 0x26b   : > { %v3014_v57 = vsel %vm415_vm3, %v2975_v34, 0.0  ;;  %v2286_v52 = vadd.f32 %v2208_v36, %v2010_v54  ;;  %v1935_v39 = vpop.f32.mrf.mxu1  ;;  %v2062_v54 = vld [vmem:[#allocation2 + $0x180] sm:$0xff]  ;;  %v2613_v36 = vld [vmem:[#allocation2 + $0x18a] sm:$0xff] }
 0x26c   : > { %v2483_v58 = vpop.f32.mrf.mxu3  ;;  %v3015_v55 = vadd.f32 %v3014_v57, %v3013_v2  ;;  %v2011_v4 = vadd.f32 %v1935_v39, %v7812_v37  ;;  %v2337_v34 = vld [vmem:[#allocation2 + $0x181] sm:$0xff] }
 0x26d   : > { %v2561_v30 = vadd.f32 %v2483_v58, %v2286_v52 }
 0x26e   : > { %6553 = vmatmul.msk.f32.gmra.mxu1 %vm415_vm3, %v2608_v7  ;;  %v2764_v59 = vpop.f32.mrf.mxu0 }
 0x26f   : > { %v2836_v40 = vadd.f32 %v2758_v15, %v2561_v30  ;;  %6586 = vmatmul.msk.f32.gmra.mxu2 %vm415_vm3, %v2060_v24 }
 0x271   : > { %6619 = vmatmul.msk.f32.gmra.mxu3 %vm415_vm3, %v2335_v45  ;;  %2870 = vst.msk [vmem:[%s8030_s23 + $0x48] sm:$0xff] %vm415_vm3, %v2836_v40  ;;  %v2911_v61 = vsel %vm415_vm3, %v2836_v40, 0.0  ;;  %v2976_v13 = vmul.f32 %v2836_v40, %v2836_v40  ;;  %6653 = vmatmul.msk.f32.gmra.mxu0 %vm415_vm3, %v2611_v50 }
 0x272   : > { %v2912_v42 = vadd.f32 %v2911_v61, %v2910_v46  ;;  %v2211_v26 = vpop.f32.mrf.mxu2  ;;  %v2338_v61 = vld [vmem:[#allocation2 + $0x189] sm:$0xff] }
 0x273   : > { %v3016_v7 = vsel %vm415_vm3, %v2976_v13, 0.0  ;;  %v2287_v1 = vadd.f32 %v2211_v26, %v2011_v4  ;;  %v1938_v15 = vpop.f32.mrf.mxu1 }
 0x274   : > { %v2486_v48 = vpop.f32.mrf.mxu3  ;;  %v3017_v49 = vadd.f32 %v3016_v7, %v3015_v55  ;;  %v2012_v17 = vadd.f32 %v1938_v15, %v7820_v0 }
 0x275   : > { %v2562_v44 = vadd.f32 %v2486_v48, %v2287_v1 }
 0x276   : > { %6554 = vmatmul.msk.f32.gmra.mxu1 %vm415_vm3, %v2609_v41  ;;  %v2767_v29 = vpop.f32.mrf.mxu0 }
 0x277   : > { %v2837_v37 = vadd.f32 %v2761_v22, %v2562_v44  ;;  %6587 = vmatmul.msk.f32.gmra.mxu2 %vm415_vm3, %v2061_v10 }
 0x279   : > { %6620 = vmatmul.msk.f32.gmra.mxu3 %vm415_vm3, %v2336_v11  ;;  %2871 = vst.msk [vmem:[%s8030_s23 + $0x50] sm:$0xff] %vm415_vm3, %v2837_v37  ;;  %v2913_v51 = vsel %vm415_vm3, %v2837_v37, 0.0  ;;  %v2977_v56 = vmul.f32 %v2837_v37, %v2837_v37  ;;  %6654 = vmatmul.msk.f32.gmra.mxu0 %vm415_vm3, %v2612_v23  ;;  %v2064_v37 = vld [vmem:[#allocation2 + $0x198] sm:$0xff] }
 0x27a   : > { %v2914_v2 = vadd.f32 %v2913_v51, %v2912_v42  ;;  %v2214_v38 = vpop.f32.mrf.mxu2  ;;  %v2614_v42 = vld [vmem:[#allocation2 + $0x19a] sm:$0xff] }
 0x27b   : > { %v3018_v41 = vsel %vm415_vm3, %v2977_v56, 0.0  ;;  %v2288_v62 = vadd.f32 %v2214_v38, %v2012_v17  ;;  %v1941_v43 = vpop.f32.mrf.mxu1  ;;  %v2339_v17 = vld [vmem:[#allocation2 + $0x199] sm:$0xff]  ;;  %v2615_v56 = vld [vmem:[#allocation2 + $0x1a2] sm:$0xff] }
 0x27c   : > { %v2489_v12 = vpop.f32.mrf.mxu3  ;;  %v3019_v22 = vadd.f32 %v3018_v41, %v3017_v49  ;;  %v2013_v57 = vadd.f32 %v1941_v43, %v7828_v33 }
 0x27d   : > { %v2563_v32 = vadd.f32 %v2489_v12, %v2288_v62 }
 0x27e   : > { %6555 = vmatmul.msk.f32.gmra.mxu1 %vm415_vm3, %v2610_v8  ;;  %v2770_v46 = vpop.f32.mrf.mxu0 }
 0x27f   : > { %v2838_v0 = vadd.f32 %v2764_v59, %v2563_v32  ;;  %6588 = vmatmul.msk.f32.gmra.mxu2 %vm415_vm3, %v2062_v54  ;;  %v2063_v59 = vld [vmem:[#allocation2 + $0x188] sm:$0xff] }
 0x281   : > { %6621 = vmatmul.msk.f32.gmra.mxu3 %vm415_vm3, %v2337_v34  ;;  %2872 = vst.msk [vmem:[%s8030_s23 + $0x58] sm:$0xff] %vm415_vm3, %v2838_v0  ;;  %v2915_v52 = vsel %vm415_vm3, %v2838_v0, 0.0  ;;  %v2978_v39 = vmul.f32 %v2838_v0, %v2838_v0  ;;  %6655 = vmatmul.msk.f32.gmra.mxu0 %vm415_vm3, %v2613_v36  ;;  %v2065_v34 = vld [vmem:[#allocation2 + $0x1a0] sm:$0xff] }
 0x282   : > { %v2916_v58 = vadd.f32 %v2915_v52, %v2914_v2  ;;  %v2217_v55 = vpop.f32.mrf.mxu2 }
 0x283   : > { %v3020_v8 = vsel %vm415_vm3, %v2978_v39, 0.0  ;;  %v2289_v24 = vadd.f32 %v2217_v55, %v2013_v57  ;;  %v1944_v30 = vpop.f32.mrf.mxu1 }
 0x284   : > { %v2492_v45 = vpop.f32.mrf.mxu3  ;;  %v3021_v40 = vadd.f32 %v3020_v8, %v3019_v22  ;;  %v2014_v26 = vadd.f32 %v1944_v30, %v7835_v19 }
 0x285   : > { %v2564_v4 = vadd.f32 %v2492_v45, %v2289_v24 }
 0x286   : > { %6556 = vmatmul.msk.f32.gmra.mxu1 %vm415_vm3, %v2611_v50  ;;  %v2773_v13 = vpop.f32.mrf.mxu0 }
 0x287   : > { %v2839_v33 = vadd.f32 %v2767_v29, %v2564_v4  ;;  %6589 = vmatmul.msk.f32.gmra.mxu2 %vm415_vm3, %v2063_v59 }
 0x289   : > { %6622 = vmatmul.msk.f32.gmra.mxu3 %vm415_vm3, %v2338_v61  ;;  %2873 = vst.msk [vmem:[%s8030_s23 + $0x60] sm:$0xff] %vm415_vm3, %v2839_v33  ;;  %v2917_v7 = vsel %vm415_vm3, %v2839_v33, 0.0  ;;  %v2979_v1 = vmul.f32 %v2839_v33, %v2839_v33  ;;  %6656 = vmatmul.msk.f32.gmra.mxu0 %vm415_vm3, %v2614_v42 }
 0x28a   : > { %v2918_v15 = vadd.f32 %v2917_v7, %v2916_v58  ;;  %v2220_v48 = vpop.f32.mrf.mxu2 }
 0x28b   : > { %v3022_v50 = vsel %vm415_vm3, %v2979_v1, 0.0  ;;  %v2290_v49 = vadd.f32 %v2220_v48, %v2014_v26  ;;  %v1947_v10 = vpop.f32.mrf.mxu1 }
 0x28c   : > { %v2495_v44 = vpop.f32.mrf.mxu3  ;;  %v3023_v11 = vadd.f32 %v3022_v50, %v3021_v40  ;;  %v2015_v2 = vadd.f32 %v1947_v10, %v7842_v5 }
 0x28d   : > { %v2565_v29 = vadd.f32 %v2495_v44, %v2290_v49 }
 0x28e   : > { %6557 = vmatmul.msk.f32.gmra.mxu1 %vm415_vm3, %v2612_v23  ;;  %v2776_v51 = vpop.f32.mrf.mxu0 }
 0x28f   : > { %v2840_v19 = vadd.f32 %v2770_v46, %v2565_v29  ;;  %6590 = vmatmul.msk.f32.gmra.mxu2 %vm415_vm3, %v2064_v37  ;;  %v2340_v46 = vld [vmem:[#allocation2 + $0x1a1] sm:$0xff] }
 0x291   : > { %6623 = vmatmul.msk.f32.gmra.mxu3 %vm415_vm3, %v2339_v17  ;;  %2874 = vst.msk [vmem:[%s8030_s23 + $0x68] sm:$0xff] %vm415_vm3, %v2840_v19  ;;  %v2919_v38 = vsel %vm415_vm3, %v2840_v19, 0.0  ;;  %v2980_v41 = vmul.f32 %v2840_v19, %v2840_v19  ;;  %6657 = vmatmul.msk.f32.gmra.mxu0 %vm415_vm3, %v2615_v56 }
 0x292   : > { %v2920_v62 = vadd.f32 %v2919_v38, %v2918_v15  ;;  %v2223_v43 = vpop.f32.mrf.mxu2 }
 0x293   : > { %v3024_v23 = vsel %vm415_vm3, %v2980_v41, 0.0  ;;  %v2291_v12 = vadd.f32 %v2223_v43, %v2015_v2  ;;  %v1950_v22 = vpop.f32.mrf.mxu1 }
 0x294   : > { %v2498_v54 = vpop.f32.mrf.mxu3  ;;  %v3025_v32 = vadd.f32 %v3024_v23, %v3023_v11  ;;  %v2016_v52 = vadd.f32 %v1950_v22, %v7851_v31 }
 0x295   : > { %v2566_v0 = vadd.f32 %v2498_v54, %v2291_v12 }
 0x296   : > { %6558 = vmatmul.msk.f32.gmra.mxu1 %vm415_vm3, %v2613_v36  ;;  %v2779_v57 = vpop.f32.mrf.mxu0 }
 0x297   : > { %v2841_v5 = vadd.f32 %v2773_v13, %v2566_v0  ;;  %6591 = vmatmul.msk.f32.gmra.mxu2 %vm415_vm3, %v2065_v34 }
 0x299   : > { %6624 = vmatmul.msk.f32.gmra.mxu3 %vm415_vm3, %v2340_v46  ;;  %2875 = vst.msk [vmem:[%s8030_s23 + $0x70] sm:$0xff] %vm415_vm3, %v2841_v5  ;;  %v2921_v39 = vsel %vm415_vm3, %v2841_v5, 0.0  ;;  %v2981_v58 = vmul.f32 %v2841_v5, %v2841_v5 }
 0x29a   : > { %v2922_v55 = vadd.f32 %v2921_v39, %v2920_v62  ;;  %v2226_v8 = vpop.f32.mrf.mxu2 }
 0x29b   : > { %v3026_v24 = vsel %vm415_vm3, %v2981_v58, 0.0  ;;  %v2292_v30 = vadd.f32 %v2226_v8, %v2016_v52  ;;  %v1953_v36 = vpop.f32.mrf.mxu1 }
 0x29c   : > { %v2501_v45 = vpop.f32.mrf.mxu3  ;;  %v3027_v40 = vadd.f32 %v3026_v24, %v3025_v32  ;;  %v2017_v33 = vadd.f32 %v1953_v36, %v7862_v14 }
 0x29d   : > { %v2567_v59 = vadd.f32 %v2501_v45, %v2292_v30 }
 0x29e   : > { %v2782_v61 = vpop.f32.mrf.mxu0 }
 0x29f   : > { %v2842_v4 = vadd.f32 %v2776_v51, %v2567_v59 }
 0x2a1   : > { %2876 = vst.msk [vmem:[%s8030_s23 + $0x78] sm:$0xff] %vm415_vm3, %v2842_v4  ;;  %v2923_v31 = vsel %vm415_vm3, %v2842_v4, 0.0  ;;  %v2982_v13 = vmul.f32 %v2842_v4, %v2842_v4 }
 0x2a2   : > { %v2924_v42 = vadd.f32 %v2923_v31, %v2922_v55  ;;  %v2229_v26 = vpop.f32.mrf.mxu2 }
 0x2a3   : > { %v3028_v7 = vsel %vm415_vm3, %v2982_v13, 0.0  ;;  %v2293_v1 = vadd.f32 %v2229_v26, %v2017_v33  ;;  %v1956_v15 = vpop.f32.mrf.mxu1 }
 0x2a4   : > { %v2504_v48 = vpop.f32.mrf.mxu3  ;;  %v3029_v50 = vadd.f32 %v3028_v7, %v3027_v40  ;;  %v2018_v11 = vadd.f32 %v1956_v15, %v7873_v16 }
 0x2a5   : > { %v2568_v49 = vadd.f32 %v2504_v48, %v2293_v1 }
 0x2a6   : > { %v2785_v44 = vpop.f32.mrf.mxu0 }
 0x2a7   : > { %v2843_v10 = vadd.f32 %v2779_v57, %v2568_v49 }
 0x2a9   : > { %2877 = vst.msk [vmem:[%s8030_s23 + $0x80] sm:$0xff] %vm415_vm3, %v2843_v10  ;;  %v2925_v14 = vsel %vm415_vm3, %v2843_v10, 0.0  ;;  %v2983_v37 = vmul.f32 %v2843_v10, %v2843_v10 }
 0x2aa   : > { %v2926_v29 = vadd.f32 %v2925_v14, %v2924_v42  ;;  %v2232_v17 = vpop.f32.mrf.mxu2 }
 0x2ab   : > { %v3030_v19 = vsel %vm415_vm3, %v2983_v37, 0.0  ;;  %v2294_v51 = vadd.f32 %v2232_v17, %v2018_v11  ;;  %v1959_v56 = vpop.f32.mrf.mxu1 }
 0x2ac   : > { %v2507_v2 = vpop.f32.mrf.mxu3  ;;  %v3031_v38 = vadd.f32 %v3030_v19, %v3029_v50  ;;  %v2019_v23 = vadd.f32 %v1959_v56, %v7884_v20 }
 0x2ad   : > { %v2569_v41 = vadd.f32 %v2507_v2, %v2294_v51 }
 0x2ae   : > { %v2788_v43 = vpop.f32.mrf.mxu0 }
 0x2af   : > { %v2844_v62 = vadd.f32 %v2782_v61, %v2569_v41 }
 0x2b1   : > { %2878 = vst.msk [vmem:[%s8030_s23 + $0x88] sm:$0xff] %vm415_vm3, %v2844_v62  ;;  %v2927_v16 = vsel %vm415_vm3, %v2844_v62, 0.0  ;;  %v2984_v12 = vmul.f32 %v2844_v62, %v2844_v62 }
 0x2b2   : > { %v2928_v22 = vadd.f32 %v2927_v16, %v2926_v29  ;;  %v2235_v54 = vpop.f32.mrf.mxu2 }
 0x2b3   : > { %v3032_v32 = vsel %vm415_vm3, %v2984_v12, 0.0  ;;  %v2295_v34 = vadd.f32 %v2235_v54, %v2019_v23  ;;  %v1962_v0 = vpop.f32.mrf.mxu1 }
 0x2b4   : > { %v2510_v46 = vpop.f32.mrf.mxu3  ;;  %v3033_v5 = vadd.f32 %v3032_v32, %v3031_v38  ;;  %v2020_v58 = vadd.f32 %v1962_v0, %v7895_v53 }
 0x2b5   : > { %v2570_v57 = vadd.f32 %v2510_v46, %v2295_v34 }
 0x2b6   : > { %v2791_v39 = vpop.f32.mrf.mxu0 }
 0x2b7   : > { %v2845_v52 = vadd.f32 %v2785_v44, %v2570_v57 }
 0x2b9   : > { %2879 = vst.msk [vmem:[%s8030_s23 + $0x90] sm:$0xff] %vm415_vm3, %v2845_v52  ;;  %v2929_v20 = vsel %vm415_vm3, %v2845_v52, 0.0  ;;  %v2985_v55 = vmul.f32 %v2845_v52, %v2845_v52 }
 0x2ba   : > { %v2930_v8 = vadd.f32 %v2929_v20, %v2928_v22  ;;  %v2238_v24 = vpop.f32.mrf.mxu2 }
 0x2bb   : > { %v3034_v30 = vsel %vm415_vm3, %v2985_v55, 0.0  ;;  %v2296_v36 = vadd.f32 %v2238_v24, %v2020_v58  ;;  %v1965_v45 = vpop.f32.mrf.mxu1 }
 0x2bc   : > { %v2513_v40 = vpop.f32.mrf.mxu3  ;;  %v3035_v59 = vadd.f32 %v3034_v30, %v3033_v5  ;;  %v2021_v31 = vadd.f32 %v1965_v45, %v7905_v25 }
 0x2bd   : > { %v2571_v4 = vadd.f32 %v2513_v40, %v2296_v36 }
 0x2be   : > { %v2794_v33 = vpop.f32.mrf.mxu0 }
 0x2bf   : > { %v2846_v61 = vadd.f32 %v2788_v43, %v2571_v4 }
 0x2c1   : > { %2880 = vst.msk [vmem:[%s8030_s23 + $0x98] sm:$0xff] %vm415_vm3, %v2846_v61  ;;  %v2931_v53 = vsel %vm415_vm3, %v2846_v61, 0.0  ;;  %v2986_v13 = vmul.f32 %v2846_v61, %v2846_v61 }
 0x2c2   : > { %v2932_v42 = vadd.f32 %v2931_v53, %v2930_v8  ;;  %v2241_v26 = vpop.f32.mrf.mxu2 }
 0x2c3   : > { %v3036_v7 = vsel %vm415_vm3, %v2986_v13, 0.0  ;;  %v2297_v1 = vadd.f32 %v2241_v26, %v2021_v31  ;;  %v1968_v15 = vpop.f32.mrf.mxu1 }
 0x2c4   : > { %v2516_v48 = vpop.f32.mrf.mxu3  ;;  %v3037_v50 = vadd.f32 %v3036_v7, %v3035_v59  ;;  %v2022_v11 = vadd.f32 %v1968_v15, %v7915_v28 }
 0x2c5   : > { %v2572_v49 = vadd.f32 %v2516_v48, %v2297_v1 }
 0x2c6   : > { %v2797_v44 = vpop.f32.mrf.mxu0 }
 0x2c7   : > { %v2847_v10 = vadd.f32 %v2791_v39, %v2572_v49 }
 0x2c9   : > { %2881 = vst.msk [vmem:[%s8030_s23 + $0xa0] sm:$0xff] %vm415_vm3, %v2847_v10  ;;  %v2933_v25 = vsel %vm415_vm3, %v2847_v10, 0.0  ;;  %v2987_v14 = vmul.f32 %v2847_v10, %v2847_v10 }
 0x2ca   : > { %v2934_v37 = vadd.f32 %v2933_v25, %v2932_v42  ;;  %v2244_v29 = vpop.f32.mrf.mxu2 }
 0x2cb   : > { %v3038_v17 = vsel %vm415_vm3, %v2987_v14, 0.0  ;;  %v2298_v19 = vadd.f32 %v2244_v29, %v2022_v11  ;;  %v1971_v51 = vpop.f32.mrf.mxu1 }
 0x2cc   : > { %v2519_v56 = vpop.f32.mrf.mxu3  ;;  %v3039_v2 = vadd.f32 %v3038_v17, %v3037_v50  ;;  %v2023_v43 = vadd.f32 %v1971_v51, %v7925_v27 }
 0x2cd   : > { %v2573_v38 = vadd.f32 %v2519_v56, %v2298_v19 }
 0x2ce   : > { %v2800_v62 = vpop.f32.mrf.mxu0 }
 0x2cf   : > { %v2848_v41 = vadd.f32 %v2794_v33, %v2573_v38 }
 0x2d1   : > { %2882 = vst.msk [vmem:[%s8030_s23 + $0xa8] sm:$0xff] %vm415_vm3, %v2848_v41  ;;  %v2935_v28 = vsel %vm415_vm3, %v2848_v41, 0.0  ;;  %v2988_v23 = vmul.f32 %v2848_v41, %v2848_v41 }
 0x2d2   : > { %v2936_v16 = vadd.f32 %v2935_v28, %v2934_v37  ;;  %v2247_v12 = vpop.f32.mrf.mxu2 }
 0x2d3   : > { %v3040_v22 = vsel %vm415_vm3, %v2988_v23, 0.0  ;;  %v2299_v54 = vadd.f32 %v2247_v12, %v2023_v43  ;;  %v1974_v32 = vpop.f32.mrf.mxu1 }
 0x2d4   : > { %v2522_v34 = vpop.f32.mrf.mxu3  ;;  %v3041_v0 = vadd.f32 %v3040_v22, %v3039_v2  ;;  %v2024_v52 = vadd.f32 %v1974_v32, %v7935_v6 }
 0x2d5   : > { %v2574_v46 = vadd.f32 %v2522_v34, %v2299_v54 }
 0x2d6   : > { %v2803_v57 = vpop.f32.mrf.mxu0 }
 0x2d7   : > { %v2849_v5 = vadd.f32 %v2797_v44, %v2574_v46 }
 0x2d9   : > { %2883 = vst.msk [vmem:[%s8030_s23 + $0xb0] sm:$0xff] %vm415_vm3, %v2849_v5  ;;  %v2937_v27 = vsel %vm415_vm3, %v2849_v5, 0.0  ;;  %v2989_v39 = vmul.f32 %v2849_v5, %v2849_v5 }
 0x2da   : > { %v2938_v58 = vadd.f32 %v2937_v27, %v2936_v16  ;;  %v2250_v20 = vpop.f32.mrf.mxu2 }
 0x2db   : > { %v3042_v55 = vsel %vm415_vm3, %v2989_v39, 0.0  ;;  %v2300_v8 = vadd.f32 %v2250_v20, %v2024_v52  ;;  %v1977_v24 = vpop.f32.mrf.mxu1 }
 0x2dc   : > { %v2525_v30 = vpop.f32.mrf.mxu3  ;;  %v3043_v36 = vadd.f32 %v3042_v55, %v3041_v0  ;;  %v2025_v4 = vadd.f32 %v1977_v24, %v7945_v35 }
 0x2dd   : > { %v2575_v45 = vadd.f32 %v2525_v30, %v2300_v8 }
 0x2de   : > { %v2806_v59 = vpop.f32.mrf.mxu0 }
 0x2df   : > { %v2850_v40 = vadd.f32 %v2800_v62, %v2575_v45 }
 0x2e1   : > { %2884 = vst.msk [vmem:[%s8030_s23 + $0xb8] sm:$0xff] %vm415_vm3, %v2850_v40  ;;  %v2939_v6 = vsel %vm415_vm3, %v2850_v40, 0.0  ;;  %v2990_v61 = vmul.f32 %v2850_v40, %v2850_v40 }
 0x2e2   : > { %v2940_v33 = vadd.f32 %v2939_v6, %v2938_v58  ;;  %v2253_v31 = vpop.f32.mrf.mxu2 }
 0x2e3   : > { %v3044_v53 = vsel %vm415_vm3, %v2990_v61, 0.0  ;;  %v2301_v13 = vadd.f32 %v2253_v31, %v2025_v4  ;;  %v1980_v42 = vpop.f32.mrf.mxu1 }
 0x2e4   : > { %v2528_v26 = vpop.f32.mrf.mxu3  ;;  %v3045_v7 = vadd.f32 %v3044_v53, %v3043_v36  ;;  %v2026_v48 = vadd.f32 %v1980_v42, %v7955_v9 }
 0x2e5   : > { %v2576_v1 = vadd.f32 %v2528_v26, %v2301_v13 }
 0x2e6   : > { %v2809_v44 = vpop.f32.mrf.mxu0 }
 0x2e7   : > { %v2851_v15 = vadd.f32 %v2803_v57, %v2576_v1 }
 0x2e9   : > { %2885 = vst.msk [vmem:[%s8030_s23 + $0xc0] sm:$0xff] %vm415_vm3, %v2851_v15  ;;  %v2941_v35 = vsel %vm415_vm3, %v2851_v15, 0.0  ;;  %v2991_v50 = vmul.f32 %v2851_v15, %v2851_v15 }
 0x2ea   : > { %v2942_v49 = vadd.f32 %v2941_v35, %v2940_v33  ;;  %v2256_v10 = vpop.f32.mrf.mxu2 }
 0x2eb   : > { %v3046_v11 = vsel %vm415_vm3, %v2991_v50, 0.0  ;;  %v2302_v25 = vadd.f32 %v2256_v10, %v2026_v48  ;;  %v1983_v14 = vpop.f32.mrf.mxu1 }
 0x2ec   : > { %v2531_v37 = vpop.f32.mrf.mxu3  ;;  %v3047_v29 = vadd.f32 %v3046_v11, %v3045_v7  ;;  %v2027_v51 = vadd.f32 %v1983_v14, %v7965_v60 }
 0x2ed   : > { %v2577_v17 = vadd.f32 %v2531_v37, %v2302_v25 }
 0x2ee   : > { %v2812_v16 = vpop.f32.mrf.mxu0 }
 0x2ef   : > { %v2852_v19 = vadd.f32 %v2806_v59, %v2577_v17 }
 0x2f1   : > { %2886 = vst.msk [vmem:[%s8030_s23 + $0xc8] sm:$0xff] %vm415_vm3, %v2852_v19  ;;  %v2943_v9 = vsel %vm415_vm3, %v2852_v19, 0.0  ;;  %v2992_v56 = vmul.f32 %v2852_v19, %v2852_v19 }
 0x2f2   : > { %v2944_v2 = vadd.f32 %v2943_v9, %v2942_v49  ;;  %v2259_v38 = vpop.f32.mrf.mxu2 }
 0x2f3   : > { %v3048_v41 = vsel %vm415_vm3, %v2992_v56, 0.0  ;;  %v2303_v62 = vadd.f32 %v2259_v38, %v2027_v51  ;;  %v1986_v43 = vpop.f32.mrf.mxu1 }
 0x2f4   : > { %v2534_v28 = vpop.f32.mrf.mxu3  ;;  %v3049_v23 = vadd.f32 %v3048_v41, %v3047_v29  ;;  %v2028_v54 = vadd.f32 %v1986_v43, %v7975_v21 }
 0x2f5   : > { %v2578_v12 = vadd.f32 %v2534_v28, %v2303_v62 }
 0x2f6   : > { %v2815_v58 = vpop.f32.mrf.mxu0 }
 0x2f7   : > { %v2853_v22 = vadd.f32 %v2809_v44, %v2578_v12 }
 0x2f9   : > { %2887 = vst.msk [vmem:[%s8030_s23 + $0xd0] sm:$0xff] %vm415_vm3, %v2853_v22  ;;  %v2945_v60 = vsel %vm415_vm3, %v2853_v22, 0.0  ;;  %v2993_v32 = vmul.f32 %v2853_v22, %v2853_v22 }
 0x2fa   : > { %v2946_v34 = vadd.f32 %v2945_v60, %v2944_v2  ;;  %v2262_v0 = vpop.f32.mrf.mxu2 }
 0x2fb   : > { %v3050_v46 = vsel %vm415_vm3, %v2993_v32, 0.0  ;;  %v2304_v5 = vadd.f32 %v2262_v0, %v2028_v54  ;;  %v1989_v57 = vpop.f32.mrf.mxu1 }
 0x2fc   : > { %v2537_v52 = vpop.f32.mrf.mxu3  ;;  %v3051_v27 = vadd.f32 %v3050_v46, %v3049_v23  ;;  %v2029_v55 = vadd.f32 %v1989_v57, %v7985_v63 }
 0x2fd   : > { %v2579_v39 = vadd.f32 %v2537_v52, %v2304_v5 }
 0x2fe   : > { %v2818_v33 = vpop.f32.mrf.mxu0 }
 0x2ff   : > { %v2854_v20 = vadd.f32 %v2812_v16, %v2579_v39 }
 0x301   : > { %2888 = vst.msk [vmem:[%s8030_s23 + $0xd8] sm:$0xff] %vm415_vm3, %v2854_v20  ;;  %v2947_v21 = vsel %vm415_vm3, %v2854_v20, 0.0  ;;  %v2994_v8 = vmul.f32 %v2854_v20, %v2854_v20 }
 0x302   : > { %v2948_v24 = vadd.f32 %v2947_v21, %v2946_v34  ;;  %v2265_v30 = vpop.f32.mrf.mxu2 }
 0x303   : > { %v3052_v36 = vsel %vm415_vm3, %v2994_v8, 0.0  ;;  %v2305_v45 = vadd.f32 %v2265_v30, %v2029_v55  ;;  %v1992_v40 = vpop.f32.mrf.mxu1  ;;  %v2893_v55 = vld [vmem:[#allocation4] sm:$0x1] }
 0x304   : > { %v2540_v59 = vpop.f32.mrf.mxu3  ;;  %v3053_v4 = vadd.f32 %v3052_v36, %v3051_v27  ;;  %v2030_v31 = vadd.f32 %v1992_v40, %v7995_v3 }
 0x305   : > { %v2580_v6 = vadd.f32 %v2540_v59, %v2305_v45 }
 0x306   : > { %v2821_v25 = vpop.f32.mrf.mxu0 }
 0x307   : > { %v2855_v61 = vadd.f32 %v2815_v58, %v2580_v6 }
 0x309   : > { %2889 = vst.msk [vmem:[%s8030_s23 + $0xe0] sm:$0xff] %vm415_vm3, %v2855_v61  ;;  %v2949_v63 = vsel %vm415_vm3, %v2855_v61, 0.0  ;;  %v2995_v53 = vmul.f32 %v2855_v61, %v2855_v61 }
 0x30a   : > { %v2950_v13 = vadd.f32 %v2949_v63, %v2948_v24  ;;  %v2268_v42 = vpop.f32.mrf.mxu2  ;;  %v2966_v24 = vld [vmem:[#allocation4 + $0x1] sm:$0x1] }
 0x30b   : > { %v3054_v26 = vsel %vm415_vm3, %v2995_v53, 0.0  ;;  %v2306_v7 = vadd.f32 %v2268_v42, %v2030_v31  ;;  %v1995_v48 = vpop.f32.mrf.mxu1 }
 0x30c   : > { %v2543_v1 = vpop.f32.mrf.mxu3  ;;  %v3055_v15 = vadd.f32 %v3054_v26, %v3053_v4  ;;  %v2031_v49 = vadd.f32 %v1995_v48, %v8005_v18 }
 0x30d   : > { %v2581_v35 = vadd.f32 %v2543_v1, %v2306_v7 }
 0x30e   : > { %v2824_v16 = vpop.f32.mrf.mxu0 }
 0x30f   : > { %v2856_v50 = vadd.f32 %v2818_v33, %v2581_v35 }
 0x311   : > { %2890 = vst.msk [vmem:[%s8030_s23 + $0xe8] sm:$0xff] %vm415_vm3, %v2856_v50  ;;  %v2951_v3 = vsel %vm415_vm3, %v2856_v50, 0.0  ;;  %v2996_v10 = vmul.f32 %v2856_v50, %v2856_v50 }
 0x312   : > { %v2952_v44 = vadd.f32 %v2951_v3, %v2950_v13  ;;  %v2271_v11 = vpop.f32.mrf.mxu2 }
 0x313   : > { %v3056_v14 = vsel %vm415_vm3, %v2996_v10, 0.0  ;;  %v2307_v37 = vadd.f32 %v2271_v11, %v2031_v49  ;;  %v1998_v51 = vpop.f32.mrf.mxu1 }
 0x314   : > { %v2546_v29 = vpop.f32.mrf.mxu3  ;;  %v3057_v17 = vadd.f32 %v3056_v14, %v3055_v15  ;;  %v2032_v56 = vadd.f32 %v1998_v51, %v8015_v47 }
 0x315   : > { %v2582_v19 = vadd.f32 %v2546_v29, %v2307_v37 }
 0x317   : > { %v2857_v9 = vadd.f32 %v2821_v25, %v2582_v19 }
 0x319   : > { %2891 = vst.msk [vmem:[%s8030_s23 + $0xf0] sm:$0xff] %vm415_vm3, %v2857_v9  ;;  %v2953_v18 = vsel %vm415_vm3, %v2857_v9, 0.0  ;;  %v2997_v2 = vmul.f32 %v2857_v9, %v2857_v9 }
 0x31a   : > { %v2954_v38 = vadd.f32 %v2953_v18, %v2952_v44  ;;  %v2274_v41 = vpop.f32.mrf.mxu2 }
 0x31b   : > { %v3058_v62 = vsel %vm415_vm3, %v2997_v2, 0.0  ;;  %v2308_v43 = vadd.f32 %v2274_v41, %v2032_v56 }
 0x31c   : > { %v2549_v28 = vpop.f32.mrf.mxu3  ;;  %v3059_v23 = vadd.f32 %v3058_v62, %v3057_v17 }
 0x31d   : > { %v2583_v12 = vadd.f32 %v2549_v28, %v2308_v43 }
 0x31f   : > { %v2858_v22 = vadd.f32 %v2824_v16, %v2583_v12 }
 0x321   : > { %2892 = vst.msk [vmem:[%s8030_s23 + $0xf8] sm:$0xff] %vm415_vm3, %v2858_v22  ;;  %v2955_v54 = vsel %vm415_vm3, %v2858_v22, 0.0  ;;  %v2998_v47 = vmul.f32 %v2858_v22, %v2858_v22 }
 0x322   : > { %v2956_v60 = vadd.f32 %v2955_v54, %v2954_v38 }
 0x323   : > { %v3060_v32 = vsel %vm415_vm3, %v2998_v47, 0.0 }
 0x324   : > { %v2957_v34 = vrot.slane %v2956_v60, 4  ;;  %v3061_v0 = vadd.f32 %v3060_v32, %v3059_v23 }
 0x326   : > { %v2958_v46 = vadd.f32 %v2957_v34, %v2956_v60  ;;  %v3062_v5 = vrot.slane %v3061_v0, 4 }
 0x328   : > { %v2959_v57 = vrot.slane %v2958_v46, 2  ;;  %v3063_v52 = vadd.f32 %v3062_v5, %v3061_v0 }
 0x32a   : > { %v2960_v27 = vadd.f32 %v2959_v57, %v2958_v46  ;;  %v3064_v39 = vrot.slane %v3063_v52, 2 }
 0x32c   : > { %v2961_v58 = vrot.slane %v2960_v27, 1  ;;  %v3065_v20 = vadd.f32 %v3064_v39, %v3063_v52 }
 0x32e   : > { %v2962_v21 = vadd.f32 %v2961_v58, %v2960_v27  ;;  %v3066_v8 = vrot.slane %v3065_v20, 1 }
 0x330   : > { %v2963_v30 = vadd.f32 %v2962_v21, %v2893_v55  ;;  %v3067_v36 = vadd.f32 %v3066_v8, %v3065_v20 }
 0x332   : > { %2965 = vst.msk [vmem:[#allocation4] sm:$0x1] %vm2964_vm4, %v2963_v30  ;;  %v3068_v45 = vadd.f32 %v3067_v36, %v2966_v24 }
 0x334   : > { %3069 = vst.msk [vmem:[#allocation4 + $0x1] sm:$0x1] %vm2964_vm4, %v3068_v45 }
 0x335 PF: > { %p6659_p13 = scmp.ne.s32.totalorder %s7046_s25, 1 }
 0x337   : > { %3073 = sbr.rel (%p6659_p13) target bundleno = 1602 (0x642), region = 60 }
 0x33c   : > { %v6661_v40 = vld [vmem:[%s9886_s4 + $0x8] sm:$0xff]  ;;  %v3108_v59 = vld [vmem:[#allocation4] sm:$0x1]  ;;  %v3109_v4 = vld [vmem:[#allocation4 + $0x1] sm:$0x1]  ;;  %s6660_s10 = sshll.u32 %s7042_s24, 8 }
 0x33d   : > { %6966 = vmatpush.msra.mxu1 %v6661_v40  ;;  %6967 = vmatpush.msra.mxu2 %v6661_v40  ;;  %v3110_v6 = vmul.f32 0.001953125, %v3108_v59  ;;  %v3111_v61 = vmul.f32 0.001953125, %v3109_v4  ;;  %v6726_v13 = vld [vmem:[%s9886_s4 + $0x10] sm:$0xff]  ;;  %v6759_v26 = vld [vmem:[%s9886_s4 + $0x18] sm:$0xff]  ;;  %v3362_v7 = vld [vmem:[%s9886_s4] sm:$0xff]  ;;  %s8272_s19 = scalar_lea.vmem [#allocation3], %s6660_s10 }
 0x33e   : > { %6968 = vmatpush.msra.mxu3 %v6661_v40  ;;  %3508 = vmatpush.msra.mxu0 %v6661_v40  ;;  %v3082_v48 = vld [vmem:[%s8272_s19 + $0x30] sm:$0xff]  ;;  %v3083_v10 = vld [vmem:[%s8272_s19 + $0x38] sm:$0xff]  ;;  %vm3297_vm7 = vcmask 64512   ;;  %v3363_v25 = vld [vmem:[#allocation2 + $0x1] sm:$0xff]  ;;  %vm5844_vm9 = vcmask 57344  }
 0x33f   : > { %v3112_v33 = vmul.f32 %v3110_v6, %v3110_v6  ;;  %3960 = vmatpush.msrb.mxu2 %v6726_v13  ;;  %3717 = vmatpush.msrb.mxu1 %v3362_v7  ;;  %v8275_v35 = vperm.slane %v3110_v6, 0  ;;  %v3090_v49 = vld [vmem:[%s8272_s19 + $0x70] sm:$0xff]  ;;  %v3091_v44 = vld [vmem:[%s8272_s19 + $0x78] sm:$0xff]  ;;  %v3084_v37 = vld [vmem:[%s8272_s19 + $0x40] sm:$0xff] }
 0x340   : > { %4235 = vmatpush.msrb.mxu3 %v6759_v26  ;;  %v3098_v3 = vld [vmem:[%s8272_s19 + $0xb0] sm:$0xff]  ;;  %v3099_v14 = vld [vmem:[%s8272_s19 + $0xb8] sm:$0xff]  ;;  %6662 = vmatmul.msk.f32.vlgmr.msra.gmra.mxu0 %vm3297_vm7, %v3363_v25  ;;  %v6792_v17 = vld [vmem:[%s9886_s4 + $0x20] sm:$0xff] }
 0x341   : > { %v3113_v31 = vsub.f32 %v3111_v61, %v3112_v33  ;;  %v3092_v19 = vld [vmem:[%s8272_s19 + $0x80] sm:$0xff]  ;;  %v3122_v51 = vsub.f32 %v3082_v48, %v8275_v35  ;;  %4510 = vmatpush.msrb.mxu0 %v6792_v17  ;;  %v3085_v18 = vld [vmem:[%s8272_s19 + $0x48] sm:$0xff]  ;;  %v3130_v38 = vsub.f32 %v3090_v49, %v8275_v35  ;;  %v3138_v41 = vsub.f32 %v3098_v3, %v8275_v35  ;;  %v3086_v46 = vld [vmem:[%s8272_s19 + $0x50] sm:$0xff] }
 0x342   : > { %v3100_v56 = vld [vmem:[%s8272_s19 + $0xc0] sm:$0xff]  ;;  %v3093_v2 = vld [vmem:[%s8272_s19 + $0x88] sm:$0xff]  ;;  %v3123_v62 = vsub.f32 %v3083_v10, %v8275_v35  ;;  %v3131_v43 = vsub.f32 %v3091_v44, %v8275_v35  ;;  %v3139_v12 = vsub.f32 %v3099_v14, %v8275_v35  ;;  %v3124_v22 = vsub.f32 %v3084_v37, %v8275_v35  ;;  %v3094_v5 = vld [vmem:[%s8272_s19 + $0x90] sm:$0xff] }
 0x343   : > { %v3114_v63 = vmax.f32 %v3113_v31, 0.0  ;;  %v3076_v28 = vld [vmem:[%s8272_s19] sm:$0xff]  ;;  %v3101_v23 = vld [vmem:[%s8272_s19 + $0xc8] sm:$0xff]  ;;  %v3132_v54 = vsub.f32 %v3092_v19, %v8275_v35  ;;  %v3140_v32 = vsub.f32 %v3100_v56, %v8275_v35  ;;  %v3125_v34 = vsub.f32 %v3085_v18, %v8275_v35 }
 0x344   : > { %v8312_v60 = vld [vmem:[%s9884_s2] ss:$0 sm:$0xff]  ;;  %v3133_v0 = vsub.f32 %v3093_v2, %v8275_v35  ;;  %v3116_v57 = vsub.f32 %v3076_v28, %v8275_v35  ;;  %v3141_v52 = vsub.f32 %v3101_v23, %v8275_v35  ;;  %v3126_v27 = vsub.f32 %v3086_v46, %v8275_v35  ;;  %v3364_v40 = vld [vmem:[#allocation2 + $0x9] sm:$0xff] }
 0x345   : > { %v3148_v53 = vadd.f32 1e-05, %v3114_v63  ;;  %v3134_v39 = vsub.f32 %v3094_v5, %v8275_v35  ;;  %v8327_v20 = vld [vmem:[%s9885_s3] ss:$0 sm:$0xff]  ;;  %v3102_v46 = vld [vmem:[%s8272_s19 + $0xd0] sm:$0xff] }
 0x347   : > { %7012 = vrsqrt.f32 %v3148_v53  ;;  %vm3155_vm5 = vweird.f32 %v3148_v53 }
 0x348   : > { %6663 = vmatmul.msk.f32.gmra.mxu0 %vm3297_vm7, %v3364_v40 }
 0x34d   : > { %v7013_v42 = vpop.eup %7012 }
 0x34e   : > { %v3150_v1 = vmul.f32 %v7013_v42, %v3148_v53  ;;  %vm3156_vm6 = vweird.f32 %v7013_v42 }
 0x34f   : > { %vm8283_vm8 = vmor %vm3155_vm5, %vm3156_vm6 }
 0x350   : > { %v3151_v15 = vmul.f32 %v7013_v42, %v3150_v1 }
 0x352   : > { %v3152_v50 = vmul.f32 0.5, %v3151_v15 }
 0x354   : > { %v3153_v11 = vsub.f32 1.5, %v3152_v50 }
 0x356   : > { %v3154_v9 = vmul.f32 %v7013_v42, %v3153_v11  ;;  %v3077_v11 = vld [vmem:[%s8272_s19 + $0x8] sm:$0xff] }
 0x358   : > { %v3158_v16 = vsel %vm8283_vm8, %v7013_v42, %v3154_v9 }
 0x359   : > { %v8307_v47 = vperm.slane %v3158_v16, 0 }
 0x35b   : > { %v3166_v58 = vmul.f32 %v8307_v47, %v3122_v51  ;;  %v3174_v55 = vmul.f32 %v8307_v47, %v3130_v38  ;;  %v3182_v21 = vmul.f32 %v8307_v47, %v3138_v41  ;;  %v3167_v8 = vmul.f32 %v8307_v47, %v3123_v62 }
 0x35c   : > { %v3175_v24 = vmul.f32 %v8307_v47, %v3131_v43  ;;  %v3183_v30 = vmul.f32 %v8307_v47, %v3139_v12  ;;  %v3168_v36 = vmul.f32 %v8307_v47, %v3124_v22  ;;  %v3176_v45 = vmul.f32 %v8307_v47, %v3132_v54 }
 0x35d   : > { %v3202_v59 = vmul.f32 %v8312_v60, %v3166_v58  ;;  %v3210_v4 = vmul.f32 %v8312_v60, %v3174_v55  ;;  %v3218_v6 = vmul.f32 %v8312_v60, %v3182_v21  ;;  %v3203_v61 = vmul.f32 %v8312_v60, %v3167_v8  ;;  %v3095_v58 = vld [vmem:[%s8272_s19 + $0x98] sm:$0xff]  ;;  %v3078_v55 = vld [vmem:[%s8272_s19 + $0x10] sm:$0xff] }
 0x35e   : > { %v3211_v33 = vmul.f32 %v8312_v60, %v3175_v24  ;;  %v3219_v31 = vmul.f32 %v8312_v60, %v3183_v30  ;;  %v3204_v63 = vmul.f32 %v8312_v60, %v3168_v36  ;;  %v3212_v53 = vmul.f32 %v8312_v60, %v3176_v45  ;;  %v3103_v30 = vld [vmem:[%s8272_s19 + $0xd8] sm:$0xff]  ;;  %v3088_v36 = vld [vmem:[%s8272_s19 + $0x60] sm:$0xff] }
 0x35f   : > { %v3238_v13 = vadd.f32 %v8327_v20, %v3202_v59  ;;  %v3246_v42 = vadd.f32 %v8327_v20, %v3210_v4  ;;  %v3254_v26 = vadd.f32 %v8327_v20, %v3218_v6  ;;  %v3239_v7 = vadd.f32 %v8327_v20, %v3203_v61 }
 0x360   : > { %v3247_v1 = vadd.f32 %v8327_v20, %v3211_v33  ;;  %v3255_v15 = vadd.f32 %v8327_v20, %v3219_v31  ;;  %v3240_v48 = vadd.f32 %v8327_v20, %v3204_v63  ;;  %v3248_v50 = vadd.f32 %v8327_v20, %v3212_v53  ;;  %v3096_v53 = vld [vmem:[%s8272_s19 + $0xa0] sm:$0xff] }
 0x361   : > { %v3270_v49 = vmax.f32 %v3238_v13, 0.0  ;;  %v3278_v3 = vmax.f32 %v3246_v42, 0.0  ;;  %v3286_v10 = vmax.f32 %v3254_v26, 0.0  ;;  %v3271_v44 = vmax.f32 %v3239_v7, 0.0 }
 0x362   : > { %v3279_v25 = vmax.f32 %v3247_v1, 0.0  ;;  %v3287_v14 = vmax.f32 %v3255_v15, 0.0  ;;  %v3272_v37 = vmax.f32 %v3240_v48, 0.0  ;;  %v3280_v29 = vmax.f32 %v3248_v50, 0.0  ;;  %v3079_v15 = vld [vmem:[%s8272_s19 + $0x18] sm:$0xff] }
 0x363   : > { %3304 = vst.msk [vmem:[#allocation2 + $0x61] sm:$0xff] %vm3297_vm7, %v3270_v49  ;;  %v3184_v17 = vmul.f32 %v8307_v47, %v3140_v32  ;;  %v3169_v19 = vmul.f32 %v8307_v47, %v3125_v34  ;;  %v3177_v51 = vmul.f32 %v8307_v47, %v3133_v0  ;;  %v3160_v9 = vmul.f32 %v8307_v47, %v3116_v57 }
 0x364   : > { %3312 = vst.msk [vmem:[#allocation2 + $0xc1] sm:$0xff] %vm3297_vm7, %v3278_v3  ;;  %v3185_v56 = vmul.f32 %v8307_v47, %v3141_v52  ;;  %v3170_v18 = vmul.f32 %v8307_v47, %v3126_v27  ;;  %v3178_v2 = vmul.f32 %v8307_v47, %v3134_v39  ;;  %v3117_v38 = vsub.f32 %v3077_v11, %v8275_v35  ;;  %v3087_v39 = vld [vmem:[%s8272_s19 + $0x58] sm:$0xff] }
 0x365   : > { %3320 = vst.msk [vmem:[#allocation2 + $0x121] sm:$0xff] %vm3297_vm7, %v3286_v10  ;;  %v3220_v41 = vmul.f32 %v8312_v60, %v3184_v17  ;;  %v3205_v62 = vmul.f32 %v8312_v60, %v3169_v19  ;;  %v3213_v43 = vmul.f32 %v8312_v60, %v3177_v51  ;;  %v3196_v28 = vmul.f32 %v8312_v60, %v3160_v9 }
 0x366   : > { %3305 = vst.msk [vmem:[#allocation2 + $0x69] sm:$0xff] %vm3297_vm7, %v3271_v44  ;;  %v3221_v23 = vmul.f32 %v8312_v60, %v3185_v56  ;;  %v3206_v16 = vmul.f32 %v8312_v60, %v3170_v18  ;;  %v3214_v12 = vmul.f32 %v8312_v60, %v3178_v2  ;;  %v3161_v22 = vmul.f32 %v8307_v47, %v3117_v38 }
 0x367   : > { %3313 = vst.msk [vmem:[#allocation2 + $0xc9] sm:$0xff] %vm3297_vm7, %v3279_v25  ;;  %v3256_v54 = vadd.f32 %v8327_v20, %v3220_v41  ;;  %v3241_v32 = vadd.f32 %v8327_v20, %v3205_v62  ;;  %v3249_v34 = vadd.f32 %v8327_v20, %v3213_v43  ;;  %v3232_v0 = vadd.f32 %v8327_v20, %v3196_v28 }
 0x368   : > { %3321 = vst.msk [vmem:[#allocation2 + $0x129] sm:$0xff] %vm3297_vm7, %v3287_v14  ;;  %v3257_v5 = vadd.f32 %v8327_v20, %v3221_v23  ;;  %v3242_v57 = vadd.f32 %v8327_v20, %v3206_v16  ;;  %v3250_v52 = vadd.f32 %v8327_v20, %v3214_v12  ;;  %v3197_v27 = vmul.f32 %v8312_v60, %v3161_v22 }
 0x369   : > { %3306 = vst.msk [vmem:[#allocation2 + $0x79] sm:$0xff] %vm3297_vm7, %v3272_v37  ;;  %v3288_v21 = vmax.f32 %v3256_v54, 0.0  ;;  %v3273_v8 = vmax.f32 %v3241_v32, 0.0  ;;  %v3281_v24 = vmax.f32 %v3249_v34, 0.0  ;;  %v3264_v40 = vmax.f32 %v3232_v0, 0.0  ;;  %v3104_v54 = vld [vmem:[%s8272_s19 + $0xe0] sm:$0xff] }
 0x36a   : > { %v8391_v45 = vld [vmem:[#allocation2 + $0x61] sm:$0xff]  ;;  %3314 = vst.msk [vmem:[#allocation2 + $0xd9] sm:$0xff] %vm3297_vm7, %v3280_v29  ;;  %v3289_v59 = vmax.f32 %v3257_v5, 0.0  ;;  %v3233_v4 = vadd.f32 %v8327_v20, %v3197_v27  ;;  %v3274_v61 = vmax.f32 %v3242_v57, 0.0  ;;  %v3142_v33 = vsub.f32 %v3102_v46, %v8275_v35 }
 0x36b   : > { %6670 = vmatmul.msk.f32.vlgmr.msra.gmra.mxu1 %vm3297_vm7, %v8391_v45  ;;  %v8397_v6 = vld [vmem:[#allocation2 + $0xc1] sm:$0xff]  ;;  %3322 = vst.msk [vmem:[#allocation2 + $0x139] sm:$0xff] %vm3297_vm7, %v3288_v21  ;;  %v3127_v31 = vsub.f32 %v3087_v39, %v8275_v35  ;;  %v3135_v63 = vsub.f32 %v3095_v58, %v8275_v35  ;;  %v3282_v42 = vmax.f32 %v3250_v52, 0.0  ;;  %v3118_v26 = vsub.f32 %v3078_v55, %v8275_v35 }
 0x36c   : > { %6678 = vmatmul.msk.f32.vlgmr.msra.gmra.mxu2 %vm3297_vm7, %v8397_v6  ;;  %v3387_v13 = vld [vmem:[#allocation2 + $0x121] sm:$0xff]  ;;  %3307 = vst.msk [vmem:[#allocation2 + $0x81] sm:$0xff] %vm3297_vm7, %v3273_v8  ;;  %v3143_v7 = vsub.f32 %v3103_v30, %v8275_v35  ;;  %v3128_v1 = vsub.f32 %v3088_v36, %v8275_v35  ;;  %v3265_v48 = vmax.f32 %v3233_v4, 0.0  ;;  %v3186_v50 = vmul.f32 %v8307_v47, %v3142_v33 }
 0x36d   : > { %6686 = vmatmul.msk.f32.vlgmr.msra.gmra.mxu3 %vm3297_vm7, %v3387_v13  ;;  %3315 = vst.msk [vmem:[#allocation2 + $0xe1] sm:$0xff] %vm3297_vm7, %v3281_v24  ;;  %v3171_v49 = vmul.f32 %v8307_v47, %v3127_v31  ;;  %v3179_v3 = vmul.f32 %v8307_v47, %v3135_v63  ;;  %v3162_v10 = vmul.f32 %v8307_v47, %v3118_v26  ;;  %v8426_v19 = vld [vmem:[#allocation2 + $0x69] sm:$0xff]  ;;  %v3080_v52 = vld [vmem:[%s8272_s19 + $0x20] sm:$0xff] }
 0x36e   : > { %3298 = vst.msk [vmem:[#allocation2 + $0x19] sm:$0xff] %vm3297_vm7, %v3264_v40  ;;  %v3187_v44 = vmul.f32 %v8307_v47, %v3143_v7  ;;  %v3172_v11 = vmul.f32 %v8307_v47, %v3128_v1  ;;  %v3136_v25 = vsub.f32 %v3096_v53, %v8275_v35  ;;  %v3222_v14 = vmul.f32 %v8312_v60, %v3186_v50  ;;  %v8433_v2 = vld [vmem:[#allocation2 + $0xc9] sm:$0xff] }
 0x36f   : > { %3323 = vst.msk [vmem:[#allocation2 + $0x141] sm:$0xff] %vm3297_vm7, %v3289_v59  ;;  %v3207_v37 = vmul.f32 %v8312_v60, %v3171_v49  ;;  %v3215_v29 = vmul.f32 %v8312_v60, %v3179_v3  ;;  %v3119_v17 = vsub.f32 %v3079_v15, %v8275_v35  ;;  %v3198_v51 = vmul.f32 %v8312_v60, %v3162_v10  ;;  %v3388_v28 = vld [vmem:[#allocation2 + $0x129] sm:$0xff] }
 0x370   : > { %3308 = vst.msk [vmem:[#allocation2 + $0x91] sm:$0xff] %vm3297_vm7, %v3274_v61  ;;  %v3223_v9 = vmul.f32 %v8312_v60, %v3187_v44  ;;  %v3208_v56 = vmul.f32 %v8312_v60, %v3172_v11  ;;  %v3180_v18 = vmul.f32 %v8307_v47, %v3136_v25  ;;  %v3258_v38 = vadd.f32 %v8327_v20, %v3222_v14  ;;  %v3089_v32 = vld [vmem:[%s8272_s19 + $0x68] sm:$0xff]  ;;  %v8472_v63 = vld [vmem:[#allocation2 + $0x79] sm:$0xff] }
 0x371   : > { %3316 = vst.msk [vmem:[#allocation2 + $0xf1] sm:$0xff] %vm3297_vm7, %v3282_v42  ;;  %v3243_v41 = vadd.f32 %v8327_v20, %v3207_v37  ;;  %v3251_v62 = vadd.f32 %v8327_v20, %v3215_v29  ;;  %v3163_v43 = vmul.f32 %v8307_v47, %v3119_v17  ;;  %v3234_v23 = vadd.f32 %v8327_v20, %v3198_v51  ;;  %v3097_v57 = vld [vmem:[%s8272_s19 + $0xa8] sm:$0xff]  ;;  %v8478_v7 = vld [vmem:[#allocation2 + $0xd9] sm:$0xff] }
 0x372   : > { %3299 = vst.msk [vmem:[#allocation2 + $0x21] sm:$0xff] %vm3297_vm7, %v3265_v48  ;;  %v3259_v16 = vadd.f32 %v8327_v20, %v3223_v9  ;;  %v3244_v12 = vadd.f32 %v8327_v20, %v3208_v56  ;;  %v3216_v22 = vmul.f32 %v8312_v60, %v3180_v18  ;;  %v3290_v34 = vmax.f32 %v3258_v38, 0.0  ;;  %v3105_v27 = vld [vmem:[%s8272_s19 + $0xe8] sm:$0xff]  ;;  %v8483_v48 = vld [vmem:[#allocation2 + $0x139] sm:$0xff] }
 0x373   : > { %6671 = vmatmul.msk.f32.gmra.mxu1 %vm3297_vm7, %v8426_v19  ;;  %v3275_v0 = vmax.f32 %v3243_v41, 0.0  ;;  %v3283_v46 = vmax.f32 %v3251_v62, 0.0  ;;  %v3199_v5 = vmul.f32 %v8312_v60, %v3163_v43  ;;  %v3266_v39 = vmax.f32 %v3234_v23, 0.0  ;;  %v3081_v25 = vld [vmem:[%s8272_s19 + $0x28] sm:$0xff] }
 0x374   : > { %6679 = vmatmul.msk.f32.gmra.mxu2 %vm3297_vm7, %v8433_v2  ;;  %v3252_v58 = vadd.f32 %v8327_v20, %v3216_v22  ;;  %3324 = vst.msk [vmem:[#allocation2 + $0x151] sm:$0xff] %vm3297_vm7, %v3290_v34  ;;  %v3291_v21 = vmax.f32 %v3259_v16, 0.0  ;;  %v3144_v24 = vsub.f32 %v3104_v54, %v8275_v35  ;;  %v3129_v30 = vsub.f32 %v3089_v32, %v8275_v35  ;;  %v8510_v62 = vld [vmem:[#allocation2 + $0x81] sm:$0xff]  ;;  %v6858_v34 = vld [vmem:[%s9886_s4 + $0x30] sm:$0xff] }
 0x375   : > { %6687 = vmatmul.msk.f32.gmra.mxu3 %vm3297_vm7, %v3388_v28  ;;  %v8457_v55 = vld [vmem:[#allocation2 + $0x19] sm:$0xff]  ;;  %v3235_v8 = vadd.f32 %v8327_v20, %v3199_v5  ;;  %3309 = vst.msk [vmem:[#allocation2 + $0x99] sm:$0xff] %vm3297_vm7, %v3275_v0  ;;  %v3276_v36 = vmax.f32 %v3244_v12, 0.0  ;;  %v3137_v40 = vsub.f32 %v3097_v57, %v8275_v35  ;;  %v3120_v59 = vsub.f32 %v3080_v52, %v8275_v35  ;;  %v8513_v43 = vld [vmem:[#allocation2 + $0xe1] sm:$0xff] }
 0x376   : > { %6664 = vmatmul.msk.f32.gmra.mxu0 %vm3297_vm7, %v8457_v55  ;;  %v3145_v4 = vsub.f32 %v3105_v27, %v8275_v35  ;;  %3317 = vst.msk [vmem:[#allocation2 + $0xf9] sm:$0xff] %vm3297_vm7, %v3283_v46  ;;  %v3284_v61 = vmax.f32 %v3252_v58, 0.0  ;;  %v3188_v33 = vmul.f32 %v8307_v47, %v3144_v24  ;;  %v3173_v31 = vmul.f32 %v8307_v47, %v3129_v30  ;;  %v8517_v23 = vld [vmem:[#allocation2 + $0x141] sm:$0xff]  ;;  %v6891_v0 = vld [vmem:[%s9886_s4 + $0x38] sm:$0xff] }
 0x377   : > { %3300 = vst.msk [vmem:[#allocation2 + $0x31] sm:$0xff] %vm3297_vm7, %v3266_v39  ;;  %v3267_v53 = vmax.f32 %v3235_v8, 0.0  ;;  %v3181_v13 = vmul.f32 %v8307_v47, %v3137_v40  ;;  %v3164_v42 = vmul.f32 %v8307_v47, %v3120_v59  ;;  %v3121_v9 = vsub.f32 %v3081_v25, %v8275_v35  ;;  %5061 = vmatpush.msra.mxu2 %v6858_v34  ;;  %v6825_v46 = vld [vmem:[%s9886_s4 + $0x28] sm:$0xff]  ;;  %v6924_v39 = vld [vmem:[%s9886_s4 + $0x40] sm:$0xff] }
 0x378   : > { %v3189_v26 = vmul.f32 %v8307_v47, %v3145_v4  ;;  %3325 = vst.msk [vmem:[#allocation2 + $0x159] sm:$0xff] %vm3297_vm7, %v3291_v21  ;;  %v3224_v1 = vmul.f32 %v8312_v60, %v3188_v33  ;;  %v3209_v15 = vmul.f32 %v8312_v60, %v3173_v31  ;;  %v8532_v54 = vld [vmem:[#allocation2 + $0xf1] sm:$0xff]  ;;  %5336 = vmatpush.msra.mxu3 %v6891_v0  ;;  %v3330_v59 = vld [vmem:[#allocation2] sm:$0xff]  ;;  %v3331_v33 = vld [vmem:[#allocation2 + $0x8] sm:$0xff] }
 0x379   : > { %3310 = vst.msk [vmem:[#allocation2 + $0xa9] sm:$0xff] %vm3297_vm7, %v3276_v36  ;;  %v3217_v50 = vmul.f32 %v8312_v60, %v3181_v13  ;;  %v3200_v49 = vmul.f32 %v8312_v60, %v3164_v42  ;;  %v8491_v10 = vld [vmem:[#allocation2 + $0x21] sm:$0xff]  ;;  %v3165_v41 = vmul.f32 %v8307_v47, %v3121_v9  ;;  %4785 = vmatpush.msra.mxu1 %v6825_v46  ;;  %v3816_v31 = vld [vmem:[#allocation2 + $0xa] sm:$0xff] }
 0x37a   : > { %v3225_v3 = vmul.f32 %v8312_v60, %v3189_v26  ;;  %3318 = vst.msk [vmem:[#allocation2 + $0x109] sm:$0xff] %vm3297_vm7, %v3284_v61  ;;  %v3260_v44 = vadd.f32 %v8327_v20, %v3224_v1  ;;  %v3245_v11 = vadd.f32 %v8327_v20, %v3209_v15  ;;  %5611 = vmatpush.msra.mxu0 %v6924_v39  ;;  %v3815_v4 = vld [vmem:[#allocation2 + $0x2] sm:$0xff]  ;;  %v4090_v61 = vld [vmem:[#allocation2 + $0x18] sm:$0xff] }
 0x37b   : > { %6672 = vmatmul.msk.f32.gmra.mxu1 %vm3297_vm7, %v8472_v63  ;;  %3301 = vst.msk [vmem:[#allocation2 + $0x39] sm:$0xff] %vm3297_vm7, %v3267_v53  ;;  %v3253_v14 = vadd.f32 %v8327_v20, %v3217_v50  ;;  %v3236_v37 = vadd.f32 %v8327_v20, %v3200_v49  ;;  %v3201_v28 = vmul.f32 %v8312_v60, %v3165_v41  ;;  %v8530_v60 = vld [vmem:[#allocation2 + $0x91] sm:$0xff]  ;;  %v4091_v53 = vld [vmem:[#allocation2 + $0x20] sm:$0xff] }
 0x37c   : > { %6680 = vmatmul.msk.f32.gmra.mxu2 %vm3297_vm7, %v8478_v7  ;;  %v3261_v29 = vadd.f32 %v8327_v20, %v3225_v3  ;;  %v3292_v17 = vmax.f32 %v3260_v44, 0.0  ;;  %v3277_v51 = vmax.f32 %v3245_v11, 0.0  ;;  %v8534_v32 = vld [vmem:[#allocation2 + $0x151] sm:$0xff]  ;;  %v8552_v5 = vld [vmem:[#allocation2 + $0x99] sm:$0xff]  ;;  %v8620_v42 = vld [vmem:[#allocation2 + $0x22] sm:$0xff] }
 0x37d   : > { %6688 = vmatmul.msk.f32.gmra.mxu3 %vm3297_vm7, %v8483_v48  ;;  %v3285_v56 = vmax.f32 %v3253_v14, 0.0  ;;  %v3268_v18 = vmax.f32 %v3236_v37, 0.0  ;;  %v3237_v12 = vadd.f32 %v8327_v20, %v3201_v28  ;;  %v8554_v57 = vld [vmem:[#allocation2 + $0xf9] sm:$0xff]  ;;  %v8725_v28 = vld [vmem:[#allocation2 + $0x90] sm:$0xff] }
 0x37e   : > { %6665 = vmatmul.msk.f32.gmra.mxu0 %vm3297_vm7, %v8491_v10  ;;  %3326 = vst.msk [vmem:[#allocation2 + $0x169] sm:$0xff] %vm3297_vm7, %v3292_v17  ;;  %v3293_v38 = vmax.f32 %v3261_v29, 0.0  ;;  %v3367_v16 = vld [vmem:[#allocation2 + $0x31] sm:$0xff]  ;;  %v8705_v9 = vld [vmem:[#allocation2 + $0x80] sm:$0xff] }
 0x37f   : > { %3311 = vst.msk [vmem:[#allocation2 + $0xb1] sm:$0xff] %vm3297_vm7, %v3277_v51  ;;  %v3269_v22 = vmax.f32 %v3237_v12, 0.0  ;;  %v8556_v52 = vld [vmem:[#allocation2 + $0x159] sm:$0xff]  ;;  %v8612_v13 = vld [vmem:[#allocation2 + $0x30] sm:$0xff] }
 0x380   : > { %3319 = vst.msk [vmem:[#allocation2 + $0x111] sm:$0xff] %vm3297_vm7, %v3285_v56  ;;  %v8571_v58 = vld [vmem:[#allocation2 + $0xa9] sm:$0xff]  ;;  %v8687_v37 = vld [vmem:[#allocation2 + $0x78] sm:$0xff] }
 0x381   : > { %3302 = vst.msk [vmem:[#allocation2 + $0x49] sm:$0xff] %vm3297_vm7, %v3268_v18  ;;  %v8573_v21 = vld [vmem:[#allocation2 + $0x109] sm:$0xff]  ;;  %v8745_v34 = vld [vmem:[#allocation2 + $0x98] sm:$0xff] }
 0x382   : > { %3327 = vst.msk [vmem:[#allocation2 + $0x171] sm:$0xff] %vm3297_vm7, %v3293_v38  ;;  %v3368_v20 = vld [vmem:[#allocation2 + $0x39] sm:$0xff]  ;;  %v8703_v51 = vld [vmem:[#allocation2 + $0x6a] sm:$0xff] }
 0x383   : > { %6673 = vmatmul.msk.f32.gmra.mxu1 %vm3297_vm7, %v8510_v62  ;;  %3303 = vst.msk [vmem:[#allocation2 + $0x51] sm:$0xff] %vm3297_vm7, %v3269_v22  ;;  %v8622_v26 = vld [vmem:[#allocation2 + $0x38] sm:$0xff] }
 0x384   : > { %6681 = vmatmul.msk.f32.gmra.mxu2 %vm3297_vm7, %v8513_v43  ;;  %v8631_v1 = vld [vmem:[#allocation2 + $0x32] sm:$0xff]  ;;  %v8643_v50 = vld [vmem:[#allocation2 + $0x3a] sm:$0xff]  ;;  %10023 = vst [vmem:[#allocation44_spill] sm:$0xff] %v8687_v37 }
 0x385   : > { %6689 = vmatmul.msk.f32.gmra.mxu3 %vm3297_vm7, %v8517_v23  ;;  %v8575_v8 = vld [vmem:[#allocation2 + $0x169] sm:$0xff]  ;;  %10025 = vst [vmem:[#allocation46_spill] sm:$0xff] %v8705_v9 }
 0x386   : > { %6666 = vmatmul.msk.f32.gmra.mxu0 %vm3297_vm7, %v3367_v16  ;;  %v8587_v30 = vld [vmem:[#allocation2 + $0xb1] sm:$0xff]  ;;  %10028 = vst [vmem:[#allocation49_spill] sm:$0xff] %v8725_v28 }
 0x387   : > { %v8589_v36 = vld [vmem:[#allocation2 + $0x111] sm:$0xff]  ;;  %10031 = vst [vmem:[#allocation52_spill] sm:$0xff] %v8745_v34 }
 0x388   : > { %v8560_v27 = vld [vmem:[#allocation2 + $0x49] sm:$0xff] }
 0x389   : > { %v8591_v40 = vld [vmem:[#allocation2 + $0x171] sm:$0xff]  ;;  %v8633_v15 = vld [vmem:[#allocation2 + $0x48] sm:$0xff] }
 0x38a   : > { %v8579_v24 = vld [vmem:[#allocation2 + $0x51] sm:$0xff] }
 0x38b   : > { %6674 = vmatmul.msk.f32.gmra.mxu1 %vm3297_vm7, %v8530_v60  ;;  %v8645_v49 = vld [vmem:[#allocation2 + $0x50] sm:$0xff] }
 0x38c   : > { %6682 = vmatmul.msk.f32.gmra.mxu2 %vm3297_vm7, %v8532_v54  ;;  %v8655_v3 = vld [vmem:[#allocation2 + $0x4a] sm:$0xff]  ;;  %v8669_v11 = vld [vmem:[#allocation2 + $0x52] sm:$0xff] }
 0x38d   : > { %6690 = vmatmul.msk.f32.gmra.mxu3 %vm3297_vm7, %v8534_v32 }
 0x38e   : > { %6667 = vmatmul.msk.f32.gmra.mxu0 %vm3297_vm7, %v3368_v20 }
 0x393   : > { %6675 = vmatmul.msk.f32.gmra.mxu1 %vm3297_vm7, %v8552_v5 }
 0x394   : > { %6683 = vmatmul.msk.f32.gmra.mxu2 %vm3297_vm7, %v8554_v57 }
 0x395   : > { %6691 = vmatmul.msk.f32.gmra.mxu3 %vm3297_vm7, %v8556_v52 }
 0x396   : > { %6668 = vmatmul.msk.f32.gmra.mxu0 %vm3297_vm7, %v8560_v27 }
 0x39b   : > { %6676 = vmatmul.msk.f32.gmra.mxu1 %vm3297_vm7, %v8571_v58 }
 0x39c   : > { %6684 = vmatmul.msk.f32.gmra.mxu2 %vm3297_vm7, %v8573_v21 }
 0x39d   : > { %6692 = vmatmul.msk.f32.gmra.mxu3 %vm3297_vm7, %v8575_v8 }
 0x39e   : > { %6669 = vmatmul.msk.f32.gmra.mxu0 %vm3297_vm7, %v8579_v24 }
 0x3a3   : > { %6677 = vmatmul.msk.f32.gmra.mxu1 %vm3297_vm7, %v8587_v30 }
 0x3a4   : > { %6685 = vmatmul.msk.f32.gmra.mxu2 %vm3297_vm7, %v8589_v36 }
 0x3a5   : > { %6693 = vmatmul.msk.f32.gmra.mxu3 %vm3297_vm7, %v8591_v40 }
 0x3a6   : > { %6793 = vmatmul.msk.f32.vlgmr.msrb.gmra.mxu0 %vm3297_vm7, %v8457_v55  ;;  %v8610_v55 = vld [vmem:[#allocation2 + $0x1a] sm:$0xff] }
 0x3ab   : > { %6694 = vmatmul.msk.f32.vlgmr.msrb.gmra.mxu1 %vm3297_vm7, %v3330_v59  ;;  %v8763_v59 = vld [vmem:[#allocation2 + $0x92] sm:$0xff] }
 0x3ac   : > { %6727 = vmatmul.msk.f32.vlgmr.msrb.gmra.mxu2 %vm3297_vm7, %v3815_v4  ;;  %10033 = vst [vmem:[#allocation54_spill] sm:$0xff] %v8763_v59  ;;  %v8765_v4 = vld [vmem:[#allocation2 + $0xa8] sm:$0xff] }
 0x3ad   : > { %6760 = vmatmul.msk.f32.vlgmr.msrb.gmra.mxu3 %vm3297_vm7, %v4090_v61  ;;  %10034 = vst [vmem:[#allocation55_spill] sm:$0xff] %v8765_v4 }
 0x3ae   : > { %6794 = vmatmul.msk.f32.gmra.mxu0 %vm3297_vm7, %v8491_v10  ;;  %v8657_v10 = vld [vmem:[#allocation2 + $0x60] sm:$0xff] }
 0x3b3   : > { %6695 = vmatmul.msk.f32.gmra.mxu1 %vm3297_vm7, %v3331_v33 }
 0x3b4   : > { %6728 = vmatmul.msk.f32.gmra.mxu2 %vm3297_vm7, %v3816_v31 }
 0x3b5   : > { %6761 = vmatmul.msk.f32.gmra.mxu3 %vm3297_vm7, %v4091_v53 }
 0x3b6   : > { %6795 = vmatmul.msk.f32.gmra.mxu0 %vm3297_vm7, %v3367_v16 }
 0x3bb   : > { %6696 = vmatmul.msk.f32.gmra.mxu1 %vm3297_vm7, %v4090_v61 }
 0x3bc   : > { %6729 = vmatmul.msk.f32.gmra.mxu2 %vm3297_vm7, %v8610_v55 }
 0x3bd   : > { %6762 = vmatmul.msk.f32.gmra.mxu3 %vm3297_vm7, %v8612_v13  ;;  %v8667_v44 = vpop.f32.mrf.mxu0 }
 0x3be   : > { %6796 = vmatmul.msk.f32.gmra.mxu0 %vm3297_vm7, %v3368_v20  ;;  %v8743_v20 = vld [vmem:[#allocation2 + $0x82] sm:$0xff] }
 0x3bf   : > { %10030 = vst [vmem:[#allocation51_spill] sm:$0xff] %v8743_v20 }
 0x3c3   : > { %6697 = vmatmul.msk.f32.gmra.mxu1 %vm3297_vm7, %v4091_v53  ;;  %v8783_v53 = vld [vmem:[#allocation2 + $0x9a] sm:$0xff] }
 0x3c4   : > { %6730 = vmatmul.msk.f32.gmra.mxu2 %vm3297_vm7, %v8620_v42  ;;  %10036 = vst [vmem:[#allocation57_spill] sm:$0xff] %v8783_v53 }
 0x3c5   : > { %6763 = vmatmul.msk.f32.gmra.mxu3 %vm3297_vm7, %v8622_v26  ;;  %v8685_v14 = vpop.f32.mrf.mxu0 }
 0x3c6   : > { %6797 = vmatmul.msk.f32.gmra.mxu0 %vm3297_vm7, %v8560_v27 }
 0x3cb   : > { %6698 = vmatmul.msk.f32.gmra.mxu1 %vm3297_vm7, %v8612_v13 }
 0x3cc   : > { %6731 = vmatmul.msk.f32.gmra.mxu2 %vm3297_vm7, %v8631_v1 }
 0x3cd   : > { %6764 = vmatmul.msk.f32.gmra.mxu3 %vm3297_vm7, %v8633_v15 }
 0x3ce   : > { %6798 = vmatmul.msk.f32.gmra.mxu0 %vm3297_vm7, %v8579_v24 }
 0x3d3   : > { %6699 = vmatmul.msk.f32.gmra.mxu1 %vm3297_vm7, %v8622_v26 }
 0x3d4   : > { %6732 = vmatmul.msk.f32.gmra.mxu2 %vm3297_vm7, %v8643_v50 }
 0x3d5   : > { %6765 = vmatmul.msk.f32.gmra.mxu3 %vm3297_vm7, %v8645_v49 }
 0x3d6   : > { %6799 = vmatmul.msk.f32.gmra.mxu0 %vm3297_vm7, %v8391_v45  ;;  %v8671_v45 = vld [vmem:[#allocation2 + $0x68] sm:$0xff] }
 0x3d7   : > { %10022 = vst [vmem:[#allocation43_spill] sm:$0xff] %v8671_v45 }
 0x3db   : > { %6700 = vmatmul.msk.f32.gmra.mxu1 %vm3297_vm7, %v8633_v15 }
 0x3dc   : > { %6733 = vmatmul.msk.f32.gmra.mxu2 %vm3297_vm7, %v8655_v3 }
 0x3dd   : > { %6766 = vmatmul.msk.f32.gmra.mxu3 %vm3297_vm7, %v8657_v10 }
 0x3de   : > { %6800 = vmatmul.msk.f32.gmra.mxu0 %vm3297_vm7, %v8426_v19  ;;  %v8683_v19 = vld [vmem:[#allocation2 + $0x62] sm:$0xff] }
 0x3e3   : > { %6701 = vmatmul.msk.f32.gmra.mxu1 %vm3297_vm7, %v8645_v49 }
 0x3e4   : > { %6734 = vmatmul.msk.f32.gmra.mxu2 %vm3297_vm7, %v8669_v11 }
 0x3e5   : > { %6767 = vmatmul.msk.f32.gmra.mxu3 %vm3297_vm7, %v8671_v45 }
 0x3e6   : > { %6801 = vmatmul.msk.f32.gmra.mxu0 %vm3297_vm7, %v8472_v63 }
 0x3e8   : > { %v8681_v25 = vpop.f32.mrf.mxu1 }
 0x3eb   : > { %6702 = vmatmul.msk.f32.gmra.mxu1 %vm3297_vm7, %v8657_v10 }
 0x3ec   : > { %6735 = vmatmul.msk.f32.gmra.mxu2 %vm3297_vm7, %v8683_v19 }
 0x3ed   : > { %6768 = vmatmul.msk.f32.gmra.mxu3 %vm3297_vm7, %v8687_v37 }
 0x3ee   : > { %6802 = vmatmul.msk.f32.gmra.mxu0 %vm3297_vm7, %v8510_v62  ;;  %v8723_v62 = vld [vmem:[#allocation2 + $0x7a] sm:$0xff] }
 0x3ef   : > { %v8697_v63 = vpop.f32.mrf.mxu2  ;;  %10027 = vst [vmem:[#allocation48_spill] sm:$0xff] %v8723_v62 }
 0x3f0   : > { %v8699_v29 = vpop.f32.mrf.mxu1  ;;  %v8701_v17 = vpop.f32.mrf.mxu3 }
 0x3f1   : > { %10024 = vst [vmem:[#allocation45_spill] sm:$0xff] %v8701_v17  ;;  %v8803_v17 = vld [vmem:[#allocation2 + $0xaa] sm:$0xff] }
 0x3f2   : > { %10040 = vst [vmem:[#allocation61_spill] sm:$0xff] %v8803_v17 }
 0x3f3   : > { %6703 = vmatmul.msk.f32.gmra.mxu1 %vm3297_vm7, %v8671_v45  ;;  %v8709_v56 = vpop.f32.mrf.mxu0 }
 0x3f4   : > { %6736 = vmatmul.msk.f32.gmra.mxu2 %vm3297_vm7, %v8703_v51 }
 0x3f5   : > { %6769 = vmatmul.msk.f32.gmra.mxu3 %vm3297_vm7, %v8705_v9 }
 0x3f6   : > { %6803 = vmatmul.msk.f32.gmra.mxu0 %vm3297_vm7, %v8530_v60 }
 0x3f7   : > { %v8717_v18 = vpop.f32.mrf.mxu2 }
 0x3f8   : > { %v8719_v38 = vpop.f32.mrf.mxu1  ;;  %v8721_v41 = vpop.f32.mrf.mxu3 }
 0x3f9   : > { %10026 = vst [vmem:[#allocation47_spill] sm:$0xff] %v8721_v41 }
 0x3fb   : > { %6704 = vmatmul.msk.f32.gmra.mxu1 %vm3297_vm7, %v8687_v37  ;;  %v8729_v16 = vpop.f32.mrf.mxu0 }
 0x3fc   : > { %6737 = vmatmul.msk.f32.gmra.mxu2 %vm3297_vm7, %v8723_v62  ;;  %v8852_v62 = vld [vmem:[#allocation2 + $0xca] sm:$0xff] }
 0x3fd   : > { %6770 = vmatmul.msk.f32.gmra.mxu3 %vm3297_vm7, %v8725_v28 }
 0x3fe   : > { %6804 = vmatmul.msk.f32.gmra.mxu0 %vm3297_vm7, %v8552_v5 }
 0x3ff   : > { %v8737_v12 = vpop.f32.mrf.mxu2 }
 0x400   : > { %v8739_v22 = vpop.f32.mrf.mxu1  ;;  %v8741_v60 = vpop.f32.mrf.mxu3 }
 0x401   : > { %10029 = vst [vmem:[#allocation50_spill] sm:$0xff] %v8741_v60 }
 0x403   : > { %6705 = vmatmul.msk.f32.gmra.mxu1 %vm3297_vm7, %v8705_v9  ;;  %v8749_v0 = vpop.f32.mrf.mxu0 }
 0x404   : > { %6738 = vmatmul.msk.f32.gmra.mxu2 %vm3297_vm7, %v8743_v20  ;;  %v8839_v20 = vld [vmem:[#allocation2 + $0xc2] sm:$0xff] }
 0x405   : > { %6771 = vmatmul.msk.f32.gmra.mxu3 %vm3297_vm7, %v8745_v34  ;;  %10047 = vst [vmem:[#allocation68_spill] sm:$0xff] %v8839_v20 }
 0x406   : > { %6805 = vmatmul.msk.f32.gmra.mxu0 %vm3297_vm7, %v8571_v58 }
 0x407   : > { %v8757_v46 = vpop.f32.mrf.mxu2 }
 0x408   : > { %v8759_v5 = vpop.f32.mrf.mxu1  ;;  %v8761_v39 = vpop.f32.mrf.mxu3 }
 0x409   : > { %10032 = vst [vmem:[#allocation53_spill] sm:$0xff] %v8761_v39  ;;  %v8785_v39 = vld [vmem:[#allocation2 + $0xb0] sm:$0xff] }
 0x40a   : > { %10037 = vst [vmem:[#allocation58_spill] sm:$0xff] %v8785_v39 }
 0x40b   : > { %6706 = vmatmul.msk.f32.gmra.mxu1 %vm3297_vm7, %v8725_v28  ;;  %v8769_v61 = vpop.f32.mrf.mxu0 }
 0x40c   : > { %6739 = vmatmul.msk.f32.gmra.mxu2 %vm3297_vm7, %v8763_v59  ;;  %v8823_v59 = vld [vmem:[#allocation2 + $0xb2] sm:$0xff] }
 0x40d   : > { %6772 = vmatmul.msk.f32.gmra.mxu3 %vm3297_vm7, %v8765_v4  ;;  %10044 = vst [vmem:[#allocation65_spill] sm:$0xff] %v8823_v59 }
 0x40e   : > { %6806 = vmatmul.msk.f32.gmra.mxu0 %vm3297_vm7, %v8587_v30 }
 0x40f   : > { %v8777_v58 = vpop.f32.mrf.mxu2 }
 0x410   : > { %v8779_v33 = vpop.f32.mrf.mxu1  ;;  %v8781_v31 = vpop.f32.mrf.mxu3 }
 0x411   : > { %10035 = vst [vmem:[#allocation56_spill] sm:$0xff] %v8781_v31 }
 0x413   : > { %6707 = vmatmul.msk.f32.gmra.mxu1 %vm3297_vm7, %v8745_v34  ;;  %v8789_v60 = vpop.f32.mrf.mxu0  ;;  %v8805_v34 = vld [vmem:[#allocation2 + $0xc0] sm:$0xff] }
 0x414   : > { %6740 = vmatmul.msk.f32.gmra.mxu2 %vm3297_vm7, %v8783_v53  ;;  %10041 = vst [vmem:[#allocation62_spill] sm:$0xff] %v8805_v34 }
 0x415   : > { %6773 = vmatmul.msk.f32.gmra.mxu3 %vm3297_vm7, %v8785_v39 }
 0x416   : > { %6807 = vmatmul.msk.f32.gmra.mxu0 %vm3297_vm7, %v8397_v6 }
 0x417   : > { %v8797_v30 = vpop.f32.mrf.mxu2 }
 0x418   : > { %10038 = vst [vmem:[#allocation59_spill] sm:$0xff] %v8797_v30  ;;  %v8799_v31 = vpop.f32.mrf.mxu1  ;;  %v8801_v41 = vpop.f32.mrf.mxu3 }
 0x419   : > { %10039 = vst [vmem:[#allocation60_spill] sm:$0xff] %v8801_v41 }
 0x41b   : > { %6708 = vmatmul.msk.f32.gmra.mxu1 %vm3297_vm7, %v8765_v4  ;;  %v8809_v53 = vpop.f32.mrf.mxu0  ;;  %v8825_v4 = vld [vmem:[#allocation2 + $0xc8] sm:$0xff] }
 0x41c   : > { %6741 = vmatmul.msk.f32.gmra.mxu2 %vm3297_vm7, %v8803_v17 }
 0x41d   : > { %6774 = vmatmul.msk.f32.gmra.mxu3 %vm3297_vm7, %v8805_v34 }
 0x41e   : > { %6808 = vmatmul.msk.f32.gmra.mxu0 %vm3297_vm7, %v8433_v2 }
 0x41f   : > { %v8817_v6 = vpop.f32.mrf.mxu2 }
 0x420   : > { %10042 = vst [vmem:[#allocation63_spill] sm:$0xff] %v8817_v6  ;;  %v8819_v41 = vpop.f32.mrf.mxu1  ;;  %v8821_v28 = vpop.f32.mrf.mxu3  ;;  %v8841_v6 = vld [vmem:[#allocation2 + $0xd8] sm:$0xff] }
 0x421   : > { %10043 = vst [vmem:[#allocation64_spill] sm:$0xff] %v8821_v28 }
 0x423   : > { %6709 = vmatmul.msk.f32.gmra.mxu1 %vm3297_vm7, %v8785_v39  ;;  %v4512_v17 = vpop.f32.mrf.mxu0 }
 0x424   : > { %6742 = vmatmul.msk.f32.gmra.mxu2 %vm3297_vm7, %v8823_v59 }
 0x425   : > { %6775 = vmatmul.msk.f32.gmra.mxu3 %vm3297_vm7, %v8825_v4 }
 0x426   : > { %6809 = vmatmul.msk.f32.gmra.mxu0 %vm3297_vm7, %v8478_v7 }
 0x427   : > { %v8835_v2 = vpop.f32.mrf.mxu2 }
 0x428   : > { %10045 = vst [vmem:[#allocation66_spill] sm:$0xff] %v8835_v2  ;;  %v8837_v28 = vpop.f32.mrf.mxu3  ;;  %v3719_v9 = vpop.f32.mrf.mxu1 }
 0x429   : > { %10046 = vst [vmem:[#allocation67_spill] sm:$0xff] %v8837_v28  ;;  %v3720_v7 = vadd.f32 %v3719_v9, %v8667_v44 }
 0x42b   : > { %6710 = vmatmul.msk.f32.gmra.mxu1 %vm3297_vm7, %v8805_v34  ;;  %v4515_v39 = vpop.f32.mrf.mxu0  ;;  %v8854_v34 = vld [vmem:[#allocation2 + $0xe0] sm:$0xff] }
 0x42c   : > { %6743 = vmatmul.msk.f32.gmra.mxu2 %vm3297_vm7, %v8839_v20 }
 0x42d   : > { %6776 = vmatmul.msk.f32.gmra.mxu3 %vm3297_vm7, %v8841_v6 }
 0x42e   : > { %6810 = vmatmul.msk.f32.gmra.mxu0 %vm3297_vm7, %v8513_v43 }
 0x42f   : > { %v3962_v28 = vpop.f32.mrf.mxu2 }
 0x430   : > { %v4058_v59 = vadd.f32 %v3962_v28, %v3720_v7  ;;  %v3722_v2 = vpop.f32.mrf.mxu1  ;;  %v4237_v37 = vpop.f32.mrf.mxu3 }
 0x431   : > { %v3723_v43 = vadd.f32 %v3722_v2, %v8685_v14 }
 0x432   : > { %v4333_v30 = vadd.f32 %v4237_v37, %v4058_v59  ;;  %v8867_v59 = vld [vmem:[#allocation2 + $0xda] sm:$0xff] }
 0x433   : > { %6711 = vmatmul.msk.f32.gmra.mxu1 %vm3297_vm7, %v8825_v4  ;;  %v4518_v20 = vpop.f32.mrf.mxu0 }
 0x434   : > { %v8858_v45 = vadd.f32 %v4512_v17, %v4333_v30  ;;  %6744 = vmatmul.msk.f32.gmra.mxu2 %vm3297_vm7, %v8852_v62  ;;  %v8869_v17 = vld [vmem:[#allocation2 + $0xf0] sm:$0xff] }
 0x435   : > { %6777 = vmatmul.msk.f32.gmra.mxu3 %vm3297_vm7, %v8854_v34  ;;  %10049 = vst [vmem:[#allocation70_spill] sm:$0xff] %v8869_v17 }
 0x436   : > { %10048 = vst [vmem:[#allocation69_spill] sm:$0xff] %v8858_v45  ;;  %6811 = vmatmul.msk.f32.gmra.mxu0 %vm3297_vm7, %v8532_v54 }
 0x437   : > { %v3965_v44 = vpop.f32.mrf.mxu2 }
 0x438   : > { %v4059_v37 = vadd.f32 %v3965_v44, %v3723_v43  ;;  %v3725_v9 = vpop.f32.mrf.mxu1  ;;  %v4240_v28 = vpop.f32.mrf.mxu3 }
 0x439   : > { %v3726_v54 = vadd.f32 %v3725_v9, %v8709_v56 }
 0x43a   : > { %v4334_v7 = vadd.f32 %v4240_v28, %v4059_v37  ;;  %v8882_v37 = vld [vmem:[#allocation2 + $0xe2] sm:$0xff] }
 0x43b   : > { %6712 = vmatmul.msk.f32.gmra.mxu1 %vm3297_vm7, %v8841_v6  ;;  %v4521_v30 = vpop.f32.mrf.mxu0 }
 0x43c   : > { %v8873_v45 = vadd.f32 %v4515_v39, %v4334_v7  ;;  %6745 = vmatmul.msk.f32.gmra.mxu2 %vm3297_vm7, %v8867_v59  ;;  %v8884_v39 = vld [vmem:[#allocation2 + $0xf8] sm:$0xff] }
 0x43d   : > { %6778 = vmatmul.msk.f32.gmra.mxu3 %vm3297_vm7, %v8869_v17  ;;  %10051 = vst [vmem:[#allocation72_spill] sm:$0xff] %v8884_v39 }
 0x43e   : > { %10050 = vst [vmem:[#allocation71_spill] sm:$0xff] %v8873_v45  ;;  %6812 = vmatmul.msk.f32.gmra.mxu0 %vm3297_vm7, %v8554_v57 }
 0x43f   : > { %v3968_v14 = vpop.f32.mrf.mxu2 }
 0x440   : > { %v4060_v2 = vadd.f32 %v3968_v14, %v3726_v54  ;;  %v3728_v43 = vpop.f32.mrf.mxu1  ;;  %v4243_v44 = vpop.f32.mrf.mxu3 }
 0x441   : > { %v3729_v57 = vadd.f32 %v3728_v43, %v8729_v16 }
 0x442   : > { %v4335_v28 = vadd.f32 %v4243_v44, %v4060_v2  ;;  %v8897_v2 = vld [vmem:[#allocation2 + $0xf2] sm:$0xff] }
 0x443   : > { %6713 = vmatmul.msk.f32.gmra.mxu1 %vm3297_vm7, %v8854_v34  ;;  %v4524_v7 = vpop.f32.mrf.mxu0 }
 0x444   : > { %v8888_v45 = vadd.f32 %v4518_v20, %v4335_v28  ;;  %6746 = vmatmul.msk.f32.gmra.mxu2 %vm3297_vm7, %v8882_v37  ;;  %v8899_v20 = vld [vmem:[#allocation2 + $0x108] sm:$0xff] }
 0x445   : > { %6779 = vmatmul.msk.f32.gmra.mxu3 %vm3297_vm7, %v8884_v39  ;;  %10053 = vst [vmem:[#allocation74_spill] sm:$0xff] %v8899_v20 }
 0x446   : > { %10052 = vst [vmem:[#allocation73_spill] sm:$0xff] %v8888_v45  ;;  %6813 = vmatmul.msk.f32.gmra.mxu0 %vm3297_vm7, %v8573_v21 }
 0x447   : > { %v3971_v56 = vpop.f32.mrf.mxu2 }
 0x448   : > { %v4061_v9 = vadd.f32 %v3971_v56, %v3729_v57  ;;  %v3731_v54 = vpop.f32.mrf.mxu1  ;;  %v4246_v14 = vpop.f32.mrf.mxu3 }
 0x449   : > { %v3732_v21 = vadd.f32 %v3731_v54, %v8749_v0 }
 0x44a   : > { %v4336_v44 = vadd.f32 %v4246_v14, %v4061_v9  ;;  %v8912_v9 = vld [vmem:[#allocation2 + $0xfa] sm:$0xff] }
 0x44b   : > { %6714 = vmatmul.msk.f32.gmra.mxu1 %vm3297_vm7, %v8869_v17  ;;  %v4527_v28 = vpop.f32.mrf.mxu0 }
 0x44c   : > { %v8903_v45 = vadd.f32 %v4521_v30, %v4336_v44  ;;  %6747 = vmatmul.msk.f32.gmra.mxu2 %vm3297_vm7, %v8897_v2  ;;  %v8914_v30 = vld [vmem:[#allocation2 + $0x110] sm:$0xff] }
 0x44d   : > { %6780 = vmatmul.msk.f32.gmra.mxu3 %vm3297_vm7, %v8899_v20 }
 0x44e   : > { %10054 = vst [vmem:[#allocation75_spill] sm:$0xff] %v8903_v45  ;;  %6814 = vmatmul.msk.f32.gmra.mxu0 %vm3297_vm7, %v8589_v36  ;;  %v8918_v45 = vld [vmem:[#allocation2 + $0x121] sm:$0xff] }
 0x44f   : > { %v3974_v16 = vpop.f32.mrf.mxu2  ;;  %10055 = vst [vmem:[#allocation76_spill] sm:$0xff] %v8918_v45 }
 0x450   : > { %v4062_v43 = vadd.f32 %v3974_v16, %v3732_v21  ;;  %v3734_v57 = vpop.f32.mrf.mxu1  ;;  %v4249_v56 = vpop.f32.mrf.mxu3 }
 0x451   : > { %v3735_v36 = vadd.f32 %v3734_v57, %v8769_v61 }
 0x452   : > { %v4337_v14 = vadd.f32 %v4249_v56, %v4062_v43  ;;  %v8929_v43 = vld [vmem:[#allocation2 + $0x10a] sm:$0xff] }
 0x453   : > { %6715 = vmatmul.msk.f32.gmra.mxu1 %vm3297_vm7, %v8884_v39  ;;  %v4530_v44 = vpop.f32.mrf.mxu0 }
 0x454   : > { %v8920_v17 = vadd.f32 %v4524_v7, %v4337_v14  ;;  %6748 = vmatmul.msk.f32.gmra.mxu2 %vm3297_vm7, %v8912_v9  ;;  %v4112_v7 = vld [vmem:[#allocation2 + $0x120] sm:$0xff] }
 0x455   : > { %6781 = vmatmul.msk.f32.gmra.mxu3 %vm3297_vm7, %v8914_v30 }
 0x456   : > { %10056 = vst [vmem:[#allocation77_spill] sm:$0xff] %v8920_v17  ;;  %6815 = vmatmul.msk.f32.gmra.mxu0 %vm3297_vm7, %v8918_v45  ;;  %v8933_v17 = vld [vmem:[#allocation2 + $0x129] sm:$0xff] }
 0x457   : > { %v3977_v0 = vpop.f32.mrf.mxu2  ;;  %10057 = vst [vmem:[#allocation78_spill] sm:$0xff] %v8933_v17 }
 0x458   : > { %v4063_v54 = vadd.f32 %v3977_v0, %v3735_v36  ;;  %v3737_v21 = vpop.f32.mrf.mxu1  ;;  %v4252_v16 = vpop.f32.mrf.mxu3 }
 0x459   : > { %v3738_v61 = vadd.f32 %v3737_v21, %v8789_v60 }
 0x45a   : > { %v4338_v56 = vadd.f32 %v4252_v16, %v4063_v54  ;;  %v8943_v16 = vld [vmem:[#allocation2 + $0x112] sm:$0xff] }
 0x45b   : > { %6716 = vmatmul.msk.f32.gmra.mxu1 %vm3297_vm7, %v8899_v20  ;;  %v4533_v14 = vpop.f32.mrf.mxu0  ;;  %v4113_v20 = vld [vmem:[#allocation2 + $0x128] sm:$0xff] }
 0x45c   : > { %v8935_v39 = vadd.f32 %v4527_v28, %v4338_v56  ;;  %6749 = vmatmul.msk.f32.gmra.mxu2 %vm3297_vm7, %v8929_v43 }
 0x45d   : > { %6782 = vmatmul.msk.f32.gmra.mxu3 %vm3297_vm7, %v4112_v7 }
 0x45e   : > { %10058 = vst [vmem:[#allocation79_spill] sm:$0xff] %v8935_v39  ;;  %6816 = vmatmul.msk.f32.gmra.mxu0 %vm3297_vm7, %v8933_v17  ;;  %v4114_v17 = vld [vmem:[#allocation2 + $0x138] sm:$0xff] }
 0x45f   : > { %v3980_v57 = vpop.f32.mrf.mxu2 }
 0x460   : > { %v4064_v36 = vadd.f32 %v3980_v57, %v3738_v61  ;;  %v3740_v0 = vpop.f32.mrf.mxu1  ;;  %v4255_v54 = vpop.f32.mrf.mxu3 }
 0x461   : > { %v3741_v60 = vadd.f32 %v3740_v0, %v8809_v53 }
 0x462   : > { %v4339_v45 = vadd.f32 %v4255_v54, %v4064_v36  ;;  %v8955_v54 = vld [vmem:[#allocation2 + $0x122] sm:$0xff] }
 0x463   : > { %6717 = vmatmul.msk.f32.gmra.mxu1 %vm3297_vm7, %v8914_v30  ;;  %v4536_v28 = vpop.f32.mrf.mxu0  ;;  %10060 = vst [vmem:[#allocation81_spill] sm:$0xff] %v8955_v54 }
 0x464   : > { %v8947_v56 = vadd.f32 %v4530_v44, %v4339_v45  ;;  %6750 = vmatmul.msk.f32.gmra.mxu2 %vm3297_vm7, %v8943_v16  ;;  %v3106_v44 = vld [vmem:[%s8272_s19 + $0xf0] sm:$0xff] }
 0x465   : > { %6783 = vmatmul.msk.f32.gmra.mxu3 %vm3297_vm7, %v4113_v20  ;;  %v3146_v53 = vsub.f32 %v3106_v44, %v8275_v35 }
 0x466   : > { %10059 = vst [vmem:[#allocation80_spill] sm:$0xff] %v8947_v56  ;;  %6817 = vmatmul.msk.f32.gmra.mxu0 %vm3297_vm7, %v8483_v48 }
 0x467   : > { %v3983_v21 = vpop.f32.mrf.mxu2  ;;  %v3190_v0 = vmul.f32 %v8307_v47, %v3146_v53  ;;  %v3107_v53 = vld [vmem:[%s8272_s19 + $0xf8] sm:$0xff] }
 0x468   : > { %v4065_v61 = vadd.f32 %v3983_v21, %v3741_v60  ;;  %v3743_v57 = vpop.f32.mrf.mxu1  ;;  %v4258_v36 = vpop.f32.mrf.mxu3 }
 0x469   : > { %v3744_v48 = vadd.f32 %v3743_v57, %v8681_v25  ;;  %v7015_v25 = vld [vmem:[%s9885_s3] ss:$0 sm:$0xff] }
 0x46a   : > { %v4340_v39 = vadd.f32 %v4258_v36, %v4065_v61  ;;  %v3840_v36 = vld [vmem:[#allocation2 + $0x12a] sm:$0xff] }
 0x46b   : > { %6718 = vmatmul.msk.f32.gmra.mxu1 %vm3297_vm7, %v4112_v7  ;;  %v4539_v45 = vpop.f32.mrf.mxu0 }
 0x46c   : > { %v8959_v56 = vadd.f32 %v4533_v14, %v4340_v39  ;;  %6751 = vmatmul.msk.f32.gmra.mxu2 %vm3297_vm7, %v8955_v54  ;;  %v7014_v14 = vld [vmem:[%s9884_s2] ss:$0 sm:$0xff]  ;;  %v3147_v54 = vsub.f32 %v3107_v53, %v8275_v35 }
 0x46d   : > { %6784 = vmatmul.msk.f32.gmra.mxu3 %vm3297_vm7, %v4114_v17  ;;  %v3226_v61 = vmul.f32 %v7014_v14, %v3190_v0 }
 0x46e   : > { %10061 = vst [vmem:[#allocation82_spill] sm:$0xff] %v8959_v56  ;;  %6818 = vmatmul.msk.f32.gmra.mxu0 %vm3297_vm7, %v8517_v23  ;;  %v4115_v56 = vld [vmem:[#allocation2 + $0x140] sm:$0xff] }
 0x46f   : > { %v3986_v7 = vpop.f32.mrf.mxu2  ;;  %v3262_v57 = vadd.f32 %v7015_v25, %v3226_v61 }
 0x470   : > { %v4066_v60 = vadd.f32 %v3986_v7, %v3744_v48  ;;  %v3746_v21 = vpop.f32.mrf.mxu1  ;;  %v4261_v39 = vpop.f32.mrf.mxu3 }
 0x471   : > { %v3294_v7 = vmax.f32 %v3262_v57, 0.0  ;;  %v3747_v0 = vadd.f32 %v3746_v21, %v8699_v29 }
 0x472   : > { %v4341_v44 = vadd.f32 %v4261_v39, %v4066_v60 }
 0x473   : > { %6719 = vmatmul.msk.f32.gmra.mxu1 %vm3297_vm7, %v4113_v20  ;;  %v4542_v23 = vpop.f32.mrf.mxu0  ;;  %3328 = vst.msk [vmem:[#allocation2 + $0x181] sm:$0xff] %vm3297_vm7, %v3294_v7  ;;  %v3191_v20 = vmul.f32 %v8307_v47, %v3147_v54 }
 0x474   : > { %v8977_v48 = vadd.f32 %v4536_v28, %v4341_v44  ;;  %6752 = vmatmul.msk.f32.gmra.mxu2 %vm3297_vm7, %v3840_v36  ;;  %v3841_v36 = vld [vmem:[#allocation2 + $0x13a] sm:$0xff] }
 0x475   : > { %6785 = vmatmul.msk.f32.gmra.mxu3 %vm3297_vm7, %v4115_v56  ;;  %v3227_v44 = vmul.f32 %v7014_v14, %v3191_v20 }
 0x476   : > { %10062 = vst [vmem:[#allocation83_spill] sm:$0xff] %v8977_v48  ;;  %6819 = vmatmul.msk.f32.gmra.mxu0 %vm3297_vm7, %v8534_v32  ;;  %v4116_v48 = vld [vmem:[#allocation2 + $0x150] sm:$0xff] }
 0x477   : > { %v3989_v60 = vpop.f32.mrf.mxu2  ;;  %v3263_v35 = vadd.f32 %v7015_v25, %v3227_v44 }
 0x478   : > { %v4067_v39 = vadd.f32 %v3989_v60, %v3747_v0  ;;  %v3749_v28 = vpop.f32.mrf.mxu1  ;;  %v4264_v61 = vpop.f32.mrf.mxu3 }
 0x479   : > { %v3295_v32 = vmax.f32 %v3263_v35, 0.0  ;;  %v3750_v47 = vadd.f32 %v3749_v28, %v8719_v38 }
 0x47a   : > { %v4342_v57 = vadd.f32 %v4264_v61, %v4067_v39  ;;  %v3843_v61 = vld [vmem:[#allocation2 + $0x152] sm:$0xff] }
 0x47b   : > { %6720 = vmatmul.msk.f32.gmra.mxu1 %vm3297_vm7, %v4114_v17  ;;  %v4545_v53 = vpop.f32.mrf.mxu0  ;;  %3329 = vst.msk [vmem:[#allocation2 + $0x189] sm:$0xff] %vm3297_vm7, %v3295_v32  ;;  %v3842_v17 = vld [vmem:[#allocation2 + $0x142] sm:$0xff] }
 0x47c   : > { %v8988_v29 = vadd.f32 %v4539_v45, %v4342_v57  ;;  %6753 = vmatmul.msk.f32.gmra.mxu2 %vm3297_vm7, %v3841_v36  ;;  %v4117_v45 = vld [vmem:[#allocation2 + $0x158] sm:$0xff]  ;;  %v4118_v36 = vld [vmem:[#allocation2 + $0x168] sm:$0xff] }
 0x47d   : > { %6786 = vmatmul.msk.f32.gmra.mxu3 %vm3297_vm7, %v4116_v48 }
 0x47e   : > { %6820 = vmatmul.msk.f32.gmra.mxu0 %vm3297_vm7, %v8556_v52 }
 0x47f   : > { %v3992_v54 = vpop.f32.mrf.mxu2 }
 0x480   : > { %v4068_v21 = vadd.f32 %v3992_v54, %v3750_v47  ;;  %v3752_v14 = vpop.f32.mrf.mxu1  ;;  %v4267_v25 = vpop.f32.mrf.mxu3  ;;  %v3844_v47 = vld [vmem:[#allocation2 + $0x15a] sm:$0xff] }
 0x481   : > { %v3753_v52 = vadd.f32 %v3752_v14, %v8739_v22 }
 0x482   : > { %v4343_v7 = vadd.f32 %v4267_v25, %v4068_v21  ;;  %v4119_v21 = vld [vmem:[#allocation2 + $0x170] sm:$0xff] }
 0x483   : > { %6721 = vmatmul.msk.f32.gmra.mxu1 %vm3297_vm7, %v4115_v56  ;;  %v4548_v0 = vpop.f32.mrf.mxu0 }
 0x484   : > { %v8997_v20 = vadd.f32 %v4542_v23, %v4343_v7  ;;  %6754 = vmatmul.msk.f32.gmra.mxu2 %vm3297_vm7, %v3842_v17 }
 0x485   : > { %6787 = vmatmul.msk.f32.gmra.mxu3 %vm3297_vm7, %v4117_v45 }
 0x486   : > { %6821 = vmatmul.msk.f32.gmra.mxu0 %vm3297_vm7, %v8575_v8 }
 0x487   : > { %v3995_v38 = vpop.f32.mrf.mxu2 }
 0x488   : > { %v4069_v60 = vadd.f32 %v3995_v38, %v3753_v52  ;;  %v3755_v39 = vpop.f32.mrf.mxu1  ;;  %v4270_v28 = vpop.f32.mrf.mxu3  ;;  %v3845_v52 = vld [vmem:[#allocation2 + $0x16a] sm:$0xff] }
 0x489   : > { %v3756_v22 = vadd.f32 %v3755_v39, %v8759_v5 }
 0x48a   : > { %v4344_v44 = vadd.f32 %v4270_v28, %v4069_v60  ;;  %v4120_v60 = vld [vmem:[#allocation2 + $0x180] sm:$0xff] }
 0x48b   : > { %6722 = vmatmul.msk.f32.gmra.mxu1 %vm3297_vm7, %v4116_v48  ;;  %v4551_v56 = vpop.f32.mrf.mxu0 }
 0x48c   : > { %v9005_v23 = vadd.f32 %v4545_v53, %v4344_v44  ;;  %6755 = vmatmul.msk.f32.gmra.mxu2 %vm3297_vm7, %v3843_v61  ;;  %v4395_v53 = vld [vmem:[#allocation2 + $0x181] sm:$0xff] }
 0x48d   : > { %6788 = vmatmul.msk.f32.gmra.mxu3 %vm3297_vm7, %v4118_v36 }
 0x48e   : > { %6822 = vmatmul.msk.f32.gmra.mxu0 %vm3297_vm7, %v8591_v40 }
 0x48f   : > { %v3998_v8 = vpop.f32.mrf.mxu2 }
 0x490   : > { %v4070_v57 = vadd.f32 %v3998_v8, %v3756_v22  ;;  %v3758_v35 = vpop.f32.mrf.mxu1  ;;  %v4273_v32 = vpop.f32.mrf.mxu3  ;;  %v3846_v8 = vld [vmem:[#allocation2 + $0x172] sm:$0xff] }
 0x491   : > { %v3759_v5 = vadd.f32 %v3758_v35, %v8779_v33  ;;  %v4121_v35 = vld [vmem:[#allocation2 + $0x188] sm:$0xff] }
 0x492   : > { %v4345_v54 = vadd.f32 %v4273_v32, %v4070_v57 }
 0x493   : > { %6723 = vmatmul.msk.f32.gmra.mxu1 %vm3297_vm7, %v4117_v45  ;;  %v4554_v48 = vpop.f32.mrf.mxu0 }
 0x494   : > { %v9013_v14 = vadd.f32 %v4548_v0, %v4345_v54  ;;  %6756 = vmatmul.msk.f32.gmra.mxu2 %vm3297_vm7, %v3844_v47  ;;  %v4396_v0 = vld [vmem:[#allocation2 + $0x189] sm:$0xff] }
 0x495   : > { %6789 = vmatmul.msk.f32.gmra.mxu3 %vm3297_vm7, %v4119_v21 }
 0x496   : > { %6823 = vmatmul.msk.f32.gmra.mxu0 %vm3297_vm7, %v4395_v53 }
 0x497   : > { %v4001_v40 = vpop.f32.mrf.mxu2 }
 0x498   : > { %v4071_v25 = vadd.f32 %v4001_v40, %v3759_v5  ;;  %v3761_v17 = vpop.f32.mrf.mxu1  ;;  %v4276_v7 = vpop.f32.mrf.mxu3  ;;  %v5191_v40 = vld [vmem:[#allocation2 + $0x31] sm:$0xff] }
 0x499   : > { %v3762_v33 = vadd.f32 %v3761_v17, %v8799_v31 }
 0x49a   : > { %v4346_v38 = vadd.f32 %v4276_v7, %v4071_v25 }
 0x49b   : > { %6724 = vmatmul.msk.f32.gmra.mxu1 %vm3297_vm7, %v4118_v36  ;;  %v4557_v45 = vpop.f32.mrf.mxu0 }
 0x49c   : > { %v9020_v39 = vadd.f32 %v4551_v56, %v4346_v38  ;;  %6757 = vmatmul.msk.f32.gmra.mxu2 %vm3297_vm7, %v3845_v52 }
 0x49d   : > { %6790 = vmatmul.msk.f32.gmra.mxu3 %vm3297_vm7, %v4120_v60  ;;  %v5192_v60 = vld [vmem:[#allocation2 + $0x39] sm:$0xff] }
 0x49e   : > { %6824 = vmatmul.msk.f32.gmra.mxu0 %vm3297_vm7, %v4396_v0 }
 0x49f   : > { %v4004_v28 = vpop.f32.mrf.mxu2 }
 0x4a0   : > { %v4072_v61 = vadd.f32 %v4004_v28, %v3762_v33  ;;  %v3764_v44 = vpop.f32.mrf.mxu1  ;;  %v4279_v22 = vpop.f32.mrf.mxu3 }
 0x4a1   : > { %v3765_v31 = vadd.f32 %v3764_v44, %v8819_v41 }
 0x4a2   : > { %v4347_v57 = vadd.f32 %v4279_v22, %v4072_v61 }
 0x4a3   : > { %6725 = vmatmul.msk.f32.gmra.mxu1 %vm3297_vm7, %v4119_v21  ;;  %v4560_v36 = vpop.f32.mrf.mxu0 }
 0x4a4   : > { %v9027_v56 = vadd.f32 %v4554_v48, %v4347_v57  ;;  %6758 = vmatmul.msk.f32.gmra.mxu2 %vm3297_vm7, %v3846_v8 }
 0x4a5   : > { %6791 = vmatmul.msk.f32.gmra.mxu3 %vm3297_vm7, %v4121_v35 }
 0x4a6   : > { %6925 = vmatmul.msk.f32.vlgmr.msra.gmra.mxu0 %vm3297_vm7, %v8631_v1 }
 0x4a7   : > { %v4007_v32 = vpop.f32.mrf.mxu2 }
 0x4a8   : > { %v4073_v47 = vadd.f32 %v4007_v32, %v3765_v31  ;;  %v3767_v54 = vpop.f32.mrf.mxu1  ;;  %v4282_v53 = vpop.f32.mrf.mxu3 }
 0x4a9   : > { %v3768_v41 = vadd.f32 %v3767_v54, %v8697_v63 }
 0x4aa   : > { %v4348_v5 = vadd.f32 %v4282_v53, %v4073_v47 }
 0x4ab   : > { %6826 = vmatmul.msk.f32.vlgmr.msra.gmra.mxu1 %vm3297_vm7, %v8610_v55  ;;  %v4563_v21 = vpop.f32.mrf.mxu0 }
 0x4ac   : > { %v9036_v48 = vadd.f32 %v4557_v45, %v4348_v5  ;;  %6859 = vmatmul.msk.f32.vlgmr.msra.gmra.mxu2 %vm3297_vm7, %v8612_v13 }
 0x4ad   : > { %6892 = vmatmul.msk.f32.vlgmr.msra.gmra.mxu3 %vm3297_vm7, %v5191_v40 }
 0x4ae   : > { %6926 = vmatmul.msk.f32.gmra.mxu0 %vm3297_vm7, %v8643_v50 }
 0x4af   : > { %v4010_v25 = vpop.f32.mrf.mxu2 }
 0x4b0   : > { %v4074_v17 = vadd.f32 %v4010_v25, %v3768_v41  ;;  %v3770_v7 = vpop.f32.mrf.mxu1  ;;  %v4285_v52 = vpop.f32.mrf.mxu3  ;;  %v5196_v41 = vld [vmem:[#allocation2 + $0x69] sm:$0xff] }
 0x4b1   : > { %v3771_v13 = vadd.f32 %v3770_v7, %v8717_v18  ;;  %v10065_v7 = vld [vmem:[#allocation48_spill] sm:$0xff] }
 0x4b2   : > { %v4349_v38 = vadd.f32 %v4285_v52, %v4074_v17 }
 0x4b3   : > { %6827 = vmatmul.msk.f32.gmra.mxu1 %vm3297_vm7, %v8620_v42  ;;  %v4566_v55 = vpop.f32.mrf.mxu0 }
 0x4b4   : > { %v9046_v45 = vadd.f32 %v4560_v36, %v4349_v38  ;;  %6860 = vmatmul.msk.f32.gmra.mxu2 %vm3297_vm7, %v8622_v26 }
 0x4b5   : > { %6893 = vmatmul.msk.f32.gmra.mxu3 %vm3297_vm7, %v5192_v60 }
 0x4b6   : > { %6927 = vmatmul.msk.f32.gmra.mxu0 %vm3297_vm7, %v8655_v3 }
 0x4b7   : > { %v4013_v63 = vpop.f32.mrf.mxu2 }
 0x4b8   : > { %v4075_v0 = vadd.f32 %v4013_v63, %v3771_v13  ;;  %v3773_v33 = vpop.f32.mrf.mxu1  ;;  %v4288_v28 = vpop.f32.mrf.mxu3  ;;  %v5197_v63 = vld [vmem:[#allocation2 + $0x79] sm:$0xff] }
 0x4b9   : > { %v3774_v26 = vadd.f32 %v3773_v33, %v8737_v12  ;;  %v10066_v33 = vld [vmem:[#allocation44_spill] sm:$0xff] }
 0x4ba   : > { %v4350_v61 = vadd.f32 %v4288_v28, %v4075_v0  ;;  %v10067_v28 = vld [vmem:[#allocation63_spill] sm:$0xff] }
 0x4bb   : > { %6828 = vmatmul.msk.f32.gmra.mxu1 %vm3297_vm7, %v8631_v1  ;;  %v4569_v42 = vpop.f32.mrf.mxu0 }
 0x4bc   : > { %v9056_v44 = vadd.f32 %v4563_v21, %v4350_v61  ;;  %6861 = vmatmul.msk.f32.gmra.mxu2 %vm3297_vm7, %v8633_v15 }
 0x4bd   : > { %6894 = vmatmul.msk.f32.gmra.mxu3 %vm3297_vm7, %v8560_v27 }
 0x4be   : > { %6928 = vmatmul.msk.f32.gmra.mxu0 %vm3297_vm7, %v8669_v11 }
 0x4bf   : > { %v4016_v18 = vpop.f32.mrf.mxu2 }
 0x4c0   : > { %v4076_v22 = vadd.f32 %v4016_v18, %v3774_v26  ;;  %v3776_v8 = vpop.f32.mrf.mxu1  ;;  %v4291_v57 = vpop.f32.mrf.mxu3 }
 0x4c1   : > { %v3777_v27 = vadd.f32 %v3776_v8, %v8757_v46 }
 0x4c2   : > { %v4351_v35 = vadd.f32 %v4291_v57, %v4076_v22 }
 0x4c3   : > { %6829 = vmatmul.msk.f32.gmra.mxu1 %vm3297_vm7, %v8643_v50  ;;  %v4572_v1 = vpop.f32.mrf.mxu0  ;;  %v5195_v50 = vld [vmem:[#allocation2 + $0x61] sm:$0xff] }
 0x4c4   : > { %v9067_v36 = vadd.f32 %v4566_v55, %v4351_v35  ;;  %6862 = vmatmul.msk.f32.gmra.mxu2 %vm3297_vm7, %v8645_v49  ;;  %v5198_v35 = vld [vmem:[#allocation2 + $0x81] sm:$0xff] }
 0x4c5   : > { %6895 = vmatmul.msk.f32.gmra.mxu3 %vm3297_vm7, %v8579_v24 }
 0x4c6   : > { %6929 = vmatmul.msk.f32.gmra.mxu0 %vm3297_vm7, %v8683_v19 }
 0x4c7   : > { %v4019_v15 = vpop.f32.mrf.mxu2 }
 0x4c8   : > { %v4077_v12 = vadd.f32 %v4019_v15, %v3777_v27  ;;  %v3779_v31 = vpop.f32.mrf.mxu1  ;;  %v4294_v32 = vpop.f32.mrf.mxu3  ;;  %v10069_v27 = vld [vmem:[#allocation46_spill] sm:$0xff] }
 0x4c9   : > { %v3780_v24 = vadd.f32 %v3779_v31, %v8777_v58  ;;  %v10064_v58 = vld [vmem:[#allocation59_spill] sm:$0xff]  ;;  %v10070_v15 = vld [vmem:[#allocation66_spill] sm:$0xff] }
 0x4ca   : > { %v4352_v47 = vadd.f32 %v4294_v32, %v4077_v12  ;;  %v10071_v31 = vld [vmem:[#allocation54_spill] sm:$0xff] }
 0x4cb   : > { %6830 = vmatmul.msk.f32.gmra.mxu1 %vm3297_vm7, %v8655_v3  ;;  %v4575_v54 = vpop.f32.mrf.mxu0 }
 0x4cc   : > { %v9078_v53 = vadd.f32 %v4569_v42, %v4352_v47  ;;  %6863 = vmatmul.msk.f32.gmra.mxu2 %vm3297_vm7, %v8657_v10  ;;  %v10063_v10 = vld [vmem:[#allocation43_spill] sm:$0xff] }
 0x4cd   : > { %6896 = vmatmul.msk.f32.gmra.mxu3 %vm3297_vm7, %v5195_v50  ;;  %v10068_v42 = vld [vmem:[#allocation51_spill] sm:$0xff] }
 0x4ce   : > { %6930 = vmatmul.msk.f32.gmra.mxu0 %vm3297_vm7, %v8703_v51 }
 0x4cf   : > { %v4022_v49 = vpop.f32.mrf.mxu2 }
 0x4d0   : > { %v4078_v46 = vadd.f32 %v4022_v49, %v3780_v24  ;;  %v3782_v5 = vpop.f32.mrf.mxu1  ;;  %v4297_v40 = vpop.f32.mrf.mxu3  ;;  %v5199_v49 = vld [vmem:[#allocation2 + $0x91] sm:$0xff] }
 0x4d1   : > { %v3783_v17 = vadd.f32 %v3782_v5, %v10064_v58  ;;  %v10072_v5 = vld [vmem:[#allocation49_spill] sm:$0xff] }
 0x4d2   : > { %v4353_v21 = vadd.f32 %v4297_v40, %v4078_v46  ;;  %v10073_v40 = vld [vmem:[#allocation45_spill] sm:$0xff] }
 0x4d3   : > { %6831 = vmatmul.msk.f32.gmra.mxu1 %vm3297_vm7, %v8669_v11  ;;  %v4578_v3 = vpop.f32.mrf.mxu0 }
 0x4d4   : > { %v9088_v25 = vadd.f32 %v4572_v1, %v4353_v21  ;;  %6864 = vmatmul.msk.f32.gmra.mxu2 %vm3297_vm7, %v10063_v10 }
 0x4d5   : > { %6897 = vmatmul.msk.f32.gmra.mxu3 %vm3297_vm7, %v5196_v41  ;;  %v10074_v41 = vld [vmem:[#allocation57_spill] sm:$0xff] }
 0x4d6   : > { %6931 = vmatmul.msk.f32.gmra.mxu0 %vm3297_vm7, %v10065_v7 }
 0x4d7   : > { %v4025_v52 = vpop.f32.mrf.mxu2 }
 0x4d8   : > { %v4079_v38 = vadd.f32 %v4025_v52, %v3783_v17  ;;  %v3785_v60 = vpop.f32.mrf.mxu1  ;;  %v4300_v55 = vpop.f32.mrf.mxu3 }
 0x4d9   : > { %v3786_v61 = vadd.f32 %v3785_v60, %v10067_v28 }
 0x4da   : > { %v4354_v13 = vadd.f32 %v4300_v55, %v4079_v38  ;;  %v5200_v38 = vld [vmem:[#allocation2 + $0x99] sm:$0xff] }
 0x4db   : > { %6832 = vmatmul.msk.f32.gmra.mxu1 %vm3297_vm7, %v8683_v19  ;;  %v4581_v11 = vpop.f32.mrf.mxu0  ;;  %v10075_v55 = vld [vmem:[#allocation52_spill] sm:$0xff] }
 0x4dc   : > { %v9098_v0 = vadd.f32 %v4575_v54, %v4354_v13  ;;  %6865 = vmatmul.msk.f32.gmra.mxu2 %vm3297_vm7, %v10066_v33  ;;  %v10076_v13 = vld [vmem:[#allocation47_spill] sm:$0xff] }
 0x4dd   : > { %6898 = vmatmul.msk.f32.gmra.mxu3 %vm3297_vm7, %v5197_v63 }
 0x4de   : > { %6932 = vmatmul.msk.f32.gmra.mxu0 %vm3297_vm7, %v10068_v42 }
 0x4df   : > { %v4028_v26 = vpop.f32.mrf.mxu2 }
 0x4e0   : > { %v4080_v18 = vadd.f32 %v4028_v26, %v3786_v61  ;;  %v3788_v22 = vpop.f32.mrf.mxu1  ;;  %v4303_v8 = vpop.f32.mrf.mxu3 }
 0x4e1   : > { %v3789_v12 = vadd.f32 %v3788_v22, %v10070_v15  ;;  %v5201_v22 = vld [vmem:[#allocation2 + $0xa9] sm:$0xff] }
 0x4e2   : > { %v4355_v57 = vadd.f32 %v4303_v8, %v4080_v18 }
 0x4e3   : > { %6833 = vmatmul.msk.f32.gmra.mxu1 %vm3297_vm7, %v8703_v51  ;;  %v4584_v19 = vpop.f32.mrf.mxu0 }
 0x4e4   : > { %v9108_v1 = vadd.f32 %v4578_v3, %v4355_v57  ;;  %6866 = vmatmul.msk.f32.gmra.mxu2 %vm3297_vm7, %v10069_v27  ;;  %v10078_v57 = vld [vmem:[#allocation55_spill] sm:$0xff]  ;;  %v10080_v27 = vld [vmem:[#allocation65_spill] sm:$0xff] }
 0x4e5   : > { %6899 = vmatmul.msk.f32.gmra.mxu3 %vm3297_vm7, %v5198_v35  ;;  %v10079_v35 = vld [vmem:[#allocation50_spill] sm:$0xff] }
 0x4e6   : > { %6933 = vmatmul.msk.f32.gmra.mxu0 %vm3297_vm7, %v10071_v31 }
 0x4e7   : > { %v4031_v32 = vpop.f32.mrf.mxu2 }
 0x4e8   : > { %v4081_v47 = vadd.f32 %v4031_v32, %v3789_v12  ;;  %v3791_v50 = vpop.f32.mrf.mxu1  ;;  %v4306_v54 = vpop.f32.mrf.mxu3 }
 0x4e9   : > { %v3792_v21 = vadd.f32 %v3791_v50, %v10073_v40  ;;  %v10083_v40 = vld [vmem:[#allocation68_spill] sm:$0xff] }
 0x4ea   : > { %v4356_v24 = vadd.f32 %v4306_v54, %v4081_v47  ;;  %v5202_v54 = vld [vmem:[#allocation2 + $0xb1] sm:$0xff] }
 0x4eb   : > { %6834 = vmatmul.msk.f32.gmra.mxu1 %vm3297_vm7, %v10065_v7  ;;  %v4587_v51 = vpop.f32.mrf.mxu0 }
 0x4ec   : > { %v9118_v46 = vadd.f32 %v4581_v11, %v4356_v24  ;;  %6867 = vmatmul.msk.f32.gmra.mxu2 %vm3297_vm7, %v10072_v5  ;;  %v10077_v11 = vld [vmem:[#allocation61_spill] sm:$0xff] }
 0x4ed   : > { %6900 = vmatmul.msk.f32.gmra.mxu3 %vm3297_vm7, %v5199_v49  ;;  %v10081_v49 = vld [vmem:[#allocation58_spill] sm:$0xff] }
 0x4ee   : > { %6934 = vmatmul.msk.f32.gmra.mxu0 %vm3297_vm7, %v10074_v41 }
 0x4ef   : > { %v4034_v3 = vpop.f32.mrf.mxu2 }
 0x4f0   : > { %v4082_v10 = vadd.f32 %v4034_v3, %v3792_v21  ;;  %v3794_v58 = vpop.f32.mrf.mxu1  ;;  %v4309_v17 = vpop.f32.mrf.mxu3 }
 0x4f1   : > { %v3795_v63 = vadd.f32 %v3794_v58, %v10076_v13 }
 0x4f2   : > { %v4357_v52 = vadd.f32 %v4309_v17, %v4082_v10 }
 0x4f3   : > { %6835 = vmatmul.msk.f32.gmra.mxu1 %vm3297_vm7, %v10068_v42  ;;  %v4590_v7 = vpop.f32.mrf.mxu0 }
 0x4f4   : > { %v9128_v60 = vadd.f32 %v4584_v19, %v4357_v52  ;;  %6868 = vmatmul.msk.f32.gmra.mxu2 %vm3297_vm7, %v10075_v55  ;;  %v5203_v52 = vld [vmem:[#allocation2 + $0xc1] sm:$0xff] }
 0x4f5   : > { %6901 = vmatmul.msk.f32.gmra.mxu3 %vm3297_vm7, %v5200_v38  ;;  %v10085_v55 = vld [vmem:[#allocation56_spill] sm:$0xff] }
 0x4f6   : > { %6935 = vmatmul.msk.f32.gmra.mxu0 %vm3297_vm7, %v10077_v11 }
 0x4f7   : > { %v4037_v33 = vpop.f32.mrf.mxu2 }
 0x4f8   : > { %v4083_v28 = vadd.f32 %v4037_v33, %v3795_v63  ;;  %v3797_v61 = vpop.f32.mrf.mxu1  ;;  %v4312_v26 = vpop.f32.mrf.mxu3 }
 0x4f9   : > { %v3798_v19 = vadd.f32 %v3797_v61, %v10079_v35 }
 0x4fa   : > { %v4358_v18 = vadd.f32 %v4312_v26, %v4083_v28 }
 0x4fb   : > { %6836 = vmatmul.msk.f32.gmra.mxu1 %vm3297_vm7, %v10071_v31  ;;  %v4593_v42 = vpop.f32.mrf.mxu0 }
 0x4fc   : > { %v9138_v8 = vadd.f32 %v4587_v51, %v4358_v18  ;;  %6869 = vmatmul.msk.f32.gmra.mxu2 %vm3297_vm7, %v10078_v57  ;;  %v10082_v51 = vld [vmem:[#allocation53_spill] sm:$0xff] }
 0x4fd   : > { %6902 = vmatmul.msk.f32.gmra.mxu3 %vm3297_vm7, %v5201_v22  ;;  %v5204_v18 = vld [vmem:[#allocation2 + $0xc9] sm:$0xff] }
 0x4fe   : > { %6936 = vmatmul.msk.f32.gmra.mxu0 %vm3297_vm7, %v10080_v27 }
 0x4ff   : > { %v4040_v15 = vpop.f32.mrf.mxu2 }
 0x500   : > { %v4084_v12 = vadd.f32 %v4040_v15, %v3798_v19  ;;  %v3800_v32 = vpop.f32.mrf.mxu1  ;;  %v4315_v47 = vpop.f32.mrf.mxu3 }
 0x501   : > { %v3801_v5 = vadd.f32 %v3800_v32, %v10082_v51 }
 0x502   : > { %v4359_v50 = vadd.f32 %v4315_v47, %v4084_v12  ;;  %v5205_v47 = vld [vmem:[#allocation2 + $0xd9] sm:$0xff] }
 0x503   : > { %6837 = vmatmul.msk.f32.gmra.mxu1 %vm3297_vm7, %v10074_v41  ;;  %v4596_v31 = vpop.f32.mrf.mxu0 }
 0x504   : > { %v9148_v24 = vadd.f32 %v4590_v7, %v4359_v50  ;;  %6870 = vmatmul.msk.f32.gmra.mxu2 %vm3297_vm7, %v10081_v49  ;;  %v10084_v7 = vld [vmem:[#allocation62_spill] sm:$0xff] }
 0x505   : > { %6903 = vmatmul.msk.f32.gmra.mxu3 %vm3297_vm7, %v5202_v54 }
 0x506   : > { %6937 = vmatmul.msk.f32.gmra.mxu0 %vm3297_vm7, %v10083_v40 }
 0x507   : > { %v4043_v21 = vpop.f32.mrf.mxu2 }
 0x508   : > { %v4085_v3 = vadd.f32 %v4043_v21, %v3801_v5  ;;  %v3803_v10 = vpop.f32.mrf.mxu1  ;;  %v4318_v58 = vpop.f32.mrf.mxu3 }
 0x509   : > { %v3804_v13 = vadd.f32 %v3803_v10, %v10085_v55 }
 0x50a   : > { %v4360_v17 = vadd.f32 %v4318_v58, %v4085_v3  ;;  %v5206_v3 = vld [vmem:[#allocation2 + $0xe1] sm:$0xff] }
 0x50b   : > { %6838 = vmatmul.msk.f32.gmra.mxu1 %vm3297_vm7, %v10077_v11  ;;  %v4599_v41 = vpop.f32.mrf.mxu0 }
 0x50c   : > { %v9158_v38 = vadd.f32 %v4593_v42, %v4360_v17  ;;  %6871 = vmatmul.msk.f32.gmra.mxu2 %vm3297_vm7, %v10084_v7  ;;  %v10086_v42 = vld [vmem:[#allocation60_spill] sm:$0xff] }
 0x50d   : > { %6904 = vmatmul.msk.f32.gmra.mxu3 %vm3297_vm7, %v5203_v52 }
 0x50e   : > { %6938 = vmatmul.msk.f32.gmra.mxu0 %vm3297_vm7, %v8852_v62 }
 0x50f   : > { %v4046_v63 = vpop.f32.mrf.mxu2 }
 0x510   : > { %v4086_v33 = vadd.f32 %v4046_v63, %v3804_v13  ;;  %v3806_v28 = vpop.f32.mrf.mxu1  ;;  %v4321_v61 = vpop.f32.mrf.mxu3  ;;  %v5207_v13 = vld [vmem:[#allocation2 + $0xf1] sm:$0xff] }
 0x511   : > { %v3807_v57 = vadd.f32 %v3806_v28, %v10086_v42 }
 0x512   : > { %v4361_v26 = vadd.f32 %v4321_v61, %v4086_v33  ;;  %v10090_v33 = vld [vmem:[#allocation69_spill] sm:$0xff] }
 0x513   : > { %6839 = vmatmul.msk.f32.gmra.mxu1 %vm3297_vm7, %v10080_v27  ;;  %v4602_v11 = vpop.f32.mrf.mxu0 }
 0x514   : > { %v9168_v22 = vadd.f32 %v4596_v31, %v4361_v26  ;;  %6872 = vmatmul.msk.f32.gmra.mxu2 %vm3297_vm7, %v8825_v4  ;;  %v10087_v4 = vld [vmem:[#allocation64_spill] sm:$0xff] }
 0x515   : > { %6905 = vmatmul.msk.f32.gmra.mxu3 %vm3297_vm7, %v5204_v18 }
 0x516   : > { %6939 = vmatmul.msk.f32.gmra.mxu0 %vm3297_vm7, %v8867_v59 }
 0x517   : > { %v4049_v35 = vpop.f32.mrf.mxu2 }
 0x518   : > { %v4087_v19 = vadd.f32 %v4049_v35, %v3807_v57  ;;  %v3809_v15 = vpop.f32.mrf.mxu1  ;;  %v4324_v12 = vpop.f32.mrf.mxu3 }
 0x519   : > { %v3810_v54 = vadd.f32 %v3809_v15, %v10087_v4  ;;  %v10092_v15 = vld [vmem:[#allocation71_spill] sm:$0xff] }
 0x51a   : > { %v4362_v32 = vadd.f32 %v4324_v12, %v4087_v19  ;;  %v10091_v19 = vld [vmem:[#allocation72_spill] sm:$0xff] }
 0x51b   : > { %6840 = vmatmul.msk.f32.gmra.mxu1 %vm3297_vm7, %v10083_v40  ;;  %v4605_v27 = vpop.f32.mrf.mxu0 }
 0x51c   : > { %v9178_v50 = vadd.f32 %v4599_v41, %v4362_v32  ;;  %6873 = vmatmul.msk.f32.gmra.mxu2 %vm3297_vm7, %v8841_v6  ;;  %v10088_v6 = vld [vmem:[#allocation67_spill] sm:$0xff] }
 0x51d   : > { %6906 = vmatmul.msk.f32.gmra.mxu3 %vm3297_vm7, %v5205_v47 }
 0x51e   : > { %6940 = vmatmul.msk.f32.gmra.mxu0 %vm3297_vm7, %v8882_v37 }
 0x51f   : > { %v4052_v31 = vpop.f32.mrf.mxu2 }
 0x520   : > { %v4088_v49 = vadd.f32 %v4052_v31, %v3810_v54  ;;  %v3812_v51 = vpop.f32.mrf.mxu1  ;;  %v4327_v5 = vpop.f32.mrf.mxu3  ;;  %v5209_v54 = vld [vmem:[#allocation2 + $0x109] sm:$0xff] }
 0x521   : > { %v3813_v58 = vadd.f32 %v3812_v51, %v10088_v6 }
 0x522   : > { %v4363_v21 = vadd.f32 %v4327_v5, %v4088_v49  ;;  %v10093_v5 = vld [vmem:[#allocation74_spill] sm:$0xff] }
 0x523   : > { %6841 = vmatmul.msk.f32.gmra.mxu1 %vm3297_vm7, %v8852_v62  ;;  %v5613_v40 = vpop.f32.mrf.mxu0 }
 0x524   : > { %v9188_v10 = vadd.f32 %v4602_v11, %v4363_v21  ;;  %6874 = vmatmul.msk.f32.gmra.mxu2 %vm3297_vm7, %v8854_v34  ;;  %v10089_v34 = vld [vmem:[#allocation70_spill] sm:$0xff] }
 0x525   : > { %6907 = vmatmul.msk.f32.gmra.mxu3 %vm3297_vm7, %v5206_v3 }
 0x526   : > { %6941 = vmatmul.msk.f32.gmra.mxu0 %vm3297_vm7, %v8897_v2 }
 0x527   : > { %v4055_v17 = vpop.f32.mrf.mxu2 }
 0x528   : > { %v4089_v52 = vadd.f32 %v4055_v17, %v3813_v58  ;;  %v4330_v41 = vpop.f32.mrf.mxu3  ;;  %v4787_v7 = vpop.f32.mrf.mxu1 }
 0x529   : > { %v4883_v28 = vadd.f32 %v4787_v7, %v10090_v33 }
 0x52a   : > { %v4364_v55 = vadd.f32 %v4330_v41, %v4089_v52 }
 0x52b   : > { %6842 = vmatmul.msk.f32.gmra.mxu1 %vm3297_vm7, %v8867_v59  ;;  %v5616_v62 = vpop.f32.mrf.mxu0  ;;  %v5208_v59 = vld [vmem:[#allocation2 + $0xf9] sm:$0xff] }
 0x52c   : > { %v9198_v63 = vadd.f32 %v4605_v27, %v4364_v55  ;;  %6875 = vmatmul.msk.f32.gmra.mxu2 %vm3297_vm7, %v10089_v34  ;;  %v5210_v34 = vld [vmem:[#allocation2 + $0x111] sm:$0xff] }
 0x52d   : > { %6908 = vmatmul.msk.f32.gmra.mxu3 %vm3297_vm7, %v5207_v13 }
 0x52e   : > { %6942 = vmatmul.msk.f32.gmra.mxu0 %vm3297_vm7, %v8912_v9 }
 0x52f   : > { %v5063_v61 = vpop.f32.mrf.mxu2 }
 0x530   : > { %v5159_v26 = vadd.f32 %v5063_v61, %v4883_v28  ;;  %v4790_v18 = vpop.f32.mrf.mxu1  ;;  %v5338_v11 = vpop.f32.mrf.mxu3 }
 0x531   : > { %v4884_v12 = vadd.f32 %v4790_v18, %v10092_v15 }
 0x532   : > { %v5434_v42 = vadd.f32 %v5338_v11, %v5159_v26  ;;  %v10096_v11 = vld [vmem:[#allocation81_spill] sm:$0xff] }
 0x533   : > { %6843 = vmatmul.msk.f32.gmra.mxu1 %vm3297_vm7, %v8882_v37  ;;  %v5619_v57 = vpop.f32.mrf.mxu0 }
 0x534   : > { %v5709_v35 = vadd.f32 %v5613_v40, %v5434_v42  ;;  %6876 = vmatmul.msk.f32.gmra.mxu2 %vm3297_vm7, %v10091_v19  ;;  %v4660_v19 = vld [vmem:[#allocation2 + $0x10a] sm:$0xff] }
 0x535   : > { %6909 = vmatmul.msk.f32.gmra.mxu3 %vm3297_vm7, %v5208_v59 }
 0x536   : > { %5741 = vst.msk [vmem:[%s8272_s19] sm:$0xff] %vm3297_vm7, %v5709_v35  ;;  %6943 = vmatmul.msk.f32.gmra.mxu0 %vm3297_vm7, %v8929_v43  ;;  %v5847_v49 = vmul.f32 %v5709_v35, %v5709_v35  ;;  %v5774_v21 = vsel %vm3297_vm7, %v5709_v35, 0.0  ;;  %v10094_v43 = vld [vmem:[#allocation73_spill] sm:$0xff] }
 0x537   : > { %v5066_v32 = vpop.f32.mrf.mxu2 }
 0x538   : > { %v5160_v47 = vadd.f32 %v5066_v32, %v4884_v12  ;;  %v4793_v27 = vpop.f32.mrf.mxu1  ;;  %v5341_v4 = vpop.f32.mrf.mxu3  ;;  %v5879_v17 = vsel %vm3297_vm7, %v5847_v49, 0.0  ;;  %v4936_v12 = vld [vmem:[#allocation2 + $0x120] sm:$0xff] }
 0x539   : > { %v4885_v3 = vadd.f32 %v4793_v27, %v10094_v43  ;;  %v5487_v27 = vld [vmem:[#allocation2 + $0x12a] sm:$0xff] }
 0x53a   : > { %v5435_v37 = vadd.f32 %v5341_v4, %v5160_v47 }
 0x53b   : > { %6844 = vmatmul.msk.f32.gmra.mxu1 %vm3297_vm7, %v8897_v2  ;;  %v5622_v31 = vpop.f32.mrf.mxu0 }
 0x53c   : > { %v5710_v51 = vadd.f32 %v5616_v62, %v5435_v37  ;;  %6877 = vmatmul.msk.f32.gmra.mxu2 %vm3297_vm7, %v10093_v5  ;;  %v10097_v37 = vld [vmem:[#allocation76_spill] sm:$0xff] }
 0x53d   : > { %6910 = vmatmul.msk.f32.gmra.mxu3 %vm3297_vm7, %v5209_v54  ;;  %v10098_v54 = vld [vmem:[#allocation77_spill] sm:$0xff] }
 0x53e   : > { %5742 = vst.msk [vmem:[%s8272_s19 + $0x8] sm:$0xff] %vm3297_vm7, %v5710_v51  ;;  %v5775_v40 = vsel %vm3297_vm7, %v5710_v51, 0.0  ;;  %v5848_v6 = vmul.f32 %v5710_v51, %v5710_v51  ;;  %6944 = vmatmul.msk.f32.gmra.mxu0 %vm3297_vm7, %v8943_v16  ;;  %v10095_v16 = vld [vmem:[#allocation75_spill] sm:$0xff] }
 0x53f   : > { %v5776_v2 = vadd.f32 %v5775_v40, %v5774_v21  ;;  %v5069_v58 = vpop.f32.mrf.mxu2 }
 0x540   : > { %v5880_v52 = vsel %vm3297_vm7, %v5848_v6, 0.0  ;;  %v5161_v41 = vadd.f32 %v5069_v58, %v4885_v3  ;;  %v4796_v7 = vpop.f32.mrf.mxu1  ;;  %v5344_v55 = vpop.f32.mrf.mxu3 }
 0x541   : > { %v5881_v13 = vadd.f32 %v5880_v52, %v5879_v17  ;;  %v4886_v61 = vadd.f32 %v4796_v7, %v10095_v16  ;;  %v4937_v17 = vld [vmem:[#allocation2 + $0x128] sm:$0xff]  ;;  %v5488_v7 = vld [vmem:[#allocation2 + $0x13a] sm:$0xff] }
 0x542   : > { %v5436_v62 = vadd.f32 %v5344_v55, %v5161_v41 }
 0x543   : > { %6845 = vmatmul.msk.f32.gmra.mxu1 %vm3297_vm7, %v8912_v9  ;;  %v5625_v33 = vpop.f32.mrf.mxu0 }
 0x544   : > { %v5711_v28 = vadd.f32 %v5619_v57, %v5436_v62  ;;  %6878 = vmatmul.msk.f32.gmra.mxu2 %vm3297_vm7, %v8914_v30  ;;  %v10100_v62 = vld [vmem:[#allocation79_spill] sm:$0xff] }
 0x545   : > { %6911 = vmatmul.msk.f32.gmra.mxu3 %vm3297_vm7, %v5210_v34 }
 0x546   : > { %5743 = vst.msk [vmem:[%s8272_s19 + $0x10] sm:$0xff] %vm3297_vm7, %v5711_v28  ;;  %v5777_v26 = vsel %vm3297_vm7, %v5711_v28, 0.0  ;;  %v5849_v18 = vmul.f32 %v5711_v28, %v5711_v28  ;;  %6945 = vmatmul.msk.f32.gmra.mxu0 %vm3297_vm7, %v10096_v11 }
 0x547   : > { %v5778_v42 = vadd.f32 %v5777_v26, %v5776_v2  ;;  %v5072_v59 = vpop.f32.mrf.mxu2  ;;  %v4661_v2 = vld [vmem:[#allocation2 + $0x112] sm:$0xff] }
 0x548   : > { %v5882_v9 = vsel %vm3297_vm7, %v5849_v18, 0.0  ;;  %v5162_v57 = vadd.f32 %v5072_v59, %v4886_v61  ;;  %v4799_v35 = vpop.f32.mrf.mxu1  ;;  %v5347_v30 = vpop.f32.mrf.mxu3  ;;  %v4662_v59 = vld [vmem:[#allocation2 + $0x122] sm:$0xff] }
 0x549   : > { %v5883_v15 = vadd.f32 %v5882_v9, %v5881_v13  ;;  %v4887_v49 = vadd.f32 %v4799_v35, %v10098_v54  ;;  %v10099_v13 = vld [vmem:[#allocation78_spill] sm:$0xff] }
 0x54a   : > { %v5437_v32 = vadd.f32 %v5347_v30, %v5162_v57  ;;  %v4938_v57 = vld [vmem:[#allocation2 + $0x138] sm:$0xff] }
 0x54b   : > { %6846 = vmatmul.msk.f32.gmra.mxu1 %vm3297_vm7, %v4660_v19  ;;  %v5628_v47 = vpop.f32.mrf.mxu0  ;;  %v5213_v30 = vld [vmem:[#allocation2 + $0x139] sm:$0xff] }
 0x54c   : > { %v5712_v4 = vadd.f32 %v5622_v31, %v5437_v32  ;;  %6879 = vmatmul.msk.f32.gmra.mxu2 %vm3297_vm7, %v4936_v12  ;;  %v10101_v32 = vld [vmem:[#allocation80_spill] sm:$0xff] }
 0x54d   : > { %6912 = vmatmul.msk.f32.gmra.mxu3 %vm3297_vm7, %v10097_v37 }
 0x54e   : > { %5744 = vst.msk [vmem:[%s8272_s19 + $0x18] sm:$0xff] %vm3297_vm7, %v5712_v4  ;;  %v5779_v51 = vsel %vm3297_vm7, %v5712_v4, 0.0  ;;  %v5850_v5 = vmul.f32 %v5712_v4, %v5712_v4  ;;  %6946 = vmatmul.msk.f32.gmra.mxu0 %vm3297_vm7, %v5487_v27 }
 0x54f   : > { %v5780_v21 = vadd.f32 %v5779_v51, %v5778_v42  ;;  %v5075_v43 = vpop.f32.mrf.mxu2 }
 0x550   : > { %v5884_v3 = vsel %vm3297_vm7, %v5850_v5, 0.0  ;;  %v5163_v31 = vadd.f32 %v5075_v43, %v4887_v49  ;;  %v4802_v40 = vpop.f32.mrf.mxu1  ;;  %v5350_v6 = vpop.f32.mrf.mxu3 }
 0x551   : > { %v5885_v58 = vadd.f32 %v5884_v3, %v5883_v15  ;;  %v4888_v34 = vadd.f32 %v4802_v40, %v10100_v62  ;;  %v5489_v15 = vld [vmem:[#allocation2 + $0x142] sm:$0xff] }
 0x552   : > { %v5438_v52 = vadd.f32 %v5350_v6, %v5163_v31  ;;  %v4939_v31 = vld [vmem:[#allocation2 + $0x140] sm:$0xff] }
 0x553   : > { %6847 = vmatmul.msk.f32.gmra.mxu1 %vm3297_vm7, %v4661_v2  ;;  %v5631_v41 = vpop.f32.mrf.mxu0  ;;  %v5214_v6 = vld [vmem:[#allocation2 + $0x141] sm:$0xff] }
 0x554   : > { %v5713_v55 = vadd.f32 %v5625_v33, %v5438_v52  ;;  %6880 = vmatmul.msk.f32.gmra.mxu2 %vm3297_vm7, %v4937_v17  ;;  %v10102_v52 = vld [vmem:[#allocation82_spill] sm:$0xff] }
 0x555   : > { %6913 = vmatmul.msk.f32.gmra.mxu3 %vm3297_vm7, %v10099_v13 }
 0x556   : > { %5745 = vst.msk [vmem:[%s8272_s19 + $0x20] sm:$0xff] %vm3297_vm7, %v5713_v55  ;;  %v5781_v28 = vsel %vm3297_vm7, %v5713_v55, 0.0  ;;  %v5851_v16 = vmul.f32 %v5713_v55, %v5713_v55  ;;  %6947 = vmatmul.msk.f32.gmra.mxu0 %vm3297_vm7, %v5488_v7 }
 0x557   : > { %v5782_v61 = vadd.f32 %v5781_v28, %v5780_v21  ;;  %v5078_v26 = vpop.f32.mrf.mxu2 }
 0x558   : > { %v5886_v18 = vsel %vm3297_vm7, %v5851_v16, 0.0  ;;  %v5164_v33 = vadd.f32 %v5078_v26, %v4888_v34  ;;  %v4805_v11 = vpop.f32.mrf.mxu1  ;;  %v5353_v42 = vpop.f32.mrf.mxu3 }
 0x559   : > { %v5887_v9 = vadd.f32 %v5886_v18, %v5885_v58  ;;  %v4889_v4 = vadd.f32 %v4805_v11, %v10101_v32  ;;  %v5490_v58 = vld [vmem:[#allocation2 + $0x152] sm:$0xff] }
 0x55a   : > { %v5439_v35 = vadd.f32 %v5353_v42, %v5164_v33  ;;  %v4940_v18 = vld [vmem:[#allocation2 + $0x150] sm:$0xff] }
 0x55b   : > { %6848 = vmatmul.msk.f32.gmra.mxu1 %vm3297_vm7, %v4662_v59  ;;  %v5634_v19 = vpop.f32.mrf.mxu0  ;;  %v5215_v11 = vld [vmem:[#allocation2 + $0x151] sm:$0xff]  ;;  %v5491_v59 = vld [vmem:[#allocation2 + $0x15a] sm:$0xff] }
 0x55c   : > { %v5714_v12 = vadd.f32 %v5628_v47, %v5439_v35  ;;  %6881 = vmatmul.msk.f32.gmra.mxu2 %vm3297_vm7, %v4938_v57  ;;  %v10103_v57 = vld [vmem:[#allocation83_spill] sm:$0xff] }
 0x55d   : > { %6914 = vmatmul.msk.f32.gmra.mxu3 %vm3297_vm7, %v5213_v30 }
 0x55e   : > { %5746 = vst.msk [vmem:[%s8272_s19 + $0x28] sm:$0xff] %vm3297_vm7, %v5714_v12  ;;  %v5783_v37 = vsel %vm3297_vm7, %v5714_v12, 0.0  ;;  %v5852_v54 = vmul.f32 %v5714_v12, %v5714_v12  ;;  %6948 = vmatmul.msk.f32.gmra.mxu0 %vm3297_vm7, %v5489_v15 }
 0x55f   : > { %v5784_v49 = vadd.f32 %v5783_v37, %v5782_v61  ;;  %v5081_v51 = vpop.f32.mrf.mxu2 }
 0x560   : > { %v5888_v5 = vsel %vm3297_vm7, %v5852_v54, 0.0  ;;  %v5165_v21 = vadd.f32 %v5081_v51, %v4889_v4  ;;  %v4808_v47 = vpop.f32.mrf.mxu1  ;;  %v5356_v43 = vpop.f32.mrf.mxu3  ;;  %v4941_v51 = vld [vmem:[#allocation2 + $0x158] sm:$0xff] }
 0x561   : > { %v5889_v3 = vadd.f32 %v5888_v5, %v5887_v9  ;;  %v4890_v55 = vadd.f32 %v4808_v47, %v10102_v52 }
 0x562   : > { %v5440_v40 = vadd.f32 %v5356_v43, %v5165_v21  ;;  %v5216_v21 = vld [vmem:[#allocation2 + $0x159] sm:$0xff]  ;;  %v5492_v43 = vld [vmem:[#allocation2 + $0x16a] sm:$0xff] }
 0x563   : > { %6849 = vmatmul.msk.f32.gmra.mxu1 %vm3297_vm7, %v5487_v27  ;;  %v5637_v2 = vpop.f32.mrf.mxu0 }
 0x564   : > { %v5715_v17 = vadd.f32 %v5631_v41, %v5440_v40  ;;  %6882 = vmatmul.msk.f32.gmra.mxu2 %vm3297_vm7, %v4939_v31 }
 0x565   : > { %6915 = vmatmul.msk.f32.gmra.mxu3 %vm3297_vm7, %v5214_v6 }
 0x566   : > { %5747 = vst.msk [vmem:[%s8272_s19 + $0x30] sm:$0xff] %vm3297_vm7, %v5715_v17  ;;  %v5785_v13 = vsel %vm3297_vm7, %v5715_v17, 0.0  ;;  %v5853_v62 = vmul.f32 %v5715_v17, %v5715_v17  ;;  %6949 = vmatmul.msk.f32.gmra.mxu0 %vm3297_vm7, %v5490_v58 }
 0x567   : > { %v5786_v34 = vadd.f32 %v5785_v13, %v5784_v49  ;;  %v5084_v28 = vpop.f32.mrf.mxu2 }
 0x568   : > { %v5890_v27 = vsel %vm3297_vm7, %v5853_v62, 0.0  ;;  %v5166_v16 = vadd.f32 %v5084_v28, %v4890_v55  ;;  %v4811_v41 = vpop.f32.mrf.mxu1  ;;  %v5359_v61 = vpop.f32.mrf.mxu3 }
 0x569   : > { %v5891_v26 = vadd.f32 %v5890_v27, %v5889_v3  ;;  %v4891_v35 = vadd.f32 %v4811_v41, %v10103_v57  ;;  %v5217_v27 = vld [vmem:[#allocation2 + $0x169] sm:$0xff] }
 0x56a   : > { %v5441_v33 = vadd.f32 %v5359_v61, %v5166_v16  ;;  %v5493_v16 = vld [vmem:[#allocation2 + $0x172] sm:$0xff] }
 0x56b   : > { %6850 = vmatmul.msk.f32.gmra.mxu1 %vm3297_vm7, %v5488_v7  ;;  %v5640_v42 = vpop.f32.mrf.mxu0 }
 0x56c   : > { %v5716_v9 = vadd.f32 %v5634_v19, %v5441_v33  ;;  %6883 = vmatmul.msk.f32.gmra.mxu2 %vm3297_vm7, %v4940_v18 }
 0x56d   : > { %6916 = vmatmul.msk.f32.gmra.mxu3 %vm3297_vm7, %v5215_v11 }
 0x56e   : > { %5748 = vst.msk [vmem:[%s8272_s19 + $0x38] sm:$0xff] %vm3297_vm7, %v5716_v9  ;;  %v5787_v30 = vsel %vm3297_vm7, %v5716_v9, 0.0  ;;  %v5854_v12 = vmul.f32 %v5716_v9, %v5716_v9  ;;  %6950 = vmatmul.msk.f32.gmra.mxu0 %vm3297_vm7, %v5491_v59 }
 0x56f   : > { %v5788_v32 = vadd.f32 %v5787_v30, %v5786_v34  ;;  %v5087_v4 = vpop.f32.mrf.mxu2  ;;  %v4942_v34 = vld [vmem:[#allocation2 + $0x168] sm:$0xff]  ;;  %v4943_v30 = vld [vmem:[#allocation2 + $0x170] sm:$0xff] }
 0x570   : > { %v5892_v7 = vsel %vm3297_vm7, %v5854_v12, 0.0  ;;  %v5167_v37 = vadd.f32 %v5087_v4, %v4891_v35  ;;  %v4814_v19 = vpop.f32.mrf.mxu1  ;;  %v5362_v54 = vpop.f32.mrf.mxu3  ;;  %v5494_v4 = vld [vmem:[#allocation2 + $0x182] sm:$0xff] }
 0x571   : > { %v5893_v49 = vadd.f32 %v5892_v7, %v5891_v26  ;;  %v4892_v31 = vadd.f32 %v4814_v19, %v8988_v29 }
 0x572   : > { %v5442_v5 = vadd.f32 %v5362_v54, %v5167_v37 }
 0x573   : > { %6851 = vmatmul.msk.f32.gmra.mxu1 %vm3297_vm7, %v5489_v15  ;;  %v5643_v47 = vpop.f32.mrf.mxu0 }
 0x574   : > { %v5717_v3 = vadd.f32 %v5637_v2, %v5442_v5  ;;  %6884 = vmatmul.msk.f32.gmra.mxu2 %vm3297_vm7, %v4941_v51 }
 0x575   : > { %6917 = vmatmul.msk.f32.gmra.mxu3 %vm3297_vm7, %v5216_v21 }
 0x576   : > { %5749 = vst.msk [vmem:[%s8272_s19 + $0x40] sm:$0xff] %vm3297_vm7, %v5717_v3  ;;  %v5789_v40 = vsel %vm3297_vm7, %v5717_v3, 0.0  ;;  %v5855_v6 = vmul.f32 %v5717_v3, %v5717_v3  ;;  %6951 = vmatmul.msk.f32.gmra.mxu0 %vm3297_vm7, %v5492_v43 }
 0x577   : > { %v5790_v17 = vadd.f32 %v5789_v40, %v5788_v32  ;;  %v5090_v52 = vpop.f32.mrf.mxu2  ;;  %v5218_v32 = vld [vmem:[#allocation2 + $0x171] sm:$0xff] }
 0x578   : > { %v5894_v15 = vsel %vm3297_vm7, %v5855_v6, 0.0  ;;  %v5168_v55 = vadd.f32 %v5090_v52, %v4892_v31  ;;  %v4817_v2 = vpop.f32.mrf.mxu1  ;;  %v5365_v13 = vpop.f32.mrf.mxu3  ;;  %v4944_v31 = vld [vmem:[#allocation2 + $0x180] sm:$0xff] }
 0x579   : > { %v5895_v62 = vadd.f32 %v5894_v15, %v5893_v49  ;;  %v4893_v61 = vadd.f32 %v4817_v2, %v8997_v20  ;;  %v5219_v6 = vld [vmem:[#allocation2 + $0x181] sm:$0xff] }
 0x57a   : > { %v5443_v28 = vadd.f32 %v5365_v13, %v5168_v55 }
 0x57b   : > { %6852 = vmatmul.msk.f32.gmra.mxu1 %vm3297_vm7, %v5490_v58  ;;  %v5646_v29 = vpop.f32.mrf.mxu0 }
 0x57c   : > { %v5718_v41 = vadd.f32 %v5640_v42, %v5443_v28  ;;  %6885 = vmatmul.msk.f32.gmra.mxu2 %vm3297_vm7, %v4942_v34 }
 0x57d   : > { %6918 = vmatmul.msk.f32.gmra.mxu3 %vm3297_vm7, %v5217_v27 }
 0x57e   : > { %5750 = vst.msk [vmem:[%s8272_s19 + $0x48] sm:$0xff] %vm3297_vm7, %v5718_v41  ;;  %v5791_v26 = vsel %vm3297_vm7, %v5718_v41, 0.0  ;;  %v5856_v18 = vmul.f32 %v5718_v41, %v5718_v41  ;;  %6952 = vmatmul.msk.f32.gmra.mxu0 %vm3297_vm7, %v5493_v16  ;;  %v4945_v41 = vld [vmem:[#allocation2 + $0x188] sm:$0xff] }
 0x57f   : > { %v5792_v33 = vadd.f32 %v5791_v26, %v5790_v17  ;;  %v5093_v11 = vpop.f32.mrf.mxu2  ;;  %v5495_v17 = vld [vmem:[#allocation2 + $0x18a] sm:$0xff] }
 0x580   : > { %v5896_v58 = vsel %vm3297_vm7, %v5856_v18, 0.0  ;;  %v5169_v9 = vadd.f32 %v5093_v11, %v4893_v61  ;;  %v4820_v42 = vpop.f32.mrf.mxu1  ;;  %v5368_v57 = vpop.f32.mrf.mxu3  ;;  %v5220_v26 = vld [vmem:[#allocation2 + $0x189] sm:$0xff]  ;;  %v5496_v18 = vld [vmem:[#allocation2 + $0x19a] sm:$0xff] }
 0x581   : > { %v5897_v35 = vadd.f32 %v5896_v58, %v5895_v62  ;;  %v4894_v37 = vadd.f32 %v4820_v42, %v9005_v23 }
 0x582   : > { %v5444_v12 = vadd.f32 %v5368_v57, %v5169_v9 }
 0x583   : > { %6853 = vmatmul.msk.f32.gmra.mxu1 %vm3297_vm7, %v5491_v59  ;;  %v5649_v20 = vpop.f32.mrf.mxu0 }
 0x584   : > { %v5719_v7 = vadd.f32 %v5643_v47, %v5444_v12  ;;  %6886 = vmatmul.msk.f32.gmra.mxu2 %vm3297_vm7, %v4943_v30 }
 0x585   : > { %6919 = vmatmul.msk.f32.gmra.mxu3 %vm3297_vm7, %v5218_v32 }
 0x586   : > { %5751 = vst.msk [vmem:[%s8272_s19 + $0x50] sm:$0xff] %vm3297_vm7, %v5719_v7  ;;  %v5793_v19 = vsel %vm3297_vm7, %v5719_v7, 0.0  ;;  %v5857_v54 = vmul.f32 %v5719_v7, %v5719_v7  ;;  %6953 = vmatmul.msk.f32.gmra.mxu0 %vm3297_vm7, %v5494_v4 }
 0x587   : > { %v5794_v49 = vadd.f32 %v5793_v19, %v5792_v33  ;;  %v5096_v51 = vpop.f32.mrf.mxu2  ;;  %v5497_v19 = vld [vmem:[#allocation2 + $0x1a2] sm:$0xff] }
 0x588   : > { %v5898_v59 = vsel %vm3297_vm7, %v5857_v54, 0.0  ;;  %v5170_v5 = vadd.f32 %v5096_v51, %v4894_v37  ;;  %v4823_v21 = vpop.f32.mrf.mxu1  ;;  %v5371_v47 = vpop.f32.mrf.mxu3  ;;  %v5221_v37 = vld [vmem:[#allocation2 + $0x199] sm:$0xff] }
 0x589   : > { %v5899_v3 = vadd.f32 %v5898_v59, %v5897_v35  ;;  %v4895_v15 = vadd.f32 %v4823_v21, %v9013_v14 }
 0x58a   : > { %v5445_v40 = vadd.f32 %v5371_v47, %v5170_v5 }
 0x58b   : > { %6854 = vmatmul.msk.f32.gmra.mxu1 %vm3297_vm7, %v5492_v43  ;;  %v5652_v23 = vpop.f32.mrf.mxu0 }
 0x58c   : > { %v5720_v52 = vadd.f32 %v5646_v29, %v5445_v40  ;;  %6887 = vmatmul.msk.f32.gmra.mxu2 %vm3297_vm7, %v4944_v31 }
 0x58d   : > { %6920 = vmatmul.msk.f32.gmra.mxu3 %vm3297_vm7, %v5219_v6  ;;  %v4947_v6 = vld [vmem:[#allocation2 + $0x1a0] sm:$0xff] }
 0x58e   : > { %5752 = vst.msk [vmem:[%s8272_s19 + $0x58] sm:$0xff] %vm3297_vm7, %v5720_v52  ;;  %v5795_v55 = vsel %vm3297_vm7, %v5720_v52, 0.0  ;;  %v5858_v2 = vmul.f32 %v5720_v52, %v5720_v52  ;;  %6954 = vmatmul.msk.f32.gmra.mxu0 %vm3297_vm7, %v5495_v17  ;;  %v5222_v52 = vld [vmem:[#allocation2 + $0x1a1] sm:$0xff] }
 0x58f   : > { %v5796_v13 = vadd.f32 %v5795_v55, %v5794_v49  ;;  %v5099_v62 = vpop.f32.mrf.mxu2 }
 0x590   : > { %v5900_v43 = vsel %vm3297_vm7, %v5858_v2, 0.0  ;;  %v5171_v34 = vadd.f32 %v5099_v62, %v4895_v15  ;;  %v4826_v28 = vpop.f32.mrf.mxu1  ;;  %v5374_v27 = vpop.f32.mrf.mxu3 }
 0x591   : > { %v5901_v29 = vadd.f32 %v5900_v43, %v5899_v3  ;;  %v4896_v11 = vadd.f32 %v4826_v28, %v9020_v39 }
 0x592   : > { %v5446_v61 = vadd.f32 %v5374_v27, %v5171_v34 }
 0x593   : > { %6855 = vmatmul.msk.f32.gmra.mxu1 %vm3297_vm7, %v5493_v16  ;;  %v5655_v14 = vpop.f32.mrf.mxu0 }
 0x594   : > { %v5721_v33 = vadd.f32 %v5649_v20, %v5446_v61  ;;  %6888 = vmatmul.msk.f32.gmra.mxu2 %vm3297_vm7, %v4945_v41  ;;  %v4946_v20 = vld [vmem:[#allocation2 + $0x198] sm:$0xff] }
 0x595   : > { %6921 = vmatmul.msk.f32.gmra.mxu3 %vm3297_vm7, %v5220_v26 }
 0x596   : > { %5753 = vst.msk [vmem:[%s8272_s19 + $0x60] sm:$0xff] %vm3297_vm7, %v5721_v33  ;;  %v5797_v58 = vsel %vm3297_vm7, %v5721_v33, 0.0  ;;  %v5859_v9 = vmul.f32 %v5721_v33, %v5721_v33  ;;  %6955 = vmatmul.msk.f32.gmra.mxu0 %vm3297_vm7, %v5496_v18 }
 0x597   : > { %v5798_v42 = vadd.f32 %v5797_v58, %v5796_v13  ;;  %v5102_v57 = vpop.f32.mrf.mxu2 }
 0x598   : > { %v5902_v16 = vsel %vm3297_vm7, %v5859_v9, 0.0  ;;  %v5172_v35 = vadd.f32 %v5102_v57, %v4896_v11  ;;  %v4829_v30 = vpop.f32.mrf.mxu1  ;;  %v5377_v12 = vpop.f32.mrf.mxu3 }
 0x599   : > { %v5903_v32 = vadd.f32 %v5902_v16, %v5901_v29  ;;  %v4897_v49 = vadd.f32 %v4829_v30, %v9027_v56 }
 0x59a   : > { %v5447_v7 = vadd.f32 %v5377_v12, %v5172_v35 }
 0x59b   : > { %6856 = vmatmul.msk.f32.gmra.mxu1 %vm3297_vm7, %v5494_v4  ;;  %v5658_v39 = vpop.f32.mrf.mxu0 }
 0x59c   : > { %v5722_v54 = vadd.f32 %v5652_v23, %v5447_v7  ;;  %6889 = vmatmul.msk.f32.gmra.mxu2 %vm3297_vm7, %v4946_v20 }
 0x59d   : > { %6922 = vmatmul.msk.f32.gmra.mxu3 %vm3297_vm7, %v5221_v37 }
 0x59e   : > { %5754 = vst.msk [vmem:[%s8272_s19 + $0x68] sm:$0xff] %vm3297_vm7, %v5722_v54  ;;  %v5799_v51 = vsel %vm3297_vm7, %v5722_v54, 0.0  ;;  %v5860_v59 = vmul.f32 %v5722_v54, %v5722_v54  ;;  %6956 = vmatmul.msk.f32.gmra.mxu0 %vm3297_vm7, %v5497_v19 }
 0x59f   : > { %v5800_v5 = vadd.f32 %v5799_v51, %v5798_v42  ;;  %v5105_v21 = vpop.f32.mrf.mxu2 }
 0x5a0   : > { %v5904_v4 = vsel %vm3297_vm7, %v5860_v59, 0.0  ;;  %v5173_v47 = vadd.f32 %v5105_v21, %v4897_v49  ;;  %v4832_v3 = vpop.f32.mrf.mxu1  ;;  %v5380_v31 = vpop.f32.mrf.mxu3 }
 0x5a1   : > { %v5905_v40 = vadd.f32 %v5904_v4, %v5903_v32  ;;  %v4898_v55 = vadd.f32 %v4832_v3, %v9036_v48 }
 0x5a2   : > { %v5448_v23 = vadd.f32 %v5380_v31, %v5173_v47 }
 0x5a3   : > { %6857 = vmatmul.msk.f32.gmra.mxu1 %vm3297_vm7, %v5495_v17  ;;  %v5661_v56 = vpop.f32.mrf.mxu0 }
 0x5a4   : > { %v5723_v15 = vadd.f32 %v5655_v14, %v5448_v23  ;;  %6890 = vmatmul.msk.f32.gmra.mxu2 %vm3297_vm7, %v4947_v6 }
 0x5a5   : > { %6923 = vmatmul.msk.f32.gmra.mxu3 %vm3297_vm7, %v5222_v52 }
 0x5a6   : > { %5755 = vst.msk [vmem:[%s8272_s19 + $0x70] sm:$0xff] %vm3297_vm7, %v5723_v15  ;;  %v5801_v2 = vsel %vm3297_vm7, %v5723_v15, 0.0  ;;  %v5861_v13 = vmul.f32 %v5723_v15, %v5723_v15 }
 0x5a7   : > { %v5802_v62 = vadd.f32 %v5801_v2, %v5800_v5  ;;  %v5108_v43 = vpop.f32.mrf.mxu2 }
 0x5a8   : > { %v5906_v34 = vsel %vm3297_vm7, %v5861_v13, 0.0  ;;  %v5174_v28 = vadd.f32 %v5108_v43, %v4898_v55  ;;  %v4835_v17 = vpop.f32.mrf.mxu1  ;;  %v5383_v27 = vpop.f32.mrf.mxu3 }
 0x5a9   : > { %v5907_v29 = vadd.f32 %v5906_v34, %v5905_v40  ;;  %v4899_v14 = vadd.f32 %v4835_v17, %v9046_v45 }
 0x5aa   : > { %v5449_v41 = vadd.f32 %v5383_v27, %v5174_v28 }
 0x5ab   : > { %v5664_v61 = vpop.f32.mrf.mxu0 }
 0x5ac   : > { %v5724_v26 = vadd.f32 %v5658_v39, %v5449_v41 }
 0x5ae   : > { %5756 = vst.msk [vmem:[%s8272_s19 + $0x78] sm:$0xff] %vm3297_vm7, %v5724_v26  ;;  %v5803_v48 = vsel %vm3297_vm7, %v5724_v26, 0.0  ;;  %v5862_v18 = vmul.f32 %v5724_v26, %v5724_v26 }
 0x5af   : > { %v5804_v33 = vadd.f32 %v5803_v48, %v5802_v62  ;;  %v5111_v11 = vpop.f32.mrf.mxu2 }
 0x5b0   : > { %v5908_v58 = vsel %vm3297_vm7, %v5862_v18, 0.0  ;;  %v5175_v9 = vadd.f32 %v5111_v11, %v4899_v14  ;;  %v4838_v42 = vpop.f32.mrf.mxu1  ;;  %v5386_v57 = vpop.f32.mrf.mxu3 }
 0x5b1   : > { %v5909_v16 = vadd.f32 %v5908_v58, %v5907_v29  ;;  %v4900_v32 = vadd.f32 %v4838_v42, %v9056_v44 }
 0x5b2   : > { %v5450_v35 = vadd.f32 %v5386_v57, %v5175_v9 }
 0x5b3   : > { %v5667_v30 = vpop.f32.mrf.mxu0 }
 0x5b4   : > { %v5725_v12 = vadd.f32 %v5661_v56, %v5450_v35 }
 0x5b6   : > { %5757 = vst.msk [vmem:[%s8272_s19 + $0x80] sm:$0xff] %vm3297_vm7, %v5725_v12  ;;  %v5805_v45 = vsel %vm3297_vm7, %v5725_v12, 0.0  ;;  %v5863_v20 = vmul.f32 %v5725_v12, %v5725_v12 }
 0x5b7   : > { %v5806_v7 = vadd.f32 %v5805_v45, %v5804_v33  ;;  %v5114_v37 = vpop.f32.mrf.mxu2 }
 0x5b8   : > { %v5910_v39 = vsel %vm3297_vm7, %v5863_v20, 0.0  ;;  %v5176_v19 = vadd.f32 %v5114_v37, %v4900_v32  ;;  %v4841_v54 = vpop.f32.mrf.mxu1  ;;  %v5389_v49 = vpop.f32.mrf.mxu3 }
 0x5b9   : > { %v5911_v51 = vadd.f32 %v5910_v39, %v5909_v16  ;;  %v4901_v4 = vadd.f32 %v4841_v54, %v9067_v36 }
 0x5ba   : > { %v5451_v59 = vadd.f32 %v5389_v49, %v5176_v19 }
 0x5bb   : > { %v5670_v5 = vpop.f32.mrf.mxu0 }
 0x5bc   : > { %v5726_v21 = vadd.f32 %v5664_v61, %v5451_v59 }
 0x5be   : > { %5758 = vst.msk [vmem:[%s8272_s19 + $0x88] sm:$0xff] %vm3297_vm7, %v5726_v21  ;;  %v5807_v44 = vsel %vm3297_vm7, %v5726_v21, 0.0  ;;  %v5864_v47 = vmul.f32 %v5726_v21, %v5726_v21 }
 0x5bf   : > { %v5808_v3 = vadd.f32 %v5807_v44, %v5806_v7  ;;  %v5117_v31 = vpop.f32.mrf.mxu2 }
 0x5c0   : > { %v5912_v40 = vsel %vm3297_vm7, %v5864_v47, 0.0  ;;  %v5177_v6 = vadd.f32 %v5117_v31, %v4901_v4  ;;  %v4844_v23 = vpop.f32.mrf.mxu1  ;;  %v5392_v52 = vpop.f32.mrf.mxu3 }
 0x5c1   : > { %v5913_v56 = vadd.f32 %v5912_v40, %v5911_v51  ;;  %v4902_v13 = vadd.f32 %v4844_v23, %v9078_v53 }
 0x5c2   : > { %v5452_v15 = vadd.f32 %v5392_v52, %v5177_v6 }
 0x5c3   : > { %v5673_v55 = vpop.f32.mrf.mxu0 }
 0x5c4   : > { %v5727_v2 = vadd.f32 %v5667_v30, %v5452_v15 }
 0x5c6   : > { %5759 = vst.msk [vmem:[%s8272_s19 + $0x90] sm:$0xff] %vm3297_vm7, %v5727_v2  ;;  %v5809_v36 = vsel %vm3297_vm7, %v5727_v2, 0.0  ;;  %v5865_v62 = vmul.f32 %v5727_v2, %v5727_v2 }
 0x5c7   : > { %v5810_v43 = vadd.f32 %v5809_v36, %v5808_v3  ;;  %v5120_v34 = vpop.f32.mrf.mxu2 }
 0x5c8   : > { %v5914_v28 = vsel %vm3297_vm7, %v5865_v62, 0.0  ;;  %v5178_v17 = vadd.f32 %v5120_v34, %v4902_v13  ;;  %v4847_v27 = vpop.f32.mrf.mxu1  ;;  %v5395_v29 = vpop.f32.mrf.mxu3 }
 0x5c9   : > { %v5915_v41 = vadd.f32 %v5914_v28, %v5913_v56  ;;  %v4903_v48 = vadd.f32 %v4847_v27, %v9088_v25 }
 0x5ca   : > { %v5453_v61 = vadd.f32 %v5395_v29, %v5178_v17 }
 0x5cb   : > { %v5676_v26 = vpop.f32.mrf.mxu0 }
 0x5cc   : > { %v5728_v14 = vadd.f32 %v5670_v5, %v5453_v61 }
 0x5ce   : > { %5760 = vst.msk [vmem:[%s8272_s19 + $0x98] sm:$0xff] %vm3297_vm7, %v5728_v14  ;;  %v5811_v53 = vsel %vm3297_vm7, %v5728_v14, 0.0  ;;  %v5866_v18 = vmul.f32 %v5728_v14, %v5728_v14 }
 0x5cf   : > { %v5812_v33 = vadd.f32 %v5811_v53, %v5810_v43  ;;  %v5123_v11 = vpop.f32.mrf.mxu2 }
 0x5d0   : > { %v5916_v58 = vsel %vm3297_vm7, %v5866_v18, 0.0  ;;  %v5179_v9 = vadd.f32 %v5123_v11, %v4903_v48  ;;  %v4850_v42 = vpop.f32.mrf.mxu1  ;;  %v5398_v57 = vpop.f32.mrf.mxu3 }
 0x5d1   : > { %v5917_v16 = vadd.f32 %v5916_v58, %v5915_v41  ;;  %v4904_v32 = vadd.f32 %v4850_v42, %v9098_v0 }
 0x5d2   : > { %v5454_v35 = vadd.f32 %v5398_v57, %v5179_v9 }
 0x5d3   : > { %v5679_v30 = vpop.f32.mrf.mxu0 }
 0x5d4   : > { %v5729_v12 = vadd.f32 %v5673_v55, %v5454_v35 }
 0x5d6   : > { %5761 = vst.msk [vmem:[%s8272_s19 + $0xa0] sm:$0xff] %vm3297_vm7, %v5729_v12  ;;  %v5813_v25 = vsel %vm3297_vm7, %v5729_v12, 0.0  ;;  %v5867_v45 = vmul.f32 %v5729_v12, %v5729_v12 }
 0x5d7   : > { %v5814_v20 = vadd.f32 %v5813_v25, %v5812_v33  ;;  %v5126_v7 = vpop.f32.mrf.mxu2 }
 0x5d8   : > { %v5918_v37 = vsel %vm3297_vm7, %v5867_v45, 0.0  ;;  %v5180_v39 = vadd.f32 %v5126_v7, %v4904_v32  ;;  %v4853_v19 = vpop.f32.mrf.mxu1  ;;  %v5401_v54 = vpop.f32.mrf.mxu3 }
 0x5d9   : > { %v5919_v49 = vadd.f32 %v5918_v37, %v5917_v16  ;;  %v4905_v21 = vadd.f32 %v4853_v19, %v9108_v1 }
 0x5da   : > { %v5455_v51 = vadd.f32 %v5401_v54, %v5180_v39 }
 0x5db   : > { %v5682_v59 = vpop.f32.mrf.mxu0 }
 0x5dc   : > { %v5730_v5 = vadd.f32 %v5676_v26, %v5455_v51 }
 0x5de   : > { %5762 = vst.msk [vmem:[%s8272_s19 + $0xa8] sm:$0xff] %vm3297_vm7, %v5730_v5  ;;  %v5815_v0 = vsel %vm3297_vm7, %v5730_v5, 0.0  ;;  %v5868_v4 = vmul.f32 %v5730_v5, %v5730_v5 }
 0x5df   : > { %v5816_v44 = vadd.f32 %v5815_v0, %v5814_v20  ;;  %v5129_v47 = vpop.f32.mrf.mxu2 }
 0x5e0   : > { %v5920_v3 = vsel %vm3297_vm7, %v5868_v4, 0.0  ;;  %v5181_v31 = vadd.f32 %v5129_v47, %v4905_v21  ;;  %v4856_v40 = vpop.f32.mrf.mxu1  ;;  %v5404_v6 = vpop.f32.mrf.mxu3 }
 0x5e1   : > { %v5921_v23 = vadd.f32 %v5920_v3, %v5919_v49  ;;  %v4906_v55 = vadd.f32 %v4856_v40, %v9118_v46 }
 0x5e2   : > { %v5456_v52 = vadd.f32 %v5404_v6, %v5181_v31 }
 0x5e3   : > { %v5685_v56 = vpop.f32.mrf.mxu0 }
 0x5e4   : > { %v5731_v15 = vadd.f32 %v5679_v30, %v5456_v52 }
 0x5e6   : > { %5763 = vst.msk [vmem:[%s8272_s19 + $0xb0] sm:$0xff] %vm3297_vm7, %v5731_v15  ;;  %v5817_v1 = vsel %vm3297_vm7, %v5731_v15, 0.0  ;;  %v5869_v2 = vmul.f32 %v5731_v15, %v5731_v15 }
 0x5e7   : > { %v5818_v13 = vadd.f32 %v5817_v1, %v5816_v44  ;;  %v5132_v36 = vpop.f32.mrf.mxu2 }
 0x5e8   : > { %v5922_v62 = vsel %vm3297_vm7, %v5869_v2, 0.0  ;;  %v5182_v43 = vadd.f32 %v5132_v36, %v4906_v55  ;;  %v4859_v34 = vpop.f32.mrf.mxu1  ;;  %v5407_v28 = vpop.f32.mrf.mxu3 }
 0x5e9   : > { %v5923_v17 = vadd.f32 %v5922_v62, %v5921_v23  ;;  %v4907_v61 = vadd.f32 %v4859_v34, %v9128_v60 }
 0x5ea   : > { %v5457_v27 = vadd.f32 %v5407_v28, %v5182_v43 }
 0x5eb   : > { %v5688_v41 = vpop.f32.mrf.mxu0 }
 0x5ec   : > { %v5732_v29 = vadd.f32 %v5682_v59, %v5457_v27 }
 0x5ee   : > { %5764 = vst.msk [vmem:[%s8272_s19 + $0xb8] sm:$0xff] %vm3297_vm7, %v5732_v29  ;;  %v5819_v46 = vsel %vm3297_vm7, %v5732_v29, 0.0  ;;  %v5870_v26 = vmul.f32 %v5732_v29, %v5732_v29 }
 0x5ef   : > { %v5820_v14 = vadd.f32 %v5819_v46, %v5818_v13  ;;  %v5135_v48 = vpop.f32.mrf.mxu2 }
 0x5f0   : > { %v5924_v53 = vsel %vm3297_vm7, %v5870_v26, 0.0  ;;  %v5183_v18 = vadd.f32 %v5135_v48, %v4907_v61  ;;  %v4862_v33 = vpop.f32.mrf.mxu1  ;;  %v5410_v11 = vpop.f32.mrf.mxu3 }
 0x5f1   : > { %v5925_v58 = vadd.f32 %v5924_v53, %v5923_v17  ;;  %v4908_v57 = vadd.f32 %v4862_v33, %v9138_v8 }
 0x5f2   : > { %v5458_v9 = vadd.f32 %v5410_v11, %v5183_v18 }
 0x5f3   : > { %v5691_v12 = vpop.f32.mrf.mxu0 }
 0x5f4   : > { %v5733_v42 = vadd.f32 %v5685_v56, %v5458_v9 }
 0x5f6   : > { %5765 = vst.msk [vmem:[%s8272_s19 + $0xc0] sm:$0xff] %vm3297_vm7, %v5733_v42  ;;  %v5821_v60 = vsel %vm3297_vm7, %v5733_v42, 0.0  ;;  %v5871_v16 = vmul.f32 %v5733_v42, %v5733_v42 }
 0x5f7   : > { %v5822_v35 = vadd.f32 %v5821_v60, %v5820_v14  ;;  %v5138_v30 = vpop.f32.mrf.mxu2 }
 0x5f8   : > { %v5926_v32 = vsel %vm3297_vm7, %v5871_v16, 0.0  ;;  %v5184_v25 = vadd.f32 %v5138_v30, %v4908_v57  ;;  %v4865_v45 = vpop.f32.mrf.mxu1  ;;  %v5413_v20 = vpop.f32.mrf.mxu3 }
 0x5f9   : > { %v5927_v7 = vadd.f32 %v5926_v32, %v5925_v58  ;;  %v4909_v19 = vadd.f32 %v4865_v45, %v9148_v24 }
 0x5fa   : > { %v5459_v37 = vadd.f32 %v5413_v20, %v5184_v25 }
 0x5fb   : > { %v5694_v44 = vpop.f32.mrf.mxu0 }
 0x5fc   : > { %v5734_v39 = vadd.f32 %v5688_v41, %v5459_v37 }
 0x5fe   : > { %5766 = vst.msk [vmem:[%s8272_s19 + $0xc8] sm:$0xff] %vm3297_vm7, %v5734_v39  ;;  %v5823_v8 = vsel %vm3297_vm7, %v5734_v39, 0.0  ;;  %v5872_v54 = vmul.f32 %v5734_v39, %v5734_v39 }
 0x5ff   : > { %v5824_v49 = vadd.f32 %v5823_v8, %v5822_v35  ;;  %v5141_v51 = vpop.f32.mrf.mxu2 }
 0x600   : > { %v5928_v59 = vsel %vm3297_vm7, %v5872_v54, 0.0  ;;  %v5185_v5 = vadd.f32 %v5141_v51, %v4909_v19  ;;  %v4868_v21 = vpop.f32.mrf.mxu1  ;;  %v5416_v0 = vpop.f32.mrf.mxu3 }
 0x601   : > { %v5929_v4 = vadd.f32 %v5928_v59, %v5927_v7  ;;  %v4910_v31 = vadd.f32 %v4868_v21, %v9158_v38 }
 0x602   : > { %v5460_v47 = vadd.f32 %v5416_v0, %v5185_v5 }
 0x603   : > { %v5697_v13 = vpop.f32.mrf.mxu0 }
 0x604   : > { %v5735_v3 = vadd.f32 %v5691_v12, %v5460_v47 }
 0x606   : > { %5767 = vst.msk [vmem:[%s8272_s19 + $0xd0] sm:$0xff] %vm3297_vm7, %v5735_v3  ;;  %v5825_v24 = vsel %vm3297_vm7, %v5735_v3, 0.0  ;;  %v5873_v40 = vmul.f32 %v5735_v3, %v5735_v3 }
 0x607   : > { %v5826_v6 = vadd.f32 %v5825_v24, %v5824_v49  ;;  %v5144_v23 = vpop.f32.mrf.mxu2 }
 0x608   : > { %v5930_v52 = vsel %vm3297_vm7, %v5873_v40, 0.0  ;;  %v5186_v56 = vadd.f32 %v5144_v23, %v4910_v31  ;;  %v4871_v15 = vpop.f32.mrf.mxu1  ;;  %v5419_v55 = vpop.f32.mrf.mxu3 }
 0x609   : > { %v5931_v1 = vadd.f32 %v5930_v52, %v5929_v4  ;;  %v4911_v62 = vadd.f32 %v4871_v15, %v9168_v22 }
 0x60a   : > { %v5461_v2 = vadd.f32 %v5419_v55, %v5186_v56 }
 0x60b   : > { %v5700_v14 = vpop.f32.mrf.mxu0 }
 0x60c   : > { %v5736_v36 = vadd.f32 %v5694_v44, %v5461_v2 }
 0x60e   : > { %5768 = vst.msk [vmem:[%s8272_s19 + $0xd8] sm:$0xff] %vm3297_vm7, %v5736_v36  ;;  %v5827_v38 = vsel %vm3297_vm7, %v5736_v36, 0.0  ;;  %v5874_v43 = vmul.f32 %v5736_v36, %v5736_v36 }
 0x60f   : > { %v5828_v34 = vadd.f32 %v5827_v38, %v5826_v6  ;;  %v5147_v28 = vpop.f32.mrf.mxu2 }
 0x610   : > { %v5932_v17 = vsel %vm3297_vm7, %v5874_v43, 0.0  ;;  %v5187_v27 = vadd.f32 %v5147_v28, %v4911_v62  ;;  %v4874_v29 = vpop.f32.mrf.mxu1  ;;  %v5422_v41 = vpop.f32.mrf.mxu3  ;;  %v5773_v62 = vld [vmem:[#allocation4 + $0x2] sm:$0x1] }
 0x611   : > { %v5933_v61 = vadd.f32 %v5932_v17, %v5931_v1  ;;  %v4912_v48 = vadd.f32 %v4874_v29, %v9178_v50 }
 0x612   : > { %v5462_v46 = vadd.f32 %v5422_v41, %v5187_v27 }
 0x613   : > { %v5703_v25 = vpop.f32.mrf.mxu0 }
 0x614   : > { %v5737_v26 = vadd.f32 %v5697_v13, %v5462_v46 }
 0x616   : > { %5769 = vst.msk [vmem:[%s8272_s19 + $0xe0] sm:$0xff] %vm3297_vm7, %v5737_v26  ;;  %v5829_v22 = vsel %vm3297_vm7, %v5737_v26, 0.0  ;;  %v5875_v53 = vmul.f32 %v5737_v26, %v5737_v26 }
 0x617   : > { %v5830_v18 = vadd.f32 %v5829_v22, %v5828_v34  ;;  %v5150_v33 = vpop.f32.mrf.mxu2  ;;  %v5846_v34 = vld [vmem:[#allocation4 + $0x3] sm:$0x1] }
 0x618   : > { %v5934_v11 = vsel %vm3297_vm7, %v5875_v53, 0.0  ;;  %v5188_v58 = vadd.f32 %v5150_v33, %v4912_v48  ;;  %v5425_v9 = vpop.f32.mrf.mxu3  ;;  %v4877_v57 = vpop.f32.mrf.mxu1 }
 0x619   : > { %v5935_v42 = vadd.f32 %v5934_v11, %v5933_v61  ;;  %v4913_v35 = vadd.f32 %v4877_v57, %v9188_v10 }
 0x61a   : > { %v5463_v60 = vadd.f32 %v5425_v9, %v5188_v58 }
 0x61b   : > { %v5706_v44 = vpop.f32.mrf.mxu0 }
 0x61c   : > { %v5738_v16 = vadd.f32 %v5700_v14, %v5463_v60 }
 0x61e   : > { %5770 = vst.msk [vmem:[%s8272_s19 + $0xe8] sm:$0xff] %vm3297_vm7, %v5738_v16  ;;  %v5831_v50 = vsel %vm3297_vm7, %v5738_v16, 0.0  ;;  %v5876_v30 = vmul.f32 %v5738_v16, %v5738_v16 }
 0x61f   : > { %v5832_v12 = vadd.f32 %v5831_v50, %v5830_v18  ;;  %v5153_v32 = vpop.f32.mrf.mxu2 }
 0x620   : > { %v5936_v45 = vsel %vm3297_vm7, %v5876_v30, 0.0  ;;  %v5189_v20 = vadd.f32 %v5153_v32, %v4913_v35  ;;  %v5428_v7 = vpop.f32.mrf.mxu3  ;;  %v4880_v19 = vpop.f32.mrf.mxu1 }
 0x621   : > { %v5937_v37 = vadd.f32 %v5936_v45, %v5935_v42  ;;  %v4914_v54 = vadd.f32 %v4880_v19, %v9198_v63 }
 0x622   : > { %v5464_v39 = vadd.f32 %v5428_v7, %v5189_v20 }
 0x624   : > { %v5739_v8 = vadd.f32 %v5703_v25, %v5464_v39 }
 0x626   : > { %5771 = vst.msk [vmem:[%s8272_s19 + $0xf0] sm:$0xff] %vm3297_vm7, %v5739_v8  ;;  %v5833_v10 = vsel %vm3297_vm7, %v5739_v8, 0.0  ;;  %v5877_v49 = vmul.f32 %v5739_v8, %v5739_v8 }
 0x627   : > { %v5834_v51 = vadd.f32 %v5833_v10, %v5832_v12  ;;  %v5156_v59 = vpop.f32.mrf.mxu2 }
 0x628   : > { %v5938_v5 = vsel %vm3297_vm7, %v5877_v49, 0.0  ;;  %v5190_v21 = vadd.f32 %v5156_v59, %v4914_v54  ;;  %v5431_v0 = vpop.f32.mrf.mxu3 }
 0x629   : > { %v5939_v4 = vadd.f32 %v5938_v5, %v5937_v37 }
 0x62a   : > { %v5465_v47 = vadd.f32 %v5431_v0, %v5190_v21 }
 0x62c   : > { %v5740_v3 = vadd.f32 %v5706_v44, %v5465_v47 }
 0x62e   : > { %5772 = vst.msk [vmem:[%s8272_s19 + $0xf8] sm:$0xff] %vm3297_vm7, %v5740_v3  ;;  %v5835_v31 = vsel %vm3297_vm7, %v5740_v3, 0.0  ;;  %v5878_v63 = vmul.f32 %v5740_v3, %v5740_v3 }
 0x62f   : > { %v5836_v24 = vadd.f32 %v5835_v31, %v5834_v51 }
 0x630   : > { %v5940_v40 = vsel %vm3297_vm7, %v5878_v63, 0.0 }
 0x631   : > { %v5837_v6 = vrot.slane %v5836_v24, 4  ;;  %v5941_v23 = vadd.f32 %v5940_v40, %v5939_v4 }
 0x633   : > { %v5838_v52 = vadd.f32 %v5837_v6, %v5836_v24  ;;  %v5942_v56 = vrot.slane %v5941_v23, 4 }
 0x635   : > { %v5839_v15 = vrot.slane %v5838_v52, 2  ;;  %v5943_v55 = vadd.f32 %v5942_v56, %v5941_v23 }
 0x637   : > { %v5840_v1 = vadd.f32 %v5839_v15, %v5838_v52  ;;  %v5944_v2 = vrot.slane %v5943_v55, 2 }
 0x639   : > { %v5841_v13 = vrot.slane %v5840_v1, 1  ;;  %v5945_v36 = vadd.f32 %v5944_v2, %v5943_v55 }
 0x63b   : > { %v5842_v38 = vadd.f32 %v5841_v13, %v5840_v1  ;;  %v5946_v43 = vrot.slane %v5945_v36, 1 }
 0x63d   : > { %v5843_v28 = vadd.f32 %v5842_v38, %v5773_v62  ;;  %v5947_v17 = vadd.f32 %v5946_v43, %v5945_v36 }
 0x63f   : > { %5845 = vst.msk [vmem:[#allocation4 + $0x2] sm:$0x1] %vm5844_vm9, %v5843_v28  ;;  %v5948_v27 = vadd.f32 %v5947_v17, %v5846_v34 }
 0x641   : > { %5949 = vst.msk [vmem:[#allocation4 + $0x3] sm:$0x1] %vm5844_vm9, %v5948_v27 }
 0x642 PF: > { %p6957_p0 = scmp.ne.s32.totalorder %s7046_s25, 2 }
 0x643   : > { %s6958_s19 = sshll.u32 (!%p6957_p0), %s7042_s24, 8 }
 0x644   : > { %5953 = sbr.rel (%p6957_p0) target bundleno = 1692 (0x69c), region = 64  ;;  %s9437_s9 = scalar_lea.vmem (!%p6957_p0), [#allocation3], %s6958_s19 }
 0x649   : > { %v5988_v29 = vld [vmem:[#allocation4 + $0x2] sm:$0x1]  ;;  %v5989_v41 = vld [vmem:[#allocation4 + $0x3] sm:$0x1]  ;;  %v9440_v18 = vld [vmem:[%s9437_s9] sm:$0xff]  ;;  %vm6240_vm13 = vcmask 64512  }
 0x64a   : > { %v5990_v61 = vmul.f32 0.001953125, %v5988_v29  ;;  %v5991_v46 = vmul.f32 0.001953125, %v5989_v41  ;;  %v9445_v58 = vld [vmem:[%s9437_s9 + $0x8] sm:$0xff]  ;;  %v9448_v9 = vld [vmem:[%s9437_s9 + $0x10] sm:$0xff]  ;;  %v9451_v42 = vld [vmem:[%s9437_s9 + $0x18] sm:$0xff] }
 0x64b   : > { %v9454_v57 = vld [vmem:[%s9437_s9 + $0x20] sm:$0xff]  ;;  %v9457_v16 = vld [vmem:[%s9437_s9 + $0x28] sm:$0xff]  ;;  %v9460_v35 = vld [vmem:[%s9437_s9 + $0x30] sm:$0xff] }
 0x64c   : > { %v5992_v26 = vmul.f32 %v5990_v61, %v5990_v61  ;;  %v9442_v33 = vperm.slane %v5990_v61, 0  ;;  %v9463_v50 = vld [vmem:[%s9437_s9 + $0x38] sm:$0xff]  ;;  %v9466_v30 = vld [vmem:[%s9437_s9 + $0x40] sm:$0xff]  ;;  %v9469_v12 = vld [vmem:[%s9437_s9 + $0x48] sm:$0xff] }
 0x64d   : > { %v9472_v32 = vld [vmem:[%s9437_s9 + $0x50] sm:$0xff]  ;;  %v9477_v20 = vld [vmem:[%s9437_s9 + $0x58] sm:$0xff]  ;;  %v9480_v7 = vld [vmem:[%s9437_s9 + $0x60] sm:$0xff] }
 0x64e   : > { %v5993_v14 = vsub.f32 %v5991_v46, %v5992_v26  ;;  %v5996_v25 = vsub.f32 %v9440_v18, %v9442_v33  ;;  %v9483_v37 = vld [vmem:[%s9437_s9 + $0x68] sm:$0xff]  ;;  %v5997_v39 = vsub.f32 %v9445_v58, %v9442_v33  ;;  %v5998_v19 = vsub.f32 %v9448_v9, %v9442_v33  ;;  %v9494_v10 = vld [vmem:[%s9437_s9 + $0x70] sm:$0xff]  ;;  %v9497_v49 = vld [vmem:[%s9437_s9 + $0x78] sm:$0xff] }
 0x64f   : > { %v5999_v8 = vsub.f32 %v9451_v42, %v9442_v33  ;;  %v6000_v54 = vsub.f32 %v9454_v57, %v9442_v33  ;;  %v9500_v51 = vld [vmem:[%s9437_s9 + $0x80] sm:$0xff]  ;;  %v6001_v5 = vsub.f32 %v9457_v16, %v9442_v33  ;;  %v6002_v21 = vsub.f32 %v9460_v35, %v9442_v33  ;;  %v9509_v4 = vld [vmem:[%s9437_s9 + $0x88] sm:$0xff]  ;;  %v9512_v44 = vld [vmem:[%s9437_s9 + $0x90] sm:$0xff] }
 0x650   : > { %v5994_v48 = vmax.f32 %v5993_v14, 0.0  ;;  %v6003_v0 = vsub.f32 %v9463_v50, %v9442_v33  ;;  %v9515_v47 = vld [vmem:[%s9437_s9 + $0x98] sm:$0xff]  ;;  %v6004_v31 = vsub.f32 %v9466_v30, %v9442_v33  ;;  %v6005_v63 = vsub.f32 %v9469_v12, %v9442_v33  ;;  %v9532_v6 = vld [vmem:[%s9437_s9 + $0xa0] sm:$0xff]  ;;  %v9535_v23 = vld [vmem:[%s9437_s9 + $0xa8] sm:$0xff] }
 0x651   : > { %v6006_v24 = vsub.f32 %v9472_v32, %v9442_v33  ;;  %v6007_v40 = vsub.f32 %v9477_v20, %v9442_v33  ;;  %v6008_v56 = vsub.f32 %v9480_v7, %v9442_v33  ;;  %v6009_v15 = vsub.f32 %v9483_v37, %v9442_v33  ;;  %v9544_v1 = vld [vmem:[%s9437_s9 + $0xb0] sm:$0xff]  ;;  %v9547_v2 = vld [vmem:[%s9437_s9 + $0xb8] sm:$0xff]  ;;  %v9550_v13 = vld [vmem:[%s9437_s9 + $0xc0] sm:$0xff] }
 0x652   : > { %v6028_v22 = vadd.f32 1e-05, %v5994_v48  ;;  %v6010_v55 = vsub.f32 %v9494_v10, %v9442_v33  ;;  %v9561_v34 = vld [vmem:[%s9437_s9 + $0xc8] sm:$0xff]  ;;  %v9564_v28 = vld [vmem:[%s9437_s9 + $0xd0] sm:$0xff]  ;;  %v9575_v61 = vld [vmem:[%s9437_s9 + $0xd8] sm:$0xff] }
 0x653   : > { %v9582_v26 = vld [vmem:[%s9887_s5] ss:$0 sm:$0xff]  ;;  %v6147_v9 = vld [vmem:[%s7144_s13 + $0x18] sm:$0xff] }
 0x654   : > { %7018 = vrsqrt.f32 %v6028_v22  ;;  %vm6035_vm10 = vweird.f32 %v6028_v22  ;;  %v9605_v57 = vld [vmem:[%s9888_s6] ss:$0 sm:$0xff]  ;;  %v6151_v48 = vld [vmem:[%s7144_s13 + $0x38] sm:$0xff] }
 0x65a   : > { %v7019_v53 = vpop.eup %7018 }
 0x65b   : > { %v6030_v11 = vmul.f32 %v7019_v53, %v6028_v22  ;;  %vm6036_vm11 = vweird.f32 %v7019_v53  ;;  %v6150_v22 = vld [vmem:[%s7144_s13 + $0x30] sm:$0xff] }
 0x65c   : > { %vm9519_vm12 = vmor %vm6035_vm10, %vm6036_vm11 }
 0x65d   : > { %v6031_v60 = vmul.f32 %v7019_v53, %v6030_v11 }
 0x65f   : > { %v6032_v45 = vmul.f32 0.5, %v6031_v60 }
 0x661   : > { %v6033_v59 = vsub.f32 1.5, %v6032_v45 }
 0x663   : > { %v6034_v52 = vmul.f32 %v7019_v53, %v6033_v59 }
 0x665   : > { %v6038_v17 = vsel %vm9519_vm12, %v7019_v53, %v6034_v52  ;;  %v9591_v53 = vld [vmem:[%s9437_s9 + $0xe0] sm:$0xff] }
 0x666   : > { %v9577_v46 = vperm.slane %v6038_v17, 0  ;;  %v6144_v52 = vld [vmem:[%s7144_s13] sm:$0xff] }
 0x668   : > { %v6040_v42 = vmul.f32 %v9577_v46, %v5996_v25  ;;  %v6041_v60 = vmul.f32 %v9577_v46, %v5997_v39  ;;  %v6042_v16 = vmul.f32 %v9577_v46, %v5998_v19  ;;  %v6043_v35 = vmul.f32 %v9577_v46, %v5999_v8  ;;  %v6145_v39 = vld [vmem:[%s7144_s13 + $0x8] sm:$0xff] }
 0x669   : > { %v6044_v50 = vmul.f32 %v9577_v46, %v6000_v54  ;;  %v6045_v45 = vmul.f32 %v9577_v46, %v6001_v5  ;;  %v6046_v59 = vmul.f32 %v9577_v46, %v6002_v21  ;;  %v6047_v25 = vmul.f32 %v9577_v46, %v6003_v0  ;;  %v6146_v54 = vld [vmem:[%s7144_s13 + $0x10] sm:$0xff]  ;;  %v6148_v21 = vld [vmem:[%s7144_s13 + $0x20] sm:$0xff] }
 0x66a   : > { %v6076_v3 = vmul.f32 %v9582_v26, %v6040_v42  ;;  %v6077_v17 = vmul.f32 %v9582_v26, %v6041_v60  ;;  %v6078_v19 = vmul.f32 %v9582_v26, %v6042_v16  ;;  %v6079_v8 = vmul.f32 %v9582_v26, %v6043_v35  ;;  %v6149_v35 = vld [vmem:[%s7144_s13 + $0x28] sm:$0xff] }
 0x66b   : > { %v6080_v5 = vmul.f32 %v9582_v26, %v6044_v50  ;;  %v6081_v0 = vmul.f32 %v9582_v26, %v6045_v45  ;;  %v6082_v42 = vmul.f32 %v9582_v26, %v6046_v59  ;;  %v6083_v58 = vmul.f32 %v9582_v26, %v6047_v25 }
 0x66c   : > { %v6112_v60 = vadd.f32 %v9605_v57, %v6076_v3  ;;  %v6113_v11 = vadd.f32 %v9605_v57, %v6077_v17  ;;  %v6114_v18 = vadd.f32 %v9605_v57, %v6078_v19  ;;  %v6115_v16 = vadd.f32 %v9605_v57, %v6079_v8 }
 0x66d   : > { %v6116_v50 = vadd.f32 %v9605_v57, %v6080_v5  ;;  %v6117_v14 = vadd.f32 %v9605_v57, %v6081_v0  ;;  %v6118_v45 = vadd.f32 %v9605_v57, %v6082_v42  ;;  %v6119_v59 = vadd.f32 %v9605_v57, %v6083_v58 }
 0x66e   : > { %v6176_v25 = vadd.f32 %v6144_v52, %v6112_v60  ;;  %v6177_v3 = vadd.f32 %v6145_v39, %v6113_v11  ;;  %v6178_v41 = vadd.f32 %v6146_v54, %v6114_v18  ;;  %v6179_v17 = vadd.f32 %v6147_v9, %v6115_v16  ;;  %v6157_v9 = vld [vmem:[%s7144_s13 + $0x68] sm:$0xff]  ;;  %v6158_v52 = vld [vmem:[%s7144_s13 + $0x70] sm:$0xff]  ;;  %v6159_v39 = vld [vmem:[%s7144_s13 + $0x78] sm:$0xff] }
 0x66f   : > { %v6180_v29 = vadd.f32 %v6148_v21, %v6116_v50  ;;  %v6181_v19 = vadd.f32 %v6149_v35, %v6117_v14  ;;  %v6182_v8 = vadd.f32 %v6150_v22, %v6118_v45  ;;  %v6183_v27 = vadd.f32 %v6151_v48, %v6119_v59 }
 0x670   : > { %v6208_v43 = vmax.f32 %v6176_v25, 0.0  ;;  %v6209_v38 = vmax.f32 %v6177_v3, 0.0  ;;  %v6210_v62 = vmax.f32 %v6178_v41, 0.0  ;;  %v6211_v5 = vmax.f32 %v6179_v17, 0.0 }
 0x671   : > { %v6212_v0 = vmax.f32 %v6180_v29, 0.0  ;;  %v6213_v42 = vmax.f32 %v6181_v19, 0.0  ;;  %v6214_v36 = vmax.f32 %v6182_v8, 0.0  ;;  %v6215_v58 = vmax.f32 %v6183_v27, 0.0 }
 0x672   : > { %6241 = vst.msk [vmem:[%s7149_s17] sm:$0xff] %vm6240_vm13, %v6208_v43  ;;  %v6048_v14 = vmul.f32 %v9577_v46, %v6004_v31  ;;  %v6049_v41 = vmul.f32 %v9577_v46, %v6005_v63  ;;  %v6050_v29 = vmul.f32 %v9577_v46, %v6006_v24  ;;  %v6051_v30 = vmul.f32 %v9577_v46, %v6007_v40  ;;  %v6152_v24 = vld [vmem:[%s7144_s13 + $0x40] sm:$0xff]  ;;  %v6153_v40 = vld [vmem:[%s7144_s13 + $0x48] sm:$0xff] }
 0x673   : > { %6242 = vst.msk [vmem:[%s7149_s17 + $0x8] sm:$0xff] %vm6240_vm13, %v6209_v38  ;;  %v6052_v12 = vmul.f32 %v9577_v46, %v6008_v56  ;;  %v6053_v32 = vmul.f32 %v9577_v46, %v6009_v15  ;;  %v6054_v20 = vmul.f32 %v9577_v46, %v6010_v55  ;;  %v10106_v31 = vsub.f32 %v9497_v49, %v9442_v33  ;;  %v6154_v49 = vld [vmem:[%s7144_s13 + $0x50] sm:$0xff]  ;;  %v6155_v15 = vld [vmem:[%s7144_s13 + $0x58] sm:$0xff] }
 0x674   : > { %6243 = vst.msk [vmem:[%s7149_s17 + $0x10] sm:$0xff] %vm6240_vm13, %v6210_v62  ;;  %v6084_v7 = vmul.f32 %v9582_v26, %v6048_v14  ;;  %v6085_v37 = vmul.f32 %v9582_v26, %v6049_v41  ;;  %v6086_v56 = vmul.f32 %v9582_v26, %v6050_v29  ;;  %v6087_v10 = vmul.f32 %v9582_v26, %v6051_v30  ;;  %v6156_v62 = vld [vmem:[%s7144_s13 + $0x60] sm:$0xff] }
 0x675   : > { %v6055_v63 = vmul.f32 %v9577_v46, %v10106_v31  ;;  %6244 = vst.msk [vmem:[%s7149_s17 + $0x18] sm:$0xff] %vm6240_vm13, %v6211_v5  ;;  %v6088_v55 = vmul.f32 %v9582_v26, %v6052_v12  ;;  %v6089_v38 = vmul.f32 %v9582_v26, %v6053_v32  ;;  %v6090_v43 = vmul.f32 %v9582_v26, %v6054_v20 }
 0x676   : > { %6245 = vst.msk [vmem:[%s7149_s17 + $0x20] sm:$0xff] %vm6240_vm13, %v6212_v0  ;;  %v6120_v48 = vadd.f32 %v9605_v57, %v6084_v7  ;;  %v6121_v22 = vadd.f32 %v9605_v57, %v6085_v37  ;;  %v6122_v18 = vadd.f32 %v9605_v57, %v6086_v56  ;;  %v6123_v11 = vadd.f32 %v9605_v57, %v6087_v10  ;;  %v6160_v10 = vld [vmem:[%s7144_s13 + $0x80] sm:$0xff] }
 0x677   : > { %v6091_v27 = vmul.f32 %v9582_v26, %v6055_v63  ;;  %6246 = vst.msk [vmem:[%s7149_s17 + $0x28] sm:$0xff] %vm6240_vm13, %v6213_v42  ;;  %v6124_v54 = vadd.f32 %v9605_v57, %v6088_v55  ;;  %v6125_v21 = vadd.f32 %v9605_v57, %v6089_v38  ;;  %v6126_v60 = vadd.f32 %v9605_v57, %v6090_v43  ;;  %v6163_v55 = vld [vmem:[%s7144_s13 + $0x98] sm:$0xff]  ;;  %v6164_v38 = vld [vmem:[%s7144_s13 + $0xa0] sm:$0xff] }
 0x678   : > { %6247 = vst.msk [vmem:[%s7149_s17 + $0x30] sm:$0xff] %vm6240_vm13, %v6214_v36  ;;  %v6184_v35 = vadd.f32 %v6152_v24, %v6120_v48  ;;  %v6185_v50 = vadd.f32 %v6153_v40, %v6121_v22  ;;  %v6186_v45 = vadd.f32 %v6154_v49, %v6122_v18  ;;  %v6187_v59 = vadd.f32 %v6155_v15, %v6123_v11  ;;  %v6161_v49 = vld [vmem:[%s7144_s13 + $0x88] sm:$0xff] }
 0x679   : > { %v6127_v16 = vadd.f32 %v9605_v57, %v6091_v27  ;;  %6248 = vst.msk [vmem:[%s7149_s17 + $0x38] sm:$0xff] %vm6240_vm13, %v6215_v58  ;;  %v6188_v25 = vadd.f32 %v6156_v62, %v6124_v54  ;;  %v6189_v3 = vadd.f32 %v6157_v9, %v6125_v21  ;;  %v6190_v17 = vadd.f32 %v6158_v52, %v6126_v60  ;;  %v6165_v52 = vld [vmem:[%s7144_s13 + $0xa8] sm:$0xff]  ;;  %v6167_v54 = vld [vmem:[%s7144_s13 + $0xb8] sm:$0xff] }
 0x67a   : > { %v6216_v8 = vmax.f32 %v6184_v35, 0.0  ;;  %v6217_v5 = vmax.f32 %v6185_v50, 0.0  ;;  %v6218_v0 = vmax.f32 %v6186_v45, 0.0  ;;  %v6219_v42 = vmax.f32 %v6187_v59, 0.0 }
 0x67b   : > { %v6191_v19 = vadd.f32 %v6159_v39, %v6127_v16  ;;  %v6220_v14 = vmax.f32 %v6188_v25, 0.0  ;;  %v6221_v36 = vmax.f32 %v6189_v3, 0.0  ;;  %v6222_v41 = vmax.f32 %v6190_v17, 0.0  ;;  %v6166_v39 = vld [vmem:[%s7144_s13 + $0xb0] sm:$0xff] }
 0x67c   : > { %6249 = vst.msk [vmem:[%s7149_s17 + $0x40] sm:$0xff] %vm6240_vm13, %v6216_v8  ;;  %v10107_v58 = vsub.f32 %v9500_v51, %v9442_v33  ;;  %v10108_v12 = vsub.f32 %v9509_v4, %v9442_v33  ;;  %v10109_v20 = vsub.f32 %v9512_v44, %v9442_v33  ;;  %v10110_v63 = vsub.f32 %v9515_v47, %v9442_v33 }
 0x67d   : > { %v6223_v29 = vmax.f32 %v6191_v19, 0.0  ;;  %6250 = vst.msk [vmem:[%s7149_s17 + $0x48] sm:$0xff] %vm6240_vm13, %v6217_v5  ;;  %v10111_v4 = vsub.f32 %v9532_v6, %v9442_v33  ;;  %v10112_v44 = vsub.f32 %v9535_v23, %v9442_v33  ;;  %v10113_v37 = vsub.f32 %v9544_v1, %v9442_v33  ;;  %v5985_v5 = vld [vmem:[%s9437_s9 + $0xe8] sm:$0xff] }
 0x67e   : > { %v6056_v30 = vmul.f32 %v9577_v46, %v10107_v58  ;;  %v6057_v32 = vmul.f32 %v9577_v46, %v10108_v12  ;;  %v6058_v31 = vmul.f32 %v9577_v46, %v10109_v20  ;;  %v6059_v51 = vmul.f32 %v9577_v46, %v10110_v63  ;;  %6251 = vst.msk [vmem:[%s7149_s17 + $0x50] sm:$0xff] %vm6240_vm13, %v6218_v0  ;;  %v5986_v58 = vld [vmem:[%s9437_s9 + $0xf0] sm:$0xff] }
 0x67f   : > { %v6060_v7 = vmul.f32 %v9577_v46, %v10111_v4  ;;  %v6061_v24 = vmul.f32 %v9577_v46, %v10112_v44  ;;  %v6062_v47 = vmul.f32 %v9577_v46, %v10113_v37  ;;  %v10114_v40 = vsub.f32 %v9547_v2, %v9442_v33  ;;  %6252 = vst.msk [vmem:[%s7149_s17 + $0x58] sm:$0xff] %vm6240_vm13, %v6219_v42  ;;  %v6162_v2 = vld [vmem:[%s7144_s13 + $0x90] sm:$0xff] }
 0x680   : > { %v6092_v6 = vmul.f32 %v9582_v26, %v6056_v30  ;;  %v6093_v23 = vmul.f32 %v9582_v26, %v6057_v32  ;;  %v6094_v15 = vmul.f32 %v9582_v26, %v6058_v31  ;;  %v6095_v1 = vmul.f32 %v9582_v26, %v6059_v51  ;;  %6253 = vst.msk [vmem:[%s7149_s17 + $0x60] sm:$0xff] %vm6240_vm13, %v6220_v14 }
 0x681   : > { %v6063_v56 = vmul.f32 %v9577_v46, %v10114_v40  ;;  %v6096_v62 = vmul.f32 %v9582_v26, %v6060_v7  ;;  %v6097_v43 = vmul.f32 %v9582_v26, %v6061_v24  ;;  %v6098_v27 = vmul.f32 %v9582_v26, %v6062_v47  ;;  %6254 = vst.msk [vmem:[%s7149_s17 + $0x68] sm:$0xff] %vm6240_vm13, %v6221_v36  ;;  %v6168_v40 = vld [vmem:[%s7144_s13 + $0xc0] sm:$0xff] }
 0x682   : > { %v6128_v22 = vadd.f32 %v9605_v57, %v6092_v6  ;;  %v6129_v18 = vadd.f32 %v9605_v57, %v6093_v23  ;;  %v6130_v11 = vadd.f32 %v9605_v57, %v6094_v15  ;;  %v6131_v9 = vadd.f32 %v9605_v57, %v6095_v1  ;;  %6255 = vst.msk [vmem:[%s7149_s17 + $0x70] sm:$0xff] %vm6240_vm13, %v6222_v41  ;;  %v5987_v41 = vld [vmem:[%s9437_s9 + $0xf8] sm:$0xff]  ;;  %v6170_v23 = vld [vmem:[%s7144_s13 + $0xd0] sm:$0xff] }
 0x683   : > { %v6099_v48 = vmul.f32 %v9582_v26, %v6063_v56  ;;  %v6132_v21 = vadd.f32 %v9605_v57, %v6096_v62  ;;  %v6133_v60 = vadd.f32 %v9605_v57, %v6097_v43  ;;  %v6134_v16 = vadd.f32 %v9605_v57, %v6098_v27  ;;  %6256 = vst.msk [vmem:[%s7149_s17 + $0x78] sm:$0xff] %vm6240_vm13, %v6223_v29  ;;  %v6172_v27 = vld [vmem:[%s7144_s13 + $0xe0] sm:$0xff] }
 0x684   : > { %v6192_v50 = vadd.f32 %v6160_v10, %v6128_v22  ;;  %v6193_v45 = vadd.f32 %v6161_v49, %v6129_v18  ;;  %v6194_v59 = vadd.f32 %v6162_v2, %v6130_v11  ;;  %v6195_v25 = vadd.f32 %v6163_v55, %v6131_v9  ;;  %v6169_v10 = vld [vmem:[%s7144_s13 + $0xc8] sm:$0xff]  ;;  %v6171_v49 = vld [vmem:[%s7144_s13 + $0xd8] sm:$0xff] }
 0x685   : > { %v6135_v35 = vadd.f32 %v9605_v57, %v6099_v48  ;;  %v6196_v3 = vadd.f32 %v6164_v38, %v6132_v21  ;;  %v6197_v17 = vadd.f32 %v6165_v52, %v6133_v60  ;;  %v6198_v19 = vadd.f32 %v6166_v39, %v6134_v16  ;;  %v6174_v21 = vld [vmem:[%s7144_s13 + $0xf0] sm:$0xff]  ;;  %v6175_v60 = vld [vmem:[%s7144_s13 + $0xf8] sm:$0xff] }
 0x686   : > { %v6224_v0 = vmax.f32 %v6192_v50, 0.0  ;;  %v6225_v42 = vmax.f32 %v6193_v45, 0.0  ;;  %v6226_v14 = vmax.f32 %v6194_v59, 0.0  ;;  %v6227_v36 = vmax.f32 %v6195_v25, 0.0 }
 0x687   : > { %v6199_v8 = vadd.f32 %v6167_v54, %v6135_v35  ;;  %v6228_v30 = vmax.f32 %v6196_v3, 0.0  ;;  %v6229_v12 = vmax.f32 %v6197_v17, 0.0  ;;  %v6230_v32 = vmax.f32 %v6198_v19, 0.0  ;;  %v6173_v54 = vld [vmem:[%s7144_s13 + $0xe8] sm:$0xff] }
 0x688   : > { %6257 = vst.msk [vmem:[%s7149_s17 + $0x80] sm:$0xff] %vm6240_vm13, %v6224_v0  ;;  %v10115_v29 = vsub.f32 %v9550_v13, %v9442_v33  ;;  %v10116_v63 = vsub.f32 %v9561_v34, %v9442_v33  ;;  %v10117_v4 = vsub.f32 %v9564_v28, %v9442_v33  ;;  %v10118_v44 = vsub.f32 %v9575_v61, %v9442_v33 }
 0x689   : > { %v6231_v20 = vmax.f32 %v6199_v8, 0.0  ;;  %6258 = vst.msk [vmem:[%s7149_s17 + $0x88] sm:$0xff] %vm6240_vm13, %v6225_v42  ;;  %v10119_v34 = vsub.f32 %v9591_v53, %v9442_v33  ;;  %v6025_v37 = vsub.f32 %v5985_v5, %v9442_v33  ;;  %v6026_v28 = vsub.f32 %v5986_v58, %v9442_v33 }
 0x68a   : > { %v6064_v31 = vmul.f32 %v9577_v46, %v10115_v29  ;;  %v6065_v51 = vmul.f32 %v9577_v46, %v10116_v63  ;;  %v6066_v7 = vmul.f32 %v9577_v46, %v10117_v4  ;;  %v6067_v13 = vmul.f32 %v9577_v46, %v10118_v44  ;;  %6259 = vst.msk [vmem:[%s7149_s17 + $0x90] sm:$0xff] %vm6240_vm13, %v6226_v14 }
 0x68b   : > { %v6068_v24 = vmul.f32 %v9577_v46, %v10119_v34  ;;  %v6027_v47 = vsub.f32 %v5987_v41, %v9442_v33  ;;  %6260 = vst.msk [vmem:[%s7149_s17 + $0x98] sm:$0xff] %vm6240_vm13, %v6227_v36  ;;  %v6069_v15 = vmul.f32 %v9577_v46, %v6025_v37  ;;  %v6070_v1 = vmul.f32 %v9577_v46, %v6026_v28 }
 0x68c   : > { %v6100_v61 = vmul.f32 %v9582_v26, %v6064_v31  ;;  %v6101_v56 = vmul.f32 %v9582_v26, %v6065_v51  ;;  %v6102_v6 = vmul.f32 %v9582_v26, %v6066_v7  ;;  %v6103_v53 = vmul.f32 %v9582_v26, %v6067_v13  ;;  %6261 = vst.msk [vmem:[%s7149_s17 + $0xa0] sm:$0xff] %vm6240_vm13, %v6228_v30 }
 0x68d   : > { %v6104_v33 = vmul.f32 %v9582_v26, %v6068_v24  ;;  %v6071_v2 = vmul.f32 %v9577_v46, %v6027_v47  ;;  %6262 = vst.msk [vmem:[%s7149_s17 + $0xa8] sm:$0xff] %vm6240_vm13, %v6229_v12  ;;  %v6105_v46 = vmul.f32 %v9582_v26, %v6069_v15  ;;  %v6106_v22 = vmul.f32 %v9582_v26, %v6070_v1 }
 0x68e   : > { %v6136_v55 = vadd.f32 %v9605_v57, %v6100_v61  ;;  %v6137_v62 = vadd.f32 %v9605_v57, %v6101_v56  ;;  %v6138_v38 = vadd.f32 %v9605_v57, %v6102_v6  ;;  %v6139_v43 = vadd.f32 %v9605_v57, %v6103_v53  ;;  %6263 = vst.msk [vmem:[%s7149_s17 + $0xb0] sm:$0xff] %vm6240_vm13, %v6230_v32 }
 0x68f   : > { %v6140_v48 = vadd.f32 %v9605_v57, %v6104_v33  ;;  %v6107_v18 = vmul.f32 %v9582_v26, %v6071_v2  ;;  %6264 = vst.msk [vmem:[%s7149_s17 + $0xb8] sm:$0xff] %vm6240_vm13, %v6231_v20  ;;  %v6141_v35 = vadd.f32 %v9605_v57, %v6105_v46  ;;  %v6142_v26 = vadd.f32 %v9605_v57, %v6106_v22 }
 0x690   : > { %v6200_v11 = vadd.f32 %v6168_v40, %v6136_v55  ;;  %v6201_v9 = vadd.f32 %v6169_v10, %v6137_v62  ;;  %v6202_v52 = vadd.f32 %v6170_v23, %v6138_v38  ;;  %v6203_v39 = vadd.f32 %v6171_v49, %v6139_v43 }
 0x691   : > { %v6204_v16 = vadd.f32 %v6172_v27, %v6140_v48  ;;  %v6143_v50 = vadd.f32 %v9605_v57, %v6107_v18  ;;  %v6205_v17 = vadd.f32 %v6173_v54, %v6141_v35  ;;  %v6206_v19 = vadd.f32 %v6174_v21, %v6142_v26 }
 0x692   : > { %v6232_v45 = vmax.f32 %v6200_v11, 0.0  ;;  %v6233_v59 = vmax.f32 %v6201_v9, 0.0  ;;  %v6234_v25 = vmax.f32 %v6202_v52, 0.0  ;;  %v6235_v3 = vmax.f32 %v6203_v39, 0.0 }
 0x693   : > { %v6207_v8 = vadd.f32 %v6175_v60, %v6143_v50  ;;  %v6236_v5 = vmax.f32 %v6204_v16, 0.0  ;;  %v6237_v0 = vmax.f32 %v6205_v17, 0.0  ;;  %v6238_v57 = vmax.f32 %v6206_v19, 0.0 }
 0x694   : > { %6265 = vst.msk [vmem:[%s7149_s17 + $0xc0] sm:$0xff] %vm6240_vm13, %v6232_v45 }
 0x695   : > { %6266 = vst.msk [vmem:[%s7149_s17 + $0xc8] sm:$0xff] %vm6240_vm13, %v6233_v59  ;;  %v6239_v42 = vmax.f32 %v6207_v8, 0.0 }
 0x696   : > { %6267 = vst.msk [vmem:[%s7149_s17 + $0xd0] sm:$0xff] %vm6240_vm13, %v6234_v25 }
 0x697   : > { %6268 = vst.msk [vmem:[%s7149_s17 + $0xd8] sm:$0xff] %vm6240_vm13, %v6235_v3 }
 0x698   : > { %6269 = vst.msk [vmem:[%s7149_s17 + $0xe0] sm:$0xff] %vm6240_vm13, %v6236_v5 }
 0x699   : > { %6270 = vst.msk [vmem:[%s7149_s17 + $0xe8] sm:$0xff] %vm6240_vm13, %v6237_v0 }
 0x69a   : > { %6271 = vst.msk [vmem:[%s7149_s17 + $0xf0] sm:$0xff] %vm6240_vm13, %v6238_v57 }
 0x69b   : > { %6272 = vst.msk [vmem:[%s7149_s17 + $0xf8] sm:$0xff] %vm6240_vm13, %v6239_v42 }
 0x69c PF: > { %s17_s28 = sadd.s32 1, %s7058_s28   ;;  %s10120_s24 = smov %s7050_s26 }
 0x69d   : > { %p14_p1 = scmp.ge.s32.totalorder %s17_s28, 8   ;;  %s10121_s25 = smov %s7054_s27 }
 0x69e   : > { %s10122_s26 = smov %s10125_s29  ;;  %s10123_s27 = smov %s10129_s30 }
 0x69f   :  { %16 = sbr.rel (!%p14_p1) target bundleno = 3 (0x3), region = 117 }

</bundles_post_ra>
